<compile_context>
chip_gen: v7x
topology: tpu7x:2x2x1
jax: 0.10.0
libtpu: 0.0.40
codegen_flags: <defaults>
</compile_context>

<pallas_src>
import jax
import jax.numpy as jnp
import numpy as np
from jax import lax
from jax.experimental import pallas as pl
from jax.experimental.pallas import tpu as pltpu

EPS = 1e-5  # nn.InstanceNorm2d default eps


# ---------------------------------------------------------------------------
# In-kernel helpers (traced inside the Pallas kernel body)
# ---------------------------------------------------------------------------
def _instance_norm(y):
    """InstanceNorm2d (affine=False) on a flattened (H*W, C) single-sample tile."""
    mean = jnp.mean(y, axis=0, keepdims=True)
    var = jnp.mean((y - mean) * (y - mean), axis=0, keepdims=True)
    return (y - mean) * lax.rsqrt(var + EPS)


def _im2col_3x3(xp, H, W, C, out_dtype):
    """(H+2, W+2, C) padded tile -> (H*W, 9*C) patch slab (columns ordered kh, kw, cin)."""
    cols = []
    for dh in range(3):
        for dw in range(3):
            cols.append(
                xp[dh:dh + H, dw:dw + W, :].reshape(H * W, C).astype(out_dtype))
    return jnp.concatenate(cols, axis=-1)


def resnet_block_kernel(x_ref, xp_ref, w1_ref, b1_ref, w2_ref, b2_ref,
                        o_ref, yp_ref):
    """One sample per grid step.

    x_ref : (1, H*W, C)       f32  residual input (flattened spatial)
    xp_ref: (1, H+2, W+2, C)  bf16 reflection-pre-padded input (conv1 operand)
    w*_ref: (9*C, C)          bf16 im2col weight slabs
    b*_ref: (1, C)            f32  conv biases
    o_ref : (1, H*W, C)       f32  output
    yp_ref: (H+2, W+2, C)     f32  VMEM scratch holding the padded intermediate
    """
    _, Hp, Wp, C = xp_ref.shape
    H, W = Hp - 2, Wp - 2

    # ---- conv1: single im2col matmul on the MXU (bf16 operands, f32 accumulate) ----
    p1 = _im2col_3x3(xp_ref[0], H, W, C, jnp.bfloat16)           # (H*W, 9C) bf16
    y = jnp.dot(p1, w1_ref[...], preferred_element_type=jnp.float32)
    y = y + b1_ref[...]                                           # bias (f32)
    y = jnp.maximum(_instance_norm(y), 0.0)                       # IN + ReLU (f32 VPU)
    # TODO(synk): Dropout(0.5) path (use_dropout=True) omitted — generator default is False.

    # ---- ReflectionPad2d(1) of y built in VMEM scratch (edge stores only) ----------
    yp_ref[1:H + 1, 1:W + 1, :] = y.reshape(H, W, C)              # center
    yp_ref[0:1, 1:W + 1, :] = yp_ref[2:3, 1:W + 1, :]             # top    = y row 1
    yp_ref[H + 1:H + 2, 1:W + 1, :] = yp_ref[H - 1:H, 1:W + 1, :]  # bottom = y row H-2
    yp_ref[:, 0:1, :] = yp_ref[:, 2:3, :]                          # left  (incl. corners)
    yp_ref[:, W + 1:W + 2, :] = yp_ref[:, W - 1:W, :]              # right (incl. corners)

    # ---- conv2: second im2col matmul + InstanceNorm ---------------------------------
    p2 = _im2col_3x3(yp_ref[...], H, W, C, jnp.bfloat16)          # (H*W, 9C) bf16
    z = jnp.dot(p2, w2_ref[...], preferred_element_type=jnp.float32)
    z = _instance_norm(z + b2_ref[...])                            # bias + IN (f32)

    # ---- residual add (f32) ---------------------------------------------------------
    o_ref[0] = (x_ref[0] + z).astype(o_ref.dtype)


# ---------------------------------------------------------------------------
# Wrapper (layout plumbing + pallas_call)
# ---------------------------------------------------------------------------
def _compiler_params(H, W, C):
    f32, bf16 = 4, 2
    hw, hp, wp = H * W, H + 2, W + 2
    per_step = (hw * C * f32              # residual input tile
                + hp * wp * C * bf16      # padded-input tile
                + hw * C * f32            # output tile
                + 2 * 9 * C * C * bf16    # weight slabs
                + 2 * C * f32)            # biases
    working = (2 * per_step               # double-buffered pipeline copies
               + hp * wp * C * f32        # padded-intermediate scratch
               + 2 * hw * 9 * C * bf16    # two im2col slabs (transient)
               + 4 * hw * C * f32)        # f32 intermediates / relayout slack
    # Never below the 32 MiB default, never above v7x's 64 MiB physical VMEM.
    vmem = int(min(max(2 * working + (4 << 20), 32 << 20), 64 << 20))
    return pltpu.CompilerParams(
        dimension_semantics=("parallel",),
        vmem_limit_bytes=vmem)


@jax.jit
def resnet_block(x_nchw, w1, b1, w2, b2):
    """x_nchw: (N, C, H, W) f32; w*: (Cout, Cin, 3, 3) PyTorch layout; b*: (C,)."""
    N, C, H, W = x_nchw.shape
    x = jnp.transpose(x_nchw, (0, 2, 3, 1))                        # NHWC
    x_flat = x.reshape(N, H * W, C)                                # f32 residual path
    # ReflectionPad2d(1) for conv1 done once here; bf16 halves its DMA footprint.
    xp = jnp.pad(x, ((0, 0), (1, 1), (1, 1), (0, 0)),
                 mode="reflect").astype(jnp.bfloat16)

    def slab(w):  # (Cout, Cin, 3, 3) -> (9*Cin, Cout), rows ordered (kh, kw, cin)
        return jnp.transpose(w, (2, 3, 1, 0)).reshape(9 * C, C).astype(jnp.bfloat16)

    w1k, w2k = slab(w1), slab(w2)
    b1k = b1.reshape(1, C).astype(jnp.float32)
    b2k = b2.reshape(1, C).astype(jnp.float32)

    flops = 2 * (2 * 9 * H * W * C * C) * N                        # two 3x3 convs
    bytes_accessed = (N * H * W * C * 4                            # x
                      + N * (H + 2) * (W + 2) * C * 2              # padded x (bf16)
                      + 2 * 9 * C * C * 2 + 2 * C * 4              # weights + biases
                      + N * H * W * C * 4)                         # output

    out_flat = pl.pallas_call(
        resnet_block_kernel,
        out_shape=jax.ShapeDtypeStruct((N, H * W, C), jnp.float32),
        grid_spec=pltpu.PrefetchScalarGridSpec(
            num_scalar_prefetch=0,
            grid=(N,),
            in_specs=[
                pl.BlockSpec((1, H * W, C), lambda n: (n, 0, 0)),
                pl.BlockSpec((1, H + 2, W + 2, C), lambda n: (n, 0, 0, 0)),
                pl.BlockSpec((9 * C, C), lambda n: (0, 0)),
                pl.BlockSpec((1, C), lambda n: (0, 0)),
                pl.BlockSpec((9 * C, C), lambda n: (0, 0)),
                pl.BlockSpec((1, C), lambda n: (0, 0)),
            ],
            out_specs=pl.BlockSpec((1, H * W, C), lambda n: (n, 0, 0)),
            scratch_shapes=[pltpu.VMEM((H + 2, W + 2, C), jnp.float32)],
        ),
        compiler_params=_compiler_params(H, W, C),
        cost_estimate=pl.CostEstimate(
            flops=flops, transcendentals=0, bytes_accessed=bytes_accessed),
    )(x_flat, xp, w1k, b1k, w2k, b2k)

    out = out_flat.reshape(N, H, W, C)
    return jnp.transpose(out, (0, 3, 1, 2))                        # back to NCHW


# ---------------------------------------------------------------------------
# Pure-JAX reference. conv_dtype=bf16 models the kernel's MXU-operand precision;
# conv_dtype=f32 is the exact PyTorch math.
# ---------------------------------------------------------------------------
def resnet_block_ref(x_nchw, w1, b1, w2, b2, conv_dtype=jnp.float32):
    x = jnp.transpose(x_nchw, (0, 2, 3, 1))                        # NHWC

    def conv_in_block(z, w, b):
        zp = jnp.pad(z, ((0, 0), (1, 1), (1, 1), (0, 0)), mode="reflect")
        y = lax.conv_general_dilated(
            zp.astype(conv_dtype),
            jnp.transpose(w, (2, 3, 1, 0)).astype(conv_dtype),     # HWIO
            window_strides=(1, 1), padding="VALID",
            dimension_numbers=("NHWC", "HWIO", "NHWC"),
            preferred_element_type=jnp.float32)
        y = y + b.reshape(1, 1, 1, -1)
        mean = jnp.mean(y, axis=(1, 2), keepdims=True)
        var = jnp.mean((y - mean) ** 2, axis=(1, 2), keepdims=True)
        return (y - mean) * lax.rsqrt(var + EPS)

    y = jnp.maximum(conv_in_block(x, w1, b1), 0.0)
    y = conv_in_block(y, w2, b2)
    return jnp.transpose(x + y, (0, 3, 1, 2))


# ---------------------------------------------------------------------------
if __name__ == "__main__":
    N, C, H, W = 2, 4, 16, 16                     # small test shapes (production dim=256)

    key = jax.random.PRNGKey(0)
    kx, kw1, kb1, kw2, kb2 = jax.random.split(key, 5)

    x = jax.random.normal(kx, (N, C, H, W), dtype=jnp.float32)
    w1 = 0.1 * jax.random.normal(kw1, (C, C, 3, 3), dtype=jnp.float32)
    b1 = 0.1 * jax.random.normal(kb1, (C,), dtype=jnp.float32)
    w2 = 0.1 * jax.random.normal(kw2, (C, C, 3, 3), dtype=jnp.float32)
    b2 = 0.1 * jax.random.normal(kb2, (C,), dtype=jnp.float32)

    out = jax.block_until_ready(resnet_block(x, w1, b1, w2, b2))

    # Matched-precision reference (bf16 conv operands, f32 accumulate): tight check of
    # padding / im2col ordering / InstanceNorm / residual logic.
    ref_bf16 = jax.block_until_ready(
        resnet_block_ref(x, w1, b1, w2, b2, conv_dtype=jnp.bfloat16))
    np.testing.assert_allclose(np.asarray(out), np.asarray(ref_bf16),
                               rtol=2e-3, atol=2e-3)

    # Full-f32 (PyTorch-exact) reference: loose sanity check on the bf16 MXU policy.
    ref_f32 = jax.block_until_ready(resnet_block_ref(x, w1, b1, w2, b2))
    np.testing.assert_allclose(np.asarray(out), np.asarray(ref_f32),
                               rtol=5e-2, atol=5e-2)

    print("KERNEL_OK")
</pallas_src>

<mosaic_0001>
module attributes {stable_mosaic.version = 11 : i64} {
  func.func @resnet_block_kernel(%arg0: i32, %arg1: memref<1x256x4xf32, #tpu.memory_space<vmem>>, %arg2: memref<1x18x18x4xbf16, #tpu.memory_space<vmem>>, %arg3: memref<36x4xbf16, #tpu.memory_space<vmem>>, %arg4: memref<1x4xf32, #tpu.memory_space<vmem>>, %arg5: memref<36x4xbf16, #tpu.memory_space<vmem>>, %arg6: memref<1x4xf32, #tpu.memory_space<vmem>>, %arg7: memref<1x256x4xf32, #tpu.memory_space<vmem>>, %arg8: memref<18x18x4xf32, #tpu.memory_space<vmem>>) attributes {dimension_semantics = [#tpu.dimension_semantics<parallel>], iteration_bounds = array<i64: 2>, scalar_prefetch = 0 : i64, scratch_operands = 1 : i64, tpu.core_type = #tpu.core_type<tc>, window_params = [{transform_indices = @transform_0, window_bounds = array<i64: 1, 256, 4>}, {transform_indices = @transform_1, window_bounds = array<i64: 1, 18, 18, 4>}, {pipeline_mode = #tpu.pipeline_mode<synchronous>, transform_indices = @transform_2, window_bounds = array<i64: 36, 4>}, {pipeline_mode = #tpu.pipeline_mode<synchronous>, transform_indices = @transform_3, window_bounds = array<i64: 1, 4>}, {pipeline_mode = #tpu.pipeline_mode<synchronous>, transform_indices = @transform_4, window_bounds = array<i64: 36, 4>}, {pipeline_mode = #tpu.pipeline_mode<synchronous>, transform_indices = @transform_5, window_bounds = array<i64: 1, 4>}, {transform_indices = @transform_6, window_bounds = array<i64: 1, 256, 4>}]} {
    %c0 = arith.constant 0 : index
    %c0_0 = arith.constant 0 : index
    %c0_1 = arith.constant 0 : index
    %c0_2 = arith.constant 0 : index
    %0 = vector.load %arg2[%c0, %c0_0, %c0_1, %c0_2] : memref<1x18x18x4xbf16, #tpu.memory_space<vmem>>, vector<1x18x18x4xbf16>
    %1 = vector.shape_cast %0 : vector<1x18x18x4xbf16> to vector<18x18x4xbf16>
    %2 = vector.extract_strided_slice %1 {offsets = [0, 0, 0], sizes = [16, 16, 4], strides = [1, 1, 1]} : vector<18x18x4xbf16> to vector<16x16x4xbf16>
    %3 = vector.shape_cast %2 : vector<16x16x4xbf16> to vector<256x4xbf16>
    %4 = vector.extract_strided_slice %1 {offsets = [0, 1, 0], sizes = [16, 16, 4], strides = [1, 1, 1]} : vector<18x18x4xbf16> to vector<16x16x4xbf16>
    %5 = vector.shape_cast %4 : vector<16x16x4xbf16> to vector<256x4xbf16>
    %6 = vector.extract_strided_slice %1 {offsets = [0, 2, 0], sizes = [16, 16, 4], strides = [1, 1, 1]} : vector<18x18x4xbf16> to vector<16x16x4xbf16>
    %7 = vector.shape_cast %6 : vector<16x16x4xbf16> to vector<256x4xbf16>
    %8 = vector.extract_strided_slice %1 {offsets = [1, 0, 0], sizes = [16, 16, 4], strides = [1, 1, 1]} : vector<18x18x4xbf16> to vector<16x16x4xbf16>
    %9 = vector.shape_cast %8 : vector<16x16x4xbf16> to vector<256x4xbf16>
    %10 = vector.extract_strided_slice %1 {offsets = [1, 1, 0], sizes = [16, 16, 4], strides = [1, 1, 1]} : vector<18x18x4xbf16> to vector<16x16x4xbf16>
    %11 = vector.shape_cast %10 : vector<16x16x4xbf16> to vector<256x4xbf16>
    %12 = vector.extract_strided_slice %1 {offsets = [1, 2, 0], sizes = [16, 16, 4], strides = [1, 1, 1]} : vector<18x18x4xbf16> to vector<16x16x4xbf16>
    %13 = vector.shape_cast %12 : vector<16x16x4xbf16> to vector<256x4xbf16>
    %14 = vector.extract_strided_slice %1 {offsets = [2, 0, 0], sizes = [16, 16, 4], strides = [1, 1, 1]} : vector<18x18x4xbf16> to vector<16x16x4xbf16>
    %15 = vector.shape_cast %14 : vector<16x16x4xbf16> to vector<256x4xbf16>
    %16 = vector.extract_strided_slice %1 {offsets = [2, 1, 0], sizes = [16, 16, 4], strides = [1, 1, 1]} : vector<18x18x4xbf16> to vector<16x16x4xbf16>
    %17 = vector.shape_cast %16 : vector<16x16x4xbf16> to vector<256x4xbf16>
    %18 = vector.extract_strided_slice %1 {offsets = [2, 2, 0], sizes = [16, 16, 4], strides = [1, 1, 1]} : vector<18x18x4xbf16> to vector<16x16x4xbf16>
    %19 = vector.shape_cast %18 : vector<16x16x4xbf16> to vector<256x4xbf16>
    %20 = tpu.concatenate %3, %5, %7, %9, %11, %13, %15, %17, %19 in 1 : vector<256x4xbf16>, vector<256x4xbf16>, vector<256x4xbf16>, vector<256x4xbf16>, vector<256x4xbf16>, vector<256x4xbf16>, vector<256x4xbf16>, vector<256x4xbf16>, vector<256x4xbf16> -> vector<256x36xbf16>
    %c0_3 = arith.constant 0 : index
    %c0_4 = arith.constant 0 : index
    %21 = vector.load %arg3[%c0_3, %c0_4] : memref<36x4xbf16, #tpu.memory_space<vmem>>, vector<36x4xbf16>
    %cst = arith.constant dense<0.000000e+00> : vector<256x4xf32>
    %22 = tpu.matmul %20, %21, %cst {dimension_numbers = #tpu.dot_dimension_numbers<[1], [0], [0], [1], [0, 0, 1, 1], [], []>} : vector<256x36xbf16>, vector<36x4xbf16>, vector<256x4xf32> -> vector<256x4xf32>
    %c0_5 = arith.constant 0 : index
    %c0_6 = arith.constant 0 : index
    %23 = vector.load %arg4[%c0_5, %c0_6] : memref<1x4xf32, #tpu.memory_space<vmem>>, vector<1x4xf32>
    %24 = vector.broadcast %23 : vector<1x4xf32> to vector<256x4xf32>
    %25 = arith.addf %22, %24 : vector<256x4xf32>
    %cst_7 = arith.constant dense<0.000000e+00> : vector<4xf32>
    %26 = vector.multi_reduction <add>, %25, %cst_7 [0] : vector<256x4xf32> to vector<4xf32>
    %27 = vector.shape_cast %26 : vector<4xf32> to vector<1x4xf32>
    %cst_8 = arith.constant 2.560000e+02 : f32
    %28 = vector.broadcast %cst_8 : f32 to vector<1x4xf32>
    %29 = arith.divf %27, %28 : vector<1x4xf32>
    %30 = vector.broadcast %29 : vector<1x4xf32> to vector<256x4xf32>
    %31 = arith.subf %25, %30 : vector<256x4xf32>
    %32 = vector.broadcast %29 : vector<1x4xf32> to vector<256x4xf32>
    %33 = arith.subf %25, %32 : vector<256x4xf32>
    %34 = arith.mulf %31, %33 : vector<256x4xf32>
    %cst_9 = arith.constant dense<0.000000e+00> : vector<4xf32>
    %35 = vector.multi_reduction <add>, %34, %cst_9 [0] : vector<256x4xf32> to vector<4xf32>
    %36 = vector.shape_cast %35 : vector<4xf32> to vector<1x4xf32>
    %cst_10 = arith.constant 2.560000e+02 : f32
    %37 = vector.broadcast %cst_10 : f32 to vector<1x4xf32>
    %38 = arith.divf %36, %37 : vector<1x4xf32>
    %39 = vector.broadcast %29 : vector<1x4xf32> to vector<256x4xf32>
    %40 = arith.subf %25, %39 : vector<256x4xf32>
    %cst_11 = arith.constant 9.99999974E-6 : f32
    %41 = vector.broadcast %cst_11 : f32 to vector<1x4xf32>
    %42 = arith.addf %38, %41 : vector<1x4xf32>
    %43 = math.rsqrt %42 : vector<1x4xf32>
    %44 = vector.broadcast %43 : vector<1x4xf32> to vector<256x4xf32>
    %45 = arith.mulf %40, %44 : vector<256x4xf32>
    %cst_12 = arith.constant 0.000000e+00 : f32
    %46 = vector.broadcast %cst_12 : f32 to vector<256x4xf32>
    %47 = arith.maximumf %45, %46 : vector<256x4xf32>
    %48 = vector.shape_cast %47 : vector<256x4xf32> to vector<16x16x4xf32>
    %c1 = arith.constant 1 : index
    %c1_13 = arith.constant 1 : index
    %c0_14 = arith.constant 0 : index
    %49 = vector.load %arg8[%c1, %c1_13, %c0_14] : memref<18x18x4xf32, #tpu.memory_space<vmem>>, vector<16x16x4xf32>
    tpu.vector_store %arg8[%c1, %c1_13, %c0_14], %48 {strides = array<i32>} : memref<18x18x4xf32, #tpu.memory_space<vmem>>, vector<16x16x4xf32>,
    %c2 = arith.constant 2 : index
    %c1_15 = arith.constant 1 : index
    %c0_16 = arith.constant 0 : index
    %50 = vector.load %arg8[%c2, %c1_15, %c0_16] : memref<18x18x4xf32, #tpu.memory_space<vmem>>, vector<1x16x4xf32>
    %c0_17 = arith.constant 0 : index
    %c1_18 = arith.constant 1 : index
    %c0_19 = arith.constant 0 : index
    %51 = vector.load %arg8[%c0_17, %c1_18, %c0_19] : memref<18x18x4xf32, #tpu.memory_space<vmem>>, vector<1x16x4xf32>
    tpu.vector_store %arg8[%c0_17, %c1_18, %c0_19], %50 {strides = array<i32>} : memref<18x18x4xf32, #tpu.memory_space<vmem>>, vector<1x16x4xf32>,
    %c15 = arith.constant 15 : index
    %c1_20 = arith.constant 1 : index
    %c0_21 = arith.constant 0 : index
    %52 = vector.load %arg8[%c15, %c1_20, %c0_21] : memref<18x18x4xf32, #tpu.memory_space<vmem>>, vector<1x16x4xf32>
    %c17 = arith.constant 17 : index
    %c1_22 = arith.constant 1 : index
    %c0_23 = arith.constant 0 : index
    %53 = vector.load %arg8[%c17, %c1_22, %c0_23] : memref<18x18x4xf32, #tpu.memory_space<vmem>>, vector<1x16x4xf32>
    tpu.vector_store %arg8[%c17, %c1_22, %c0_23], %52 {strides = array<i32>} : memref<18x18x4xf32, #tpu.memory_space<vmem>>, vector<1x16x4xf32>,
    %c0_24 = arith.constant 0 : index
    %c2_25 = arith.constant 2 : index
    %c0_26 = arith.constant 0 : index
    %54 = vector.load %arg8[%c0_24, %c2_25, %c0_26] : memref<18x18x4xf32, #tpu.memory_space<vmem>>, vector<18x1x4xf32>
    %c0_27 = arith.constant 0 : index
    %c0_28 = arith.constant 0 : index
    %c0_29 = arith.constant 0 : index
    %55 = vector.load %arg8[%c0_27, %c0_28, %c0_29] : memref<18x18x4xf32, #tpu.memory_space<vmem>>, vector<18x1x4xf32>
    tpu.vector_store %arg8[%c0_27, %c0_28, %c0_29], %54 {strides = array<i32>} : memref<18x18x4xf32, #tpu.memory_space<vmem>>, vector<18x1x4xf32>,
    %c0_30 = arith.constant 0 : index
    %c15_31 = arith.constant 15 : index
    %c0_32 = arith.constant 0 : index
    %56 = vector.load %arg8[%c0_30, %c15_31, %c0_32] : memref<18x18x4xf32, #tpu.memory_space<vmem>>, vector<18x1x4xf32>
    %c0_33 = arith.constant 0 : index
    %c17_34 = arith.constant 17 : index
    %c0_35 = arith.constant 0 : index
    %57 = vector.load %arg8[%c0_33, %c17_34, %c0_35] : memref<18x18x4xf32, #tpu.memory_space<vmem>>, vector<18x1x4xf32>
    tpu.vector_store %arg8[%c0_33, %c17_34, %c0_35], %56 {strides = array<i32>} : memref<18x18x4xf32, #tpu.memory_space<vmem>>, vector<18x1x4xf32>,
    %c0_36 = arith.constant 0 : index
    %c0_37 = arith.constant 0 : index
    %c0_38 = arith.constant 0 : index
    %58 = vector.load %arg8[%c0_36, %c0_37, %c0_38] : memref<18x18x4xf32, #tpu.memory_space<vmem>>, vector<18x18x4xf32>
    %59 = vector.extract_strided_slice %58 {offsets = [0, 0, 0], sizes = [16, 16, 4], strides = [1, 1, 1]} : vector<18x18x4xf32> to vector<16x16x4xf32>
    %60 = vector.shape_cast %59 : vector<16x16x4xf32> to vector<256x4xf32>
    %61 = arith.truncf %60 : vector<256x4xf32> to vector<256x4xbf16>
    %62 = vector.extract_strided_slice %58 {offsets = [0, 1, 0], sizes = [16, 16, 4], strides = [1, 1, 1]} : vector<18x18x4xf32> to vector<16x16x4xf32>
    %63 = vector.shape_cast %62 : vector<16x16x4xf32> to vector<256x4xf32>
    %64 = arith.truncf %63 : vector<256x4xf32> to vector<256x4xbf16>
    %65 = vector.extract_strided_slice %58 {offsets = [0, 2, 0], sizes = [16, 16, 4], strides = [1, 1, 1]} : vector<18x18x4xf32> to vector<16x16x4xf32>
    %66 = vector.shape_cast %65 : vector<16x16x4xf32> to vector<256x4xf32>
    %67 = arith.truncf %66 : vector<256x4xf32> to vector<256x4xbf16>
    %68 = vector.extract_strided_slice %58 {offsets = [1, 0, 0], sizes = [16, 16, 4], strides = [1, 1, 1]} : vector<18x18x4xf32> to vector<16x16x4xf32>
    %69 = vector.shape_cast %68 : vector<16x16x4xf32> to vector<256x4xf32>
    %70 = arith.truncf %69 : vector<256x4xf32> to vector<256x4xbf16>
    %71 = vector.extract_strided_slice %58 {offsets = [1, 1, 0], sizes = [16, 16, 4], strides = [1, 1, 1]} : vector<18x18x4xf32> to vector<16x16x4xf32>
    %72 = vector.shape_cast %71 : vector<16x16x4xf32> to vector<256x4xf32>
    %73 = arith.truncf %72 : vector<256x4xf32> to vector<256x4xbf16>
    %74 = vector.extract_strided_slice %58 {offsets = [1, 2, 0], sizes = [16, 16, 4], strides = [1, 1, 1]} : vector<18x18x4xf32> to vector<16x16x4xf32>
    %75 = vector.shape_cast %74 : vector<16x16x4xf32> to vector<256x4xf32>
    %76 = arith.truncf %75 : vector<256x4xf32> to vector<256x4xbf16>
    %77 = vector.extract_strided_slice %58 {offsets = [2, 0, 0], sizes = [16, 16, 4], strides = [1, 1, 1]} : vector<18x18x4xf32> to vector<16x16x4xf32>
    %78 = vector.shape_cast %77 : vector<16x16x4xf32> to vector<256x4xf32>
    %79 = arith.truncf %78 : vector<256x4xf32> to vector<256x4xbf16>
    %80 = vector.extract_strided_slice %58 {offsets = [2, 1, 0], sizes = [16, 16, 4], strides = [1, 1, 1]} : vector<18x18x4xf32> to vector<16x16x4xf32>
    %81 = vector.shape_cast %80 : vector<16x16x4xf32> to vector<256x4xf32>
    %82 = arith.truncf %81 : vector<256x4xf32> to vector<256x4xbf16>
    %83 = vector.extract_strided_slice %58 {offsets = [2, 2, 0], sizes = [16, 16, 4], strides = [1, 1, 1]} : vector<18x18x4xf32> to vector<16x16x4xf32>
    %84 = vector.shape_cast %83 : vector<16x16x4xf32> to vector<256x4xf32>
    %85 = arith.truncf %84 : vector<256x4xf32> to vector<256x4xbf16>
    %86 = tpu.concatenate %61, %64, %67, %70, %73, %76, %79, %82, %85 in 1 : vector<256x4xbf16>, vector<256x4xbf16>, vector<256x4xbf16>, vector<256x4xbf16>, vector<256x4xbf16>, vector<256x4xbf16>, vector<256x4xbf16>, vector<256x4xbf16>, vector<256x4xbf16> -> vector<256x36xbf16>
    %c0_39 = arith.constant 0 : index
    %c0_40 = arith.constant 0 : index
    %87 = vector.load %arg5[%c0_39, %c0_40] : memref<36x4xbf16, #tpu.memory_space<vmem>>, vector<36x4xbf16>
    %cst_41 = arith.constant dense<0.000000e+00> : vector<256x4xf32>
    %88 = tpu.matmul %86, %87, %cst_41 {dimension_numbers = #tpu.dot_dimension_numbers<[1], [0], [0], [1], [0, 0, 1, 1], [], []>} : vector<256x36xbf16>, vector<36x4xbf16>, vector<256x4xf32> -> vector<256x4xf32>
    %c0_42 = arith.constant 0 : index
    %c0_43 = arith.constant 0 : index
    %89 = vector.load %arg6[%c0_42, %c0_43] : memref<1x4xf32, #tpu.memory_space<vmem>>, vector<1x4xf32>
    %90 = vector.broadcast %89 : vector<1x4xf32> to vector<256x4xf32>
    %91 = arith.addf %88, %90 : vector<256x4xf32>
    %cst_44 = arith.constant dense<0.000000e+00> : vector<4xf32>
    %92 = vector.multi_reduction <add>, %91, %cst_44 [0] : vector<256x4xf32> to vector<4xf32>
    %93 = vector.shape_cast %92 : vector<4xf32> to vector<1x4xf32>
    %cst_45 = arith.constant 2.560000e+02 : f32
    %94 = vector.broadcast %cst_45 : f32 to vector<1x4xf32>
    %95 = arith.divf %93, %94 : vector<1x4xf32>
    %96 = vector.broadcast %95 : vector<1x4xf32> to vector<256x4xf32>
    %97 = arith.subf %91, %96 : vector<256x4xf32>
    %98 = vector.broadcast %95 : vector<1x4xf32> to vector<256x4xf32>
    %99 = arith.subf %91, %98 : vector<256x4xf32>
    %100 = arith.mulf %97, %99 : vector<256x4xf32>
    %cst_46 = arith.constant dense<0.000000e+00> : vector<4xf32>
    %101 = vector.multi_reduction <add>, %100, %cst_46 [0] : vector<256x4xf32> to vector<4xf32>
    %102 = vector.shape_cast %101 : vector<4xf32> to vector<1x4xf32>
    %cst_47 = arith.constant 2.560000e+02 : f32
    %103 = vector.broadcast %cst_47 : f32 to vector<1x4xf32>
    %104 = arith.divf %102, %103 : vector<1x4xf32>
    %105 = vector.broadcast %95 : vector<1x4xf32> to vector<256x4xf32>
    %106 = arith.subf %91, %105 : vector<256x4xf32>
    %cst_48 = arith.constant 9.99999974E-6 : f32
    %107 = vector.broadcast %cst_48 : f32 to vector<1x4xf32>
    %108 = arith.addf %104, %107 : vector<1x4xf32>
    %109 = math.rsqrt %108 : vector<1x4xf32>
    %110 = vector.broadcast %109 : vector<1x4xf32> to vector<256x4xf32>
    %111 = arith.mulf %106, %110 : vector<256x4xf32>
    %c0_49 = arith.constant 0 : index
    %c0_50 = arith.constant 0 : index
    %c0_51 = arith.constant 0 : index
    %112 = vector.load %arg1[%c0_49, %c0_50, %c0_51] : memref<1x256x4xf32, #tpu.memory_space<vmem>>, vector<1x256x4xf32>
    %113 = vector.shape_cast %112 : vector<1x256x4xf32> to vector<256x4xf32>
    %114 = arith.addf %113, %111 : vector<256x4xf32>
    %c0_52 = arith.constant 0 : index
    %c0_53 = arith.constant 0 : index
    %c0_54 = arith.constant 0 : index
    %115 = vector.load %arg7[%c0_52, %c0_53, %c0_54] : memref<1x256x4xf32, #tpu.memory_space<vmem>>, vector<1x256x4xf32>
    %116 = vector.shape_cast %115 : vector<1x256x4xf32> to vector<256x4xf32>
    %117 = vector.shape_cast %114 : vector<256x4xf32> to vector<1x256x4xf32>
    tpu.vector_store %arg7[%c0_52, %c0_53, %c0_54], %117 {strides = array<i32>} : memref<1x256x4xf32, #tpu.memory_space<vmem>>, vector<1x256x4xf32>,
    return
  }
  func.func @transform_0(%arg0: i32) -> (i32, i32, i32) {
    %c0_i32 = arith.constant 0 : i32
    %c0_i32_0 = arith.constant 0 : i32
    %c0_i32_1 = arith.constant 0 : i32
    return %arg0, %c0_i32, %c0_i32_0 : i32, i32, i32
  }
  func.func @transform_1(%arg0: i32) -> (i32, i32, i32, i32) {
    %c0_i32 = arith.constant 0 : i32
    %c0_i32_0 = arith.constant 0 : i32
    %c0_i32_1 = arith.constant 0 : i32
    %c0_i32_2 = arith.constant 0 : i32
    return %arg0, %c0_i32, %c0_i32_0, %c0_i32_1 : i32, i32, i32, i32
  }
  func.func @transform_2(%arg0: i32) -> (i32, i32) {
    %c0_i32 = arith.constant 0 : i32
    %c0_i32_0 = arith.constant 0 : i32
    %c0_i32_1 = arith.constant 0 : i32
    return %c0_i32, %c0_i32_0 : i32, i32
  }
  func.func @transform_3(%arg0: i32) -> (i32, i32) {
    %c0_i32 = arith.constant 0 : i32
    %c0_i32_0 = arith.constant 0 : i32
    %c0_i32_1 = arith.constant 0 : i32
    return %c0_i32, %c0_i32_0 : i32, i32
  }
  func.func @transform_4(%arg0: i32) -> (i32, i32) {
    %c0_i32 = arith.constant 0 : i32
    %c0_i32_0 = arith.constant 0 : i32
    %c0_i32_1 = arith.constant 0 : i32
    return %c0_i32, %c0_i32_0 : i32, i32
  }
  func.func @transform_5(%arg0: i32) -> (i32, i32) {
    %c0_i32 = arith.constant 0 : i32
    %c0_i32_0 = arith.constant 0 : i32
    %c0_i32_1 = arith.constant 0 : i32
    return %c0_i32, %c0_i32_0 : i32, i32
  }
  func.func @transform_6(%arg0: i32) -> (i32, i32, i32) {
    %c0_i32 = arith.constant 0 : i32
    %c0_i32_0 = arith.constant 0 : i32
    %c0_i32_1 = arith.constant 0 : i32
    return %arg0, %c0_i32, %c0_i32_0 : i32, i32, i32
  }
}

</mosaic_0001>

<bundles_post_ra>
// kernel: resnet_block.1
= control target key start
LH: loop header
LB: loop body
LE: loop exit
PB: predicated region body
PF: predicated region fallthrough
CT: control target
= control target key end

     0   :  { %s4215_s21 = smov 0   ;;  %s7010_s0 = inlined_call_operand.vmem [shape: f32[2,256,4], index: 0, kind: input, shape index: {}]   ;;  %s7011_s1 = inlined_call_operand.vmem [shape: bf16[2,18,18,4], index: 1, kind: input, shape index: {}]   ;;  %s7012_s2 = inlined_call_operand.vmem [shape: bf16[36,4], index: 2, kind: input, shape index: {}]   ;;  %s7013_s3 = inlined_call_operand.vmem [shape: f32[1,4], index: 3, kind: input, shape index: {}]   ;;  %s7014_s4 = inlined_call_operand.vmem [shape: bf16[36,4], index: 4, kind: input, shape index: {}]   ;;  %s7015_s5 = inlined_call_operand.vmem [shape: f32[1,4], index: 5, kind: input, shape index: {}]   ;;  %s7016_s6 = inlined_call_operand.vmem [shape: f32[2,256,4], index: 6, kind: output, shape index: {}]  }
   0x1 LB: > { %s3877_s22 = sadd.s32 4294967295, %s4170_s21   ;;  %p3881_p0 = scmp.ge.s32.totalorder %s4170_s21, 1  ;;  %s4170_s21 = sphi %s4215_s21, %s16_s21  }
   0x2   : > { %p222_p1 = scmp.lt.s32.totalorder %s4170_s21, 3 }
   0x4   : > { %p223_p2 = pnand %p3881_p0, %p222_p1 }
   0x6   : > { %226 = sbr.rel (%p223_p2) target bundleno = 1504 (0x5e0), region = 44 }
   0xd   : > { %p257_p3 = scmp.lt.s32.totalorder %s3877_s22, 1  ;;  %vm762_vm0 = vcmask 1042432   ;;  %vm763_vm1 = vcmask 1046532   ;;  %vm327_vm2 = vsmask.f32 3328  ;;  %s4172_s27 = smov 12  }
   0xe   : > { %vm328_vm3 = vsmask.f32 7440  ;;  %vm4251_vm4 = vmor %vm762_vm0, %vm763_vm1  ;;  %s4173_s28 = smov 20   ;;  %s4174_s29 = smov 8   ;;  %vm1703_vm6 = vcmask 1041408   ;;  %vm1363_vm7 = vcmask 31744  }
   0xf   : > { %s7057_s22 = smov (!%p257_p3, %s3877_s22), 1  ;;  %vm4286_vm5 = vmor %vm327_vm2, %vm328_vm3  ;;  %s4175_s30 = smov 4   ;;  %vm1412_vm8 = vcmask 64512   ;;  %vm1445_vm9 = vcmask 97280   ;;  %vm1478_vm10 = vcmask 130048   ;;  %vm1511_vm11 = vcmask 162816  }
  0x10   : > { %s4119_s23 = smul.u32 216, %s7057_s22  ;;  %s4176_s11 = smov 16   ;;  %vm1544_vm12 = vcmask 195584   ;;  %vm1577_vm13 = vcmask 228352   ;;  %vm1610_vm14 = vcmask 261120   ;;  %vm1670_vm15 = vcmask 293888  }
  0x11   : > { %s4177_s12 = smov 24   ;;  %s4178_s13 = smov 28   ;;  %vm2201_vm0 = vcmask 24576   ;;  %vm2374_vm1 = vcmask 1046528   ;;  %vm2503_vm2 = vcmask 1045504  }
  0x12   : > { %s4229_s26 = scalar_lea.vmem %s7011_s1, %s4119_s23  ;;  %s4179_s14 = smov 32  }
  0x13   : > { %v4232_v0 = vld [vmem:[%s4229_s26 + $0x18] sm:$0xf]  ;;  %v4235_v1 = vld [vmem:[%s4229_s26 + $0x1c] sm:$0xf]  ;;  %v276_v2 = vld [vmem:[%s4229_s26 + $0xc] sm:$0xf] }
  0x14   : > { %v392_v3 = vshrl.u32 %v4235_v1, 16  ;;  %v4241_v4 = vcombine.low %v4232_v0, %v4235_v1  ;;  %v379_v5 = vshrl.u32 %v4232_v0, 16  ;;  %v382_v6 = vshll.u32 %v4232_v0, 16  ;;  %v277_v7 = vld [vmem:[%s4229_s26 + $0x10] sm:$0xf] }
  0x15   : > { %v364_v8 = vshll.u32 %v277_v7, 16  ;;  %v368_v9 = vshrl.u32 %v277_v7, 16  ;;  %v4246_v10 = vcombine.low %v276_v2, %v277_v7  ;;  %v355_v11 = vshrl.u32 %v276_v2, 16  ;;  %v278_v12 = vld [vmem:[%s4229_s26 + $0x14] sm:$0x1] }
  0x16   : > { %1158 = vrot.lane.b32.xlu1 %v4241_v4, %s4172_s27  ;;  %v358_v14 = vshll.u32 %v276_v2, 16  ;;  %v3888_v15 = vrot.slane %v276_v2, 9  ;;  %v774_v16 = vrot.slane %v277_v7, 5  ;;  %v777_v17 = vrot.slane %v278_v12, 5  ;;  %v4258_v18 = vld [vmem:[%s4229_s26] sm:$0xf] }
  0x17   : > { %v370_v19 = vrot.slane %v368_v9, 4  ;;  %1156 = vrot.lane.b32.xlu0 %v4246_v10, %s4172_s27  ;;  %v357_v20 = vrot.slane %v355_v11, 4  ;;  %v4263_v21 = vld [vmem:[%s4229_s26 + $0x4] sm:$0xf]  ;;  %v275_v22 = vld [vmem:[%s4229_s26 + $0x8] sm:$0x1] }
  0x18   : > { %v360_v23 = vrot.slane %v358_v14, 5  ;;  %v775_v24 = vsel %vm4251_vm4, %v3888_v15, %v774_v16  ;;  %v776_v25 = vrot.slane %v774_v16, 4  ;;  %v3887_v26 = vrot.slane %v4258_v18, 9  ;;  %v281_v35 = vld [vmem:[%s4229_s26 + $0x20] sm:$0x1] }
  0x19   : > { %v767_v27 = vrot.slane %v4263_v21, 5  ;;  %v770_v28 = vrot.slane %v275_v22, 5  ;;  %v331_v29 = vshrl.u32 %v4258_v18, 16  ;;  %v334_v30 = vshll.u32 %v4258_v18, 16  ;;  %v4300_v7 = vld [vmem:[%s4229_s26 + $0x24] sm:$0xf] }
  0x1a   : > { %v778_v31 = vsel %vm4251_vm4, %v776_v25, %v777_v17  ;;  %v340_v32 = vshll.u32 %v4263_v21, 16  ;;  %v344_v33 = vshrl.u32 %v4263_v21, 16  ;;  %v350_v34 = vshll.u32 %v275_v22, 16 }
  0x1b   : > { %v3938_v36 = vcombine.low %v775_v24, %v778_v31  ;;  %v768_v37 = vsel %vm4251_vm4, %v3887_v26, %v767_v27  ;;  %v769_v38 = vrot.slane %v767_v27, 4  ;;  %v333_v39 = vrot.slane %v331_v29, 4  ;;  %v284_v26 = vld [vmem:[%s4229_s26 + $0x2c] sm:$0x1] }
  0x1c   : > { %v336_v40 = vrot.slane %v334_v30, 5  ;;  %v342_v41 = vrot.slane %v340_v32, 5  ;;  %v346_v42 = vrot.slane %v344_v33, 4  ;;  %v352_v43 = vrot.slane %v350_v34, 5  ;;  %v4148_v34 = vld [vmem:[%s7012_s2 + $0x8] sm:$0xff]  }
  0x1d   : > { %1226 = vrot.lane.b32.xlu0 %v3938_v36, %s4173_s28  ;;  %v771_v44 = vsel %vm4251_vm4, %v769_v38, %v770_v28  ;;  %v3889_v45 = vrot.slane %v4232_v0, 9  ;;  %v781_v46 = vrot.slane %v4235_v1, 5  ;;  %v784_v47 = vrot.slane %v281_v35, 5 }
  0x1e   : > { %v3937_v48 = vcombine.low %v768_v37, %v771_v44  ;;  %v337_v49 = vor.u32 %v336_v40, %v333_v39  ;;  %v347_v50 = vor.u32 %v346_v42, %v342_v41  ;;  %v361_v51 = vor.u32 %v360_v23, %v357_v20 }
  0x1f   : > { %v782_v53 = vsel %vm4251_vm4, %v3889_v45, %v781_v46  ;;  %v783_v54 = vrot.slane %v781_v46, 4  ;;  %v366_v55 = vrot.slane %v364_v8, 5  ;;  %v374_v56 = vshll.u32 %v278_v12, 16  ;;  %v4311_v12 = vld [vmem:[%s4229_s26 + $0x28] sm:$0xf] }
  0x20   : > { %1121 = vrot.lane.b32.xlu1 %v3937_v48, %s4174_s29  ;;  %v338_v57 = vrot.slane %v337_v49, 4  ;;  %v348_v58 = vrot.slane %v347_v50, 4  ;;  %v362_v59 = vrot.slane %v361_v51, 4  ;;  %v381_v60 = vrot.slane %v379_v5, 4  ;;  %v285_v49 = vld [vmem:[%s4229_s26 + $0x30] sm:$0xf] }
  0x21   : > { %v785_v61 = vsel %vm4251_vm4, %v783_v54, %v784_v47  ;;  %v371_v62 = vor.u32 %v370_v19, %v366_v55  ;;  %v376_v63 = vrot.slane %v374_v56, 5  ;;  %v384_v2 = vrot.slane %v382_v6, 5  ;;  %v286_v50 = vld [vmem:[%s4229_s26 + $0x34] sm:$0xf] }
  0x22   : > { %v343_v8 = vsel %vm4286_vm5, %v338_v57, %v342_v41  ;;  %v353_v9 = vsel %vm4286_vm5, %v348_v58, %v352_v43  ;;  %v4306_v11 = vcombine.low %v782_v53, %v785_v61  ;;  %v367_v5 = vsel %vm4286_vm5, %v362_v59, %v366_v55 }
  0x23   : > { %v3921_v14 = vcombine.low %v343_v8, %v353_v9  ;;  %v372_v15 = vrot.slane %v371_v62, 4  ;;  %v385_v0 = vor.u32 %v384_v2, %v381_v60  ;;  %v388_v6 = vshll.u32 %v4235_v1, 16  ;;  %v4146_v1 = vld [vmem:[%s7012_s2] sm:$0xff]   ;;  %v287_v62 = vld [vmem:[%s4229_s26 + $0x38] sm:$0x1] }
  0x24   : > { %1123 = vrot.lane.b32.xlu1 %v3938_v36, %s4174_s29  ;;  %v394_v16 = vrot.slane %v392_v3, 4  ;;  %v398_v17 = vshll.u32 %v281_v35, 16  ;;  %v403_v19 = vshrl.u32 %v4300_v7, 16  ;;  %v406_v20 = vshll.u32 %v4300_v7, 16  ;;  %4041 = vmatprep.subr.bf16.mxu0 %v4146_v1 }
  0x25   : > { %1041 = vrot.lane.b32.xlu0 %v3921_v14, %s4175_s30  ;;  %v377_v22 = vsel %vm4286_vm5, %v372_v15, %v376_v63  ;;  %v386_v23 = vrot.slane %v385_v0, 4  ;;  %v390_v24 = vrot.slane %v388_v6, 5  ;;  %v416_v25 = vshrl.u32 %v4311_v12, 16  ;;  %4042 = vmatpush3.bf16.msra.mxu0 %v4146_v1  ;;  %v4367_v15 = vld [vmem:[%s4229_s26 + $0x3c] sm:$0xf] }
  0x26   : > { %v3922_v3 = vcombine.low %v367_v5, %v377_v22  ;;  %v405_v27 = vrot.slane %v403_v19, 4  ;;  %v400_v29 = vrot.slane %v398_v17, 5  ;;  %v408_v30 = vrot.slane %v406_v20, 5  ;;  %4043 = vmatprep.subr.bf16.mxu0 %v4148_v34  ;;  %v289_v0 = vld [vmem:[%s4229_s26 + $0x40] sm:$0xf] }
  0x27   : > { %v395_v28 = vor.u32 %v394_v16, %v390_v24  ;;  %v412_v31 = vshll.u32 %v4311_v12, 16  ;;  %v418_v32 = vrot.slane %v416_v25, 4  ;;  %v422_v33 = vshll.u32 %v284_v26, 16 }
  0x28   : > { %1228 = vrot.lane.b32.xlu1 %v4306_v11, %s4173_s28  ;;  %v391_v35 = vsel %vm4286_vm5, %v386_v23, %v390_v24  ;;  %v409_v37 = vor.u32 %v408_v30, %v405_v27  ;;  %v4342_v45 = vcombine.low %v4300_v7, %v4311_v12  ;;  %v788_v46 = vrot.slane %v4311_v12, 5 }
  0x29   : > { %1043 = vrot.lane.b32.xlu0 %v3922_v3, %s4175_s30  ;;  %v396_v36 = vrot.slane %v395_v28, 4  ;;  %v414_v38 = vrot.slane %v412_v31, 5  ;;  %v424_v42 = vrot.slane %v422_v33, 5  ;;  %4044 = vmatpush3.bf16.msra.mxu0 %v4148_v34  ;;  %v3890_v53 = vrot.slane %v4300_v7, 9  ;;  %v290_v33 = vld [vmem:[%s4229_s26 + $0x44] sm:$0x1] }
  0x2a   : > { %v410_v40 = vrot.slane %v409_v37, 4  ;;  %v790_v54 = vrot.slane %v788_v46, 4  ;;  %v791_v55 = vrot.slane %v284_v26, 5  ;;  %v427_v56 = vshrl.u32 %v285_v49, 16 }
  0x2b   : > { %v401_v39 = vsel %vm4286_vm5, %v396_v36, %v400_v29  ;;  %v419_v41 = vor.u32 %v418_v32, %v414_v38  ;;  %v430_v57 = vshll.u32 %v285_v49, 16  ;;  %v440_v58 = vshrl.u32 %v286_v50, 16 }
  0x2c   : > { %v3923_v43 = vcombine.low %v391_v35, %v401_v39  ;;  %v415_v47 = vsel %vm4286_vm5, %v410_v40, %v414_v38  ;;  %v436_v59 = vshll.u32 %v286_v50, 16  ;;  %v789_v60 = vsel %vm4251_vm4, %v3890_v53, %v788_v46 }
  0x2d   : > { %1191 = vrot.lane.b32.xlu0 %v3922_v3, %s4176_s11  ;;  %v420_v44 = vrot.slane %v419_v41, 4  ;;  %v792_v61 = vsel %vm4251_vm4, %v790_v54, %v791_v55  ;;  %v429_v63 = vrot.slane %v427_v56, 4  ;;  %v432_v2 = vrot.slane %v430_v57, 5 }
  0x2e   : > { %1193 = vrot.lane.b32.xlu1 %v3923_v43, %s4176_s11  ;;  %v438_v7 = vrot.slane %v436_v59, 5  ;;  %v442_v8 = vrot.slane %v440_v58, 4  ;;  %v3940_v9 = vcombine.low %v789_v60, %v792_v61  ;;  %v446_v5 = vshll.u32 %v287_v62, 16  ;;  %v4149_v60 = vld [vmem:[%s7012_s2 + $0x10] ss:$0 sps:$4 sm:$0x33]  }
  0x2f   : > { %v425_v48 = vsel %vm4286_vm5, %v420_v44, %v424_v42  ;;  %v433_v12 = vor.u32 %v432_v2, %v429_v63  ;;  %v795_v16 = vrot.slane %v286_v50, 5  ;;  %v451_v17 = vshrl.u32 %v4367_v15, 16  ;;  %v293_v2 = vld [vmem:[%s4229_s26 + $0x50] sm:$0x1]  ;;  %4117 = vmatprep.subr.msk.bf16.mxu0 %vm1703_vm6, %v4149_v60 }
  0x30   : > { %v3924_v51 = vcombine.low %v415_v47, %v425_v48  ;;  %v443_v14 = vor.u32 %v442_v8, %v438_v7  ;;  %v448_v6 = vrot.slane %v446_v5, 5  ;;  %v454_v19 = vshll.u32 %v4367_v15, 16 }
  0x31   : > { %1261 = vrot.lane.b32.xlu0 %v4241_v4, %s4177_s12  ;;  %v434_v20 = vrot.slane %v433_v12, 4  ;;  %v464_v23 = vshrl.u32 %v289_v0, 16  ;;  %v460_v24 = vshll.u32 %v289_v0, 16  ;;  %v4376_v25 = vcombine.low %v285_v49, %v286_v50  ;;  %v292_v50 = vld [vmem:[%s4229_s26 + $0x4c] sm:$0xf] }
  0x32   : > { %1263 = vrot.lane.b32.xlu1 %v4342_v45, %s4177_s12  ;;  %v444_v22 = vrot.slane %v443_v14, 4  ;;  %v3891_v26 = vrot.slane %v285_v49, 9  ;;  %v797_v1 = vrot.slane %v795_v16, 4  ;;  %v798_v3 = vrot.slane %v287_v62, 5  ;;  %v291_v49 = vld [vmem:[%s4229_s26 + $0x48] sm:$0xf] }
  0x33   : > { %v453_v27 = vrot.slane %v451_v17, 4  ;;  %v456_v28 = vrot.slane %v454_v19, 5  ;;  %v439_v29 = vsel %vm4286_vm5, %v434_v20, %v438_v7  ;;  %v462_v31 = vrot.slane %v460_v24, 5 }
  0x34   : > { %v449_v30 = vsel %vm4286_vm5, %v444_v22, %v448_v6  ;;  %v466_v32 = vrot.slane %v464_v23, 4  ;;  %v796_v34 = vsel %vm4251_vm4, %v3891_v26, %v795_v16  ;;  %v799_v35 = vsel %vm4251_vm4, %v797_v1, %v798_v3  ;;  %v294_v6 = vld [vmem:[%s4229_s26 + $0x54] sm:$0xf]  ;;  %v295_v16 = vld [vmem:[%s4229_s26 + $0x58] sm:$0xf] }
  0x35   : > { %1296 = vrot.lane.b32.xlu0 %v3923_v43, %s4178_s13  ;;  %v457_v36 = vor.u32 %v456_v28, %v453_v27  ;;  %v470_v38 = vshll.u32 %v290_v33, 16  ;;  %v3941_v39 = vcombine.low %v796_v34, %v799_v35  ;;  %v802_v44 = vrot.slane %v289_v0, 5  ;;  %v296_v35 = vld [vmem:[%s4229_s26 + $0x5c] sm:$0x1] }
  0x36   : > { %1298 = vrot.lane.b32.xlu1 %v3924_v51, %s4178_s13  ;;  %v467_v37 = vor.u32 %v466_v32, %v462_v31  ;;  %v3905_v46 = vcombine.low %v4258_v18, %v4263_v21  ;;  %v805_v55 = vrot.slane %v290_v33, 5  ;;  %v475_v56 = vshrl.u32 %v291_v49, 16 }
  0x37   : > { %v458_v40 = vrot.slane %v457_v36, 4  ;;  %v472_v42 = vrot.slane %v470_v38, 5  ;;  %v804_v54 = vrot.slane %v802_v44, 4  ;;  %v478_v57 = vshll.u32 %v291_v49, 16 }
  0x38   : > { %v468_v41 = vrot.slane %v467_v37, 4  ;;  %v488_v58 = vshrl.u32 %v292_v50, 16  ;;  %v484_v59 = vshll.u32 %v292_v50, 16  ;;  %v477_v63 = vrot.slane %v475_v56, 4 }
  0x39   : > { %1331 = vrot.lane.b32.xlu0 %v4306_v11, %s4179_s14  ;;  %v463_v47 = vsel %vm4286_vm5, %v458_v40, %v462_v31  ;;  %v806_v62 = vsel %vm4251_vm4, %v804_v54, %v805_v55  ;;  %v480_v7 = vrot.slane %v478_v57, 5  ;;  %v1705_v12 = vsel %vm1703_vm6, %v4149_v60, 0  ;;  %v298_v55 = vld [vmem:[%s4229_s26 + $0x64] sm:$0xf] }
  0x3a   : > { %1045 = vrot.lane.b32.xlu1 %v3923_v43, %s4175_s30  ;;  %v4397_v43 = vcombine.low %v4367_v15, %v289_v0  ;;  %v473_v48 = vsel %vm4286_vm5, %v468_v41, %v472_v42  ;;  %v486_v8 = vrot.slane %v484_v59, 5  ;;  %v494_v14 = vshll.u32 %v293_v2, 16  ;;  %4046 = vmatpush3.bf16.msra.mxu0 %v1705_v12 }
  0x3b   : > { %v3926_v53 = vcombine.low %v463_v47, %v473_v48  ;;  %v809_v19 = vrot.slane %v292_v50, 5  ;;  %v499_v20 = vshrl.u32 %v294_v6, 16  ;;  %v502_v22 = vshll.u32 %v294_v6, 16 }
  0x3c   : > { %v496_v17 = vrot.slane %v494_v14, 5  ;;  %v512_v26 = vshrl.u32 %v295_v16, 16  ;;  %v508_v1 = vshll.u32 %v295_v16, 16  ;;  %v4431_v3 = vcombine.low %v291_v49, %v292_v50 }
  0x3d   : > { %1333 = vrot.lane.b32.xlu0 %v3940_v9, %s4179_s14  ;;  %v3893_v27 = vrot.slane %v291_v49, 9  ;;  %v811_v28 = vrot.slane %v809_v19, 4  ;;  %v504_v31 = vrot.slane %v502_v22, 5  ;;  %v518_v41 = vshll.u32 %v296_v35, 16 }
  0x3e   : > { %1047 = vrot.lane.b32.xlu1 %v3924_v51, %s4175_s30  ;;  %v514_v34 = vrot.slane %v512_v26, 4  ;;  %v4451_v49 = vcombine.low %v294_v6, %v295_v16  ;;  %v816_v50 = vrot.slane %v295_v16, 5  ;;  %v3894_v56 = vrot.slane %v294_v6, 9 }
  0x3f   : > { %v810_v37 = vsel %vm4251_vm4, %v3893_v27, %v809_v19  ;;  %v520_v48 = vrot.slane %v518_v41, 5  ;;  %v819_v57 = vrot.slane %v296_v35, 5  ;;  %v4476_v19 = vld [vmem:[%s4229_s26 + $0x70] sm:$0xf] }
  0x40   : > { %v818_v59 = vrot.slane %v816_v50, 4  ;;  %v560_v27 = vshrl.u32 %v4476_v19, 16 }
  0x41   : > { %1125 = vrot.lane.b32.xlu0 %v4306_v11, %s4174_s29  ;;  %v3925_v11 = vcombine.low %v439_v29, %v449_v30  ;;  %v812_v29 = vrot.slane %v293_v2, 5  ;;  %v501_v30 = vrot.slane %v499_v20, 4  ;;  %v817_v2 = vsel %vm4251_vm4, %v3894_v56, %v816_v50 }
  0x42   : > { %1127 = vrot.lane.b32.xlu1 %v3940_v9, %s4174_s29 }
  0x43   : > { %v813_v38 = vsel %vm4251_vm4, %v811_v28, %v812_v29  ;;  %v556_v28 = vshll.u32 %v4476_v19, 16 }
  0x44   : > { %v3943_v42 = vcombine.low %v810_v37, %v813_v38  ;;  %v562_v37 = vrot.slane %v560_v27, 4  ;;  %v302_v38 = vld [vmem:[%s4229_s26 + $0x74] sm:$0x1] }
  0x45   : > { %1160 = vrot.lane.b32.xlu0 %v4342_v45, %s4172_s27 }
  0x46   : > { %1162 = vrot.lane.b32.xlu1 %v4376_v25, %s4172_s27 }
  0x49   : > { %1195 = vrot.lane.b32.xlu0 %v3924_v51, %s4176_s11  ;;  %v3892_v51 = vrot.slane %v4367_v15, 9  ;;  %v481_v15 = vor.u32 %v480_v7, %v477_v63  ;;  %v532_v63 = vshll.u32 %v298_v55, 16  ;;  %v820_v7 = vsel %vm4251_vm4, %v818_v59, %v819_v57 }
  0x4a   : > { %1197 = vrot.lane.b32.xlu1 %v3925_v11, %s4176_s11  ;;  %v830_v57 = vrot.slane %v4476_v19, 5 }
  0x4b   : > { %v803_v61 = vsel %vm4251_vm4, %v3892_v51, %v802_v44  ;;  %v482_v23 = vrot.slane %v481_v15, 4  ;;  %v534_v12 = vrot.slane %v532_v63, 5  ;;  %v3944_v15 = vcombine.low %v817_v2, %v820_v7 }
  0x4c   : > { %v3942_v5 = vcombine.low %v803_v61, %v806_v62  ;;  %v536_v62 = vshrl.u32 %v298_v55, 16  ;;  %v833_v2 = vrot.slane %v302_v38, 5 }
  0x4d   : > { %1230 = vrot.lane.b32.xlu0 %v3940_v9, %s4173_s28  ;;  %v490_v9 = vrot.slane %v488_v58, 4  ;;  %v487_v32 = vsel %vm4286_vm5, %v482_v23, %v486_v8  ;;  %v823_v23 = vrot.slane %v298_v55, 5 }
  0x4e   : > { %1232 = vrot.lane.b32.xlu1 %v3941_v39, %s4173_s28  ;;  %v538_v14 = vrot.slane %v536_v62, 4 }
  0x4f   : > { %v491_v0 = vor.u32 %v490_v9, %v486_v8 }
  0x50   : > { %v539_v16 = vor.u32 %v538_v14, %v534_v12 }
  0x51   : > { %1265 = vrot.lane.b32.xlu0 %v4376_v25, %s4177_s12  ;;  %v492_v24 = vrot.slane %v491_v0, 4 }
  0x52   : > { %1267 = vrot.lane.b32.xlu1 %v4397_v43, %s4177_s12  ;;  %v540_v26 = vrot.slane %v539_v16, 4 }
  0x53   : > { %v497_v33 = vsel %vm4286_vm5, %v492_v24, %v496_v17  ;;  %v4473_v17 = vld [vmem:[%s4229_s26 + $0x6c] sm:$0xf] }
  0x54   : > { %v3927_v36 = vcombine.low %v487_v32, %v497_v33  ;;  %v547_v24 = vshrl.u32 %v4473_v17, 16  ;;  %v825_v32 = vrot.slane %v823_v23, 4  ;;  %v4514_v56 = vcombine.low %v4473_v17, %v4476_v19 }
  0x55   : > { %1300 = vrot.lane.b32.xlu0 %v3925_v11, %s4178_s13  ;;  %v3896_v63 = vrot.slane %v4473_v17, 9 }
  0x56   : > { %1302 = vrot.lane.b32.xlu1 %v3926_v53, %s4178_s13 }
  0x59   : > { %1335 = vrot.lane.b32.xlu0 %v3941_v39, %s4179_s14 }
  0x5a   : > { %1049 = vrot.lane.b32.xlu1 %v3925_v11, %s4175_s30  ;;  %v510_v11 = vrot.slane %v508_v1, 5  ;;  %v550_v1 = vshll.u32 %v4473_v17, 16 }
  0x5c   : > { %v515_v40 = vor.u32 %v514_v34, %v510_v11  ;;  %v552_v35 = vrot.slane %v550_v1, 5 }
  0x5d   : > { %1337 = vrot.lane.b32.xlu0 %v3942_v5, %s4179_s14 }
  0x5e   : > { %1051 = vrot.lane.b32.xlu1 %v3926_v53, %s4175_s30  ;;  %v516_v47 = vrot.slane %v515_v40, 4 }
  0x60   : > { %v521_v54 = vsel %vm4286_vm5, %v516_v47, %v520_v48  ;;  %v566_v47 = vshll.u32 %v302_v38, 16 }
  0x61   : > { %1129 = vrot.lane.b32.xlu0 %v3941_v39, %s4174_s29  ;;  %v505_v39 = vor.u32 %v504_v31, %v501_v30 }
  0x62   : > { %1131 = vrot.lane.b32.xlu1 %v3942_v5, %s4174_s29 }
  0x63   : > { %v506_v44 = vrot.slane %v505_v39, 4 }
  0x65   : > { %1164 = vrot.lane.b32.xlu0 %v4397_v43, %s4172_s27  ;;  %v511_v51 = vsel %vm4286_vm5, %v506_v44, %v510_v11  ;;  %v549_v11 = vrot.slane %v547_v24, 4 }
  0x66   : > { %1166 = vrot.lane.b32.xlu1 %v4431_v3, %s4172_s27  ;;  %v3928_v58 = vcombine.low %v511_v51, %v521_v54 }
  0x69   : > { %1199 = vrot.lane.b32.xlu0 %v3926_v53, %s4176_s11  ;;  %v297_v53 = vld [vmem:[%s4229_s26 + $0x60] sm:$0xf] }
  0x6a   : > { %1201 = vrot.lane.b32.xlu1 %v3927_v36, %s4176_s11  ;;  %v523_v60 = vshrl.u32 %v297_v53, 16  ;;  %v526_v61 = vshll.u32 %v297_v53, 16  ;;  %v4485_v29 = vcombine.low %v297_v53, %v298_v55  ;;  %v3895_v30 = vrot.slane %v297_v53, 9 }
  0x6b   : > { %v568_v53 = vrot.slane %v566_v47, 5 }
  0x6c   : > { %v525_v8 = vrot.slane %v523_v60, 4  ;;  %v528_v9 = vrot.slane %v526_v61, 5  ;;  %v824_v40 = vsel %vm4251_vm4, %v3895_v30, %v823_v23  ;;  %v4522_v60 = vld [vmem:[%s4229_s26 + $0x78] sm:$0xf]  ;;  %v4525_v61 = vld [vmem:[%s4229_s26 + $0x7c] sm:$0xf] }
  0x6d   : > { %1234 = vrot.lane.b32.xlu0 %v3942_v5, %s4173_s28  ;;  %v299_v5 = vld [vmem:[%s4229_s26 + $0x68] sm:$0x1]  ;;  %v584_v14 = vshrl.u32 %v4525_v61, 16  ;;  %v4580_v18 = vcombine.low %v4522_v60, %v4525_v61  ;;  %v3897_v21 = vrot.slane %v4522_v60, 9 }
  0x6e   : > { %1236 = vrot.lane.b32.xlu1 %v3943_v42, %s4173_s28  ;;  %v529_v0 = vor.u32 %v528_v9, %v525_v8  ;;  %v542_v6 = vshll.u32 %v299_v5, 16  ;;  %v826_v33 = vrot.slane %v299_v5, 5  ;;  %v832_v9 = vrot.slane %v830_v57, 4 }
  0x6f   : > { %v571_v5 = vshrl.u32 %v4522_v60, 16  ;;  %v586_v24 = vrot.slane %v584_v14, 4 }
  0x70   : > { %v530_v20 = vrot.slane %v529_v0, 4  ;;  %v544_v22 = vrot.slane %v542_v6, 5  ;;  %v827_v41 = vsel %vm4251_vm4, %v825_v32, %v826_v33  ;;  %v831_v6 = vsel %vm4251_vm4, %v3896_v63, %v830_v57  ;;  %v4556_v32 = vld [vmem:[%s4229_s26 + $0x84] sm:$0xf]  ;;  %v4559_v33 = vld [vmem:[%s4229_s26 + $0x88] sm:$0xf] }
  0x71   : > { %1269 = vrot.lane.b32.xlu0 %v4431_v3, %s4177_s12  ;;  %v4503_v48 = vcombine.low %v824_v40, %v827_v41  ;;  %v834_v16 = vsel %vm4251_vm4, %v832_v9, %v833_v2  ;;  %v573_v17 = vrot.slane %v571_v5, 4  ;;  %v608_v41 = vshrl.u32 %v4559_v33, 16  ;;  %v4592_v2 = vld [vmem:[%s4229_s26 + $0x8c] sm:$0x1] }
  0x72   : > { %1271 = vrot.lane.b32.xlu1 %v4451_v49, %s4177_s12  ;;  %v535_v31 = vsel %vm4286_vm5, %v530_v20, %v534_v12  ;;  %v545_v34 = vsel %vm4286_vm5, %v540_v26, %v544_v22  ;;  %v574_v12 = vshll.u32 %v4522_v60, 16  ;;  %v305_v22 = vld [vmem:[%s4229_s26 + $0x80] sm:$0x1]  ;;  %v4550_v26 = vcombine.low %v831_v6, %v834_v16 }
  0x73   : > { %v3929_v39 = vcombine.low %v535_v31, %v545_v34  ;;  %v614_v16 = vshll.u32 %v4592_v2, 16 }
  0x74   : > { %v576_v19 = vrot.slane %v574_v12, 5 }
  0x75   : > { %1304 = vrot.lane.b32.xlu0 %v3927_v36, %s4178_s13 }
  0x76   : > { %1306 = vrot.lane.b32.xlu1 %v3928_v58, %s4178_s13  ;;  %v577_v27 = vor.u32 %v576_v19, %v573_v17 }
  0x78   : > { %v578_v34 = vrot.slane %v577_v27, 4 }
  0x79   : > { %1339 = vrot.lane.b32.xlu0 %v3943_v42, %s4179_s14 }
  0x7a   : > { %1053 = vrot.lane.b32.xlu1 %v3927_v36, %s4175_s30  ;;  %v558_v36 = vrot.slane %v556_v28, 5  ;;  %v590_v28 = vshll.u32 %v305_v22, 16 }
  0x7c   : > { %v563_v44 = vor.u32 %v562_v37, %v558_v36  ;;  %v598_v37 = vshll.u32 %v4556_v32, 16 }
  0x7d   : > { %1341 = vrot.lane.b32.xlu0 %v3944_v15, %s4179_s14 }
  0x7e   : > { %1055 = vrot.lane.b32.xlu1 %v3928_v58, %s4175_s30  ;;  %v564_v54 = vrot.slane %v563_v44, 4 }
  0x80   : > { %v569_v59 = vsel %vm4286_vm5, %v564_v54, %v568_v53 }
  0x81   : > { %1133 = vrot.lane.b32.xlu0 %v3943_v42, %s4174_s29  ;;  %v553_v42 = vor.u32 %v552_v35, %v549_v11  ;;  %v837_v11 = vrot.slane %v4525_v61, 5  ;;  %v592_v35 = vrot.slane %v590_v28, 5  ;;  %v616_v28 = vrot.slane %v614_v16, 5 }
  0x82   : > { %1135 = vrot.lane.b32.xlu1 %v3944_v15, %s4174_s29 }
  0x83   : > { %v554_v51 = vrot.slane %v553_v42, 4  ;;  %v604_v42 = vshll.u32 %v4559_v33, 16  ;;  %v838_v12 = vsel %vm4251_vm4, %v3897_v21, %v837_v11 }
  0x85   : > { %1168 = vrot.lane.b32.xlu0 %v4451_v49, %s4172_s27 }
  0x86   : > { %1170 = vrot.lane.b32.xlu1 %v4485_v29, %s4172_s27 }
  0x88   : > { %v4507_v55 = vpop.permute.xlu1 %1158 }
  0x89   : > { %1203 = vrot.lane.b32.xlu0 %v3928_v58, %s4176_s11  ;;  %v4505_v50 = vpop.permute.xlu0 %1156  ;;  %v559_v58 = vsel %vm4286_vm5, %v554_v51, %v558_v36  ;;  %v595_v36 = vshrl.u32 %v4556_v32, 16 }
  0x8a   : > { %1205 = vrot.lane.b32.xlu1 %v3929_v39, %s4176_s11  ;;  %v4534_v8 = vcombine.low %v559_v58, %v569_v59  ;;  %v600_v58 = vrot.slane %v598_v37, 5  ;;  %v606_v59 = vrot.slane %v604_v42, 5  ;;  %v847_v42 = vrot.slane %v4592_v2, 5 }
  0x8b   : > { %v597_v53 = vrot.slane %v595_v36, 4 }
  0x8d   : > { %1238 = vrot.lane.b32.xlu0 %v3944_v15, %s4173_s28  ;;  %v580_v15 = vshll.u32 %v4525_v61, 16  ;;  %v610_v61 = vrot.slane %v608_v41, 4  ;;  %v4649_v41 = vld [vmem:[%s4229_s26 + $0x94] sm:$0xf] }
  0x8e   : > { %1240 = vrot.lane.b32.xlu1 %v4503_v48, %s4173_s28 }
  0x8f   : > { %v4529_v62 = vpop.permute.xlu0 %1226  ;;  %v582_v23 = vrot.slane %v580_v15, 5  ;;  %v611_v6 = vor.u32 %v610_v61, %v606_v59  ;;  %v311_v61 = vld [vmem:[%s4229_s26 + $0x98] sm:$0x1] }
  0x91   : > { %1273 = vrot.lane.b32.xlu0 %v4485_v29, %s4177_s12  ;;  %v587_v31 = vor.u32 %v586_v24, %v582_v23  ;;  %v583_v54 = vsel %vm4286_vm5, %v578_v34, %v582_v23  ;;  %v4634_v34 = vcombine.low %v4556_v32, %v4559_v33 }
  0x92   : > { %1275 = vrot.lane.b32.xlu1 %v4514_v56, %s4177_s12  ;;  %v1122_v7 = vpop.permute.xlu1 %1121 }
  0x93   : > { %v588_v40 = vrot.slane %v587_v31, 4 }
  0x95   : > { %1308 = vrot.lane.b32.xlu0 %v3929_v39, %s4178_s13 }
  0x96   : > { %1310 = vrot.lane.b32.xlu1 %v4534_v8, %s4178_s13  ;;  %v1124_v0 = vpop.permute.xlu1 %1123 }
  0x97   : > { %v1042_v20 = vpop.permute.xlu0 %1041 }
  0x98   : > { %v1366_v38 = vsel %vm1363_vm7, %v3905_v46, %v1042_v20  ;;  %v840_v46 = vrot.slane %v305_v22, 5 }
  0x99   : > { %1343 = vrot.lane.b32.xlu0 %v4503_v48, %s4179_s14  ;;  %v1414_v51 = vsel %vm1412_vm8, %v1366_v38, %v1122_v7  ;;  %v4643_v38 = vld [vmem:[%s4229_s26 + $0x90] sm:$0xf] }
  0x9a   : > { %1057 = vrot.lane.b32.xlu1 %v3929_v39, %s4175_s30  ;;  %v4553_v1 = vpop.permute.xlu1 %1228  ;;  %v1447_v7 = vsel %vm1445_vm9, %v1414_v51, %v4505_v50  ;;  %v619_v21 = vshrl.u32 %v4643_v38, 16 }
  0x9b   : > { %v1044_v30 = vpop.permute.xlu0 %1043 }
  0x9c   : > { %v1369_v47 = vsel %vm1363_vm7, %v4246_v10, %v1044_v30  ;;  %v839_v10 = vrot.slane %v837_v11, 4 }
  0x9d   : > { %1345 = vrot.lane.b32.xlu0 %v4550_v26, %s4179_s14  ;;  %v1416_v60 = vsel %vm1412_vm8, %v1369_v47, %v1124_v0  ;;  %v601_v0 = vor.u32 %v600_v58, %v597_v53 }
  0x9e   : > { %1059 = vrot.lane.b32.xlu1 %v4534_v8, %s4175_s30  ;;  %v841_v14 = vsel %vm4251_vm4, %v839_v10, %v840_v46  ;;  %v1449_v50 = vsel %vm1445_vm9, %v1416_v60, %v4507_v55  ;;  %v622_v46 = vshll.u32 %v4643_v38, 16  ;;  %v628_v10 = vshll.u32 %v4649_v41, 16 }
  0x9f   : > { %v1192_v39 = vpop.permute.xlu0 %1191  ;;  %v4618_v55 = vcombine.low %v838_v12, %v841_v14  ;;  %v602_v27 = vrot.slane %v601_v0, 4  ;;  %v638_v12 = vshll.u32 %v311_v61, 16 }
  0xa0   : > { %v1194_v44 = vpop.permute.xlu1 %1193  ;;  %v1480_v9 = vsel %vm1478_vm10, %v1447_v7, %v1192_v39  ;;  %v624_v58 = vrot.slane %v622_v46, 5  ;;  %v630_v60 = vrot.slane %v628_v10, 5 }
  0xa1   : > { %1137 = vrot.lane.b32.xlu0 %v4503_v48, %s4174_s29  ;;  %v593_v48 = vsel %vm4286_vm5, %v588_v40, %v592_v35  ;;  %v1513_v19 = vsel %vm1511_vm11, %v1480_v9, %v4529_v62  ;;  %v1482_v20 = vsel %vm1478_vm10, %v1449_v50, %v1194_v44  ;;  %v612_v62 = vrot.slane %v611_v6, 4  ;;  %v4685_v6 = vld [vmem:[%s4229_s26 + $0xa0] sm:$0xf] }
  0xa2   : > { %1139 = vrot.lane.b32.xlu1 %v4550_v26, %s4174_s29  ;;  %v4601_v5 = vcombine.low %v583_v54, %v593_v48  ;;  %v1515_v31 = vsel %vm1511_vm11, %v1482_v20, %v4553_v1  ;;  %v844_v35 = vrot.slane %v4559_v33, 5  ;;  %v607_v1 = vsel %vm4286_vm5, %v602_v27, %v606_v59 }
  0xa3   : > { %v1262_v57 = vpop.permute.xlu0 %1261  ;;  %v3898_v33 = vrot.slane %v4556_v32, 9  ;;  %v632_v54 = vshrl.u32 %v4649_v41, 16  ;;  %v621_v48 = vrot.slane %v619_v21, 4  ;;  %v652_v27 = vshll.u32 %v4685_v6, 16 }
  0xa4   : > { %v1264_v63 = vpop.permute.xlu1 %1263  ;;  %v1546_v22 = vsel %vm1544_vm12, %v1513_v19, %v1262_v57  ;;  %v846_v47 = vrot.slane %v844_v35, 4  ;;  %v851_v19 = vrot.slane %v4649_v41, 5 }
  0xa5   : > { %1172 = vrot.lane.b32.xlu0 %v4514_v56, %s4172_s27  ;;  %v1548_v11 = vsel %vm1544_vm12, %v1515_v31, %v1264_v63  ;;  %v845_v32 = vsel %vm4251_vm4, %v3898_v33, %v844_v35  ;;  %v634_v63 = vrot.slane %v632_v54, 4  ;;  %v625_v9 = vor.u32 %v624_v58, %v621_v48 }
  0xa6   : > { %1174 = vrot.lane.b32.xlu1 %v4580_v18, %s4172_s27  ;;  %v848_v57 = vsel %vm4251_vm4, %v846_v47, %v847_v42  ;;  %v854_v35 = vrot.slane %v311_v61, 5 }
  0xa7   : > { %v1297_v15 = vpop.permute.xlu0 %1296  ;;  %v4677_v7 = vcombine.low %v845_v32, %v848_v57  ;;  %v635_v50 = vor.u32 %v634_v63, %v630_v60  ;;  %v626_v16 = vrot.slane %v625_v9, 4 }
  0xa8   : > { %v1299_v17 = vpop.permute.xlu1 %1298  ;;  %v1579_v23 = vsel %vm1577_vm13, %v1546_v22, %v1297_v15  ;;  %v4682_v15 = vld [vmem:[%s4229_s26 + $0x9c] sm:$0xf] }
  0xa9   : > { %1207 = vrot.lane.b32.xlu0 %v4534_v8, %s4176_s11  ;;  %v1581_v36 = vsel %vm1577_vm13, %v1548_v11, %v1299_v17  ;;  %v640_v17 = vrot.slane %v638_v12, 5  ;;  %v636_v22 = vrot.slane %v635_v50, 4  ;;  %v631_v31 = vsel %vm4286_vm5, %v626_v16, %v630_v60 }
  0xaa   : > { %1209 = vrot.lane.b32.xlu1 %v4601_v5, %s4176_s11  ;;  %v853_v11 = vrot.slane %v851_v19, 4 }
  0xab   : > { %v1332_v24 = vpop.permute.xlu0 %1331 }
  0xac   : > { %v4621_v30 = vpop.permute.xlu1 %1045  ;;  %v1612_v8 = vsel %vm1610_vm14, %v1579_v23, %v1332_v24  ;;  %v646_v23 = vshll.u32 %v4682_v15, 16  ;;  %v656_v24 = vshrl.u32 %v4685_v6, 16 }
  0xad   : > { %1242 = vrot.lane.b32.xlu0 %v4550_v26, %s4173_s28  ;;  %4047 = vmatprep.mubr.msk.bf16.mxu0 %vm1670_vm15, %v1612_v8  ;;  %v617_v26 = vsel %vm4286_vm5, %v612_v62, %v616_v28  ;;  %v4700_v28 = vcombine.low %v4643_v38, %v4649_v41  ;;  %v3899_v8 = vrot.slane %v4643_v38, 9  ;;  %v1372_v38 = vsel %vm1363_vm7, %v4241_v4, %v4621_v30 }
  0xae   : > { %1244 = vrot.lane.b32.xlu1 %v4618_v55, %s4173_s28  ;;  %v4658_v44 = vcombine.low %v607_v1, %v617_v26  ;;  %v641_v1 = vsel %vm4286_vm5, %v636_v22, %v640_v17  ;;  %v648_v26 = vrot.slane %v646_v23, 5  ;;  %v658_v41 = vrot.slane %v656_v24, 4  ;;  %v4766_v22 = vld [vmem:[%s4229_s26 + $0xa8] sm:$0xf] }
  0xaf   : > { %v1334_v37 = vpop.permute.xlu0 %1333  ;;  %v4720_v47 = vcombine.low %v631_v31, %v641_v1  ;;  %v852_v21 = vsel %vm4251_vm4, %v3899_v8, %v851_v19  ;;  %v855_v4 = vsel %vm4251_vm4, %v853_v11, %v854_v35  ;;  %v858_v17 = vrot.slane %v4685_v6, 5 }
  0xb0   : > { %v4645_v39 = vpop.permute.xlu1 %1047  ;;  %v1614_v40 = vsel %vm1610_vm14, %v1581_v36, %v1334_v37  ;;  %v4740_v60 = vcombine.low %v852_v21, %v855_v4  ;;  %v667_v11 = vshrl.u32 %v4766_v22, 16  ;;  %v670_v35 = vshll.u32 %v4766_v22, 16 }
  0xb1   : > { %1277 = vrot.lane.b32.xlu0 %v4580_v18, %s4177_s12  ;;  %4048 = vmatmul.mubr.msk.bf16.vlgmr.msra.gmra.mrb[0].mxu0 %vm1670_vm15, %v1614_v40  ;;  %v654_v40 = vrot.slane %v652_v27, 5  ;;  %v1375_v48 = vsel %vm1363_vm7, %v4342_v45, %v4645_v39  ;;  %v4772_v27 = vld [vmem:[%s4229_s26 + $0xac] sm:$0xf]  ;;  %v860_v31 = vrot.slane %v858_v17, 4 }
  0xb2   : > { %1279 = vrot.lane.b32.xlu1 %v4634_v34, %s4177_s12  ;;  %v676_v1 = vshll.u32 %v4772_v27, 16 }
  0xb3   : > { %v1126_v51 = vpop.permute.xlu0 %1125  ;;  %v659_v32 = vor.u32 %v658_v41, %v654_v40  ;;  %v672_v41 = vrot.slane %v670_v35, 5 }
  0xb4   : > { %v4664_v53 = vpop.permute.xlu1 %1127  ;;  %v1418_v42 = vsel %vm1412_vm8, %v1372_v38, %v1126_v51  ;;  %v317_v38 = vld [vmem:[%s4229_s26 + $0xb0] sm:$0x1] }
  0xb5   : > { %1312 = vrot.lane.b32.xlu0 %v4601_v5, %s4178_s13  ;;  %v686_v4 = vshll.u32 %v317_v38, 16 }
  0xb6   : > { %1314 = vrot.lane.b32.xlu1 %v4658_v44, %s4178_s13 }
  0xb7   : > { %v1161_v59 = vpop.permute.xlu0 %1160 }
  0xb8   : > { %v1163_v2 = vpop.permute.xlu1 %1162  ;;  %v1451_v54 = vsel %vm1445_vm9, %v1418_v42, %v1161_v59  ;;  %v1420_v59 = vsel %vm1412_vm8, %v1375_v48, %v4664_v53  ;;  %v678_v42 = vrot.slane %v676_v1, 5  ;;  %v4808_v48 = vld [vmem:[%s4229_s26 + $0xb8] sm:$0xf] }
  0xb9   : > { %1347 = vrot.lane.b32.xlu0 %v4618_v55, %s4179_s14  ;;  %v1453_v9 = vsel %vm1445_vm9, %v1420_v59, %v1163_v2  ;;  %v688_v59 = vrot.slane %v686_v4, 5 }
  0xba   : > { %1061 = vrot.lane.b32.xlu1 %v4601_v5, %s4175_s30  ;;  %v643_v5 = vshrl.u32 %v4682_v15, 16 }
  0xbb   : > { %v1196_v14 = vpop.permute.xlu0 %1195 }
  0xbc   : > { %v1198_v0 = vpop.permute.xlu1 %1197  ;;  %v645_v36 = vrot.slane %v643_v5, 4  ;;  %v1484_v51 = vsel %vm1478_vm10, %v1451_v54, %v1196_v14  ;;  %v660_v14 = vrot.slane %v659_v32, 4 }
  0xbd   : > { %1349 = vrot.lane.b32.xlu0 %v4677_v7, %s4179_s14 }
  0xbe   : > { %1063 = vrot.lane.b32.xlu1 %v4658_v44, %s4175_s30  ;;  %v649_v30 = vor.u32 %v648_v26, %v645_v36 }
  0xbf   : > { %v1231_v20 = vpop.permute.xlu0 %1230 }
  0xc0   : > { %v1233_v62 = vpop.permute.xlu1 %1232  ;;  %v1517_v58 = vsel %vm1511_vm11, %v1484_v51, %v1231_v20  ;;  %v650_v12 = vrot.slane %v649_v30, 4  ;;  %v4805_v51 = vld [vmem:[%s4229_s26 + $0xb4] sm:$0xf] }
  0xc1   : > { %1141 = vrot.lane.b32.xlu0 %v4618_v55, %s4174_s29  ;;  %v4710_v55 = vld [vmem:[%s4229_s26 + $0xa4] sm:$0x1] }
  0xc2   : > { %1143 = vrot.lane.b32.xlu1 %v4677_v7, %s4174_s29  ;;  %v662_v46 = vshll.u32 %v4710_v55, 16  ;;  %v655_v20 = vsel %vm4286_vm5, %v650_v12, %v654_v40  ;;  %v669_v40 = vrot.slane %v667_v11, 4  ;;  %v700_v12 = vshll.u32 %v4808_v48, 16 }
  0xc3   : > { %v1266_v37 = vpop.permute.xlu0 %1265 }
  0xc4   : > { %v1268_v33 = vpop.permute.xlu1 %1267  ;;  %v1550_v61 = vsel %vm1544_vm12, %v1517_v58, %v1266_v37  ;;  %v664_v63 = vrot.slane %v662_v46, 5  ;;  %v680_v37 = vshrl.u32 %v4772_v27, 16 }
  0xc5   : > { %1176 = vrot.lane.b32.xlu0 %v4634_v34, %s4172_s27 }
  0xc6   : > { %1178 = vrot.lane.b32.xlu1 %v4700_v28, %s4172_s27  ;;  %v682_v21 = vrot.slane %v680_v37, 4 }
  0xc7   : > { %v1301_v10 = vpop.permute.xlu0 %1300 }
  0xc8   : > { %v1303_v57 = vpop.permute.xlu1 %1302  ;;  %v1583_v45 = vsel %vm1577_vm13, %v1550_v61, %v1301_v10  ;;  %v673_v10 = vor.u32 %v672_v41, %v669_v40  ;;  %v683_v32 = vor.u32 %v682_v21, %v678_v42  ;;  %v865_v61 = vrot.slane %v4772_v27, 5 }
  0xc9   : > { %1211 = vrot.lane.b32.xlu0 %v4658_v44, %s4176_s11  ;;  %v1486_v44 = vsel %vm1478_vm10, %v1453_v9, %v1198_v0  ;;  %v4757_v0 = vcombine.low %v4682_v15, %v4685_v6  ;;  %v3900_v6 = vrot.slane %v4682_v15, 9 }
  0xca   : > { %1213 = vrot.lane.b32.xlu1 %v4720_v47, %s4176_s11  ;;  %v1519_v16 = vsel %vm1511_vm11, %v1486_v44, %v1233_v62  ;;  %v861_v62 = vrot.slane %v4710_v55, 5  ;;  %v674_v58 = vrot.slane %v673_v10, 4  ;;  %v684_v9 = vrot.slane %v683_v32, 4 }
  0xcb   : > { %v1336_v39 = vpop.permute.xlu0 %1335  ;;  %v1552_v2 = vsel %vm1544_vm12, %v1519_v16, %v1268_v33  ;;  %v859_v15 = vsel %vm4251_vm4, %v3900_v6, %v858_v17  ;;  %v4823_v44 = vcombine.low %v4766_v22, %v4772_v27  ;;  %v868_v17 = vrot.slane %v317_v38, 5 }
  0xcc   : > { %v4745_v50 = vpop.permute.xlu1 %1049  ;;  %v1616_v53 = vsel %vm1610_vm14, %v1583_v45, %v1336_v39  ;;  %v1585_v19 = vsel %vm1577_vm13, %v1552_v2, %v1303_v57  ;;  %v862_v55 = vsel %vm4251_vm4, %v860_v31, %v861_v62  ;;  %v694_v45 = vshll.u32 %v4805_v51, 16 }
  0xcd   : > { %1246 = vrot.lane.b32.xlu0 %v4677_v7, %s4173_s28  ;;  %4051 = vmatprep.mubr.msk.bf16.mxu0 %vm1670_vm15, %v1616_v53  ;;  %v665_v7 = vsel %vm4286_vm5, %v660_v14, %v664_v63  ;;  %v4800_v54 = vcombine.low %v859_v15, %v862_v55  ;;  %v704_v39 = vshrl.u32 %v4808_v48, 16  ;;  %v3901_v53 = vrot.slane %v4766_v22, 9 }
  0xce   : > { %1248 = vrot.lane.b32.xlu1 %v4740_v60, %s4173_s28  ;;  %v4781_v8 = vcombine.low %v655_v20, %v665_v7  ;;  %v679_v16 = vsel %vm4286_vm5, %v674_v58, %v678_v42  ;;  %v867_v2 = vrot.slane %v865_v61, 4  ;;  %v689_v20 = vsel %vm4286_vm5, %v684_v9, %v688_v59 }
  0xcf   : > { %v1338_v5 = vpop.permute.xlu0 %1337  ;;  %v696_v7 = vrot.slane %v694_v45, 5  ;;  %v706_v27 = vrot.slane %v704_v39, 4  ;;  %v1378_v22 = vsel %vm1363_vm7, %v4376_v25, %v4745_v50  ;;  %v4843_v31 = vcombine.low %v679_v16, %v689_v20 }
  0xd0   : > { %v4768_v23 = vpop.permute.xlu1 %1051  ;;  %v1618_v24 = vsel %vm1610_vm14, %v1585_v19, %v1338_v5  ;;  %v866_v11 = vsel %vm4251_vm4, %v3901_v53, %v865_v61  ;;  %v869_v25 = vsel %vm4251_vm4, %v867_v2, %v868_v17  ;;  %v872_v61 = vrot.slane %v4808_v48, 5 }
  0xd1   : > { %1281 = vrot.lane.b32.xlu0 %v4700_v28, %s4177_s12  ;;  %4052 = vmatmul.mubr.msk.bf16.gmra.mrb[4].mxu0 %vm1670_vm15, %v1618_v24  ;;  %v702_v24 = vrot.slane %v700_v12, 5  ;;  %v1381_v40 = vsel %vm1363_vm7, %v4397_v43, %v4768_v23  ;;  %v4863_v42 = vcombine.low %v866_v11, %v869_v25  ;;  %v3902_v17 = vrot.slane %v4805_v51, 9 }
  0xd2   : > { %1283 = vrot.lane.b32.xlu1 %v4757_v0, %s4177_s12 }
  0xd3   : > { %v1130_v36 = vpop.permute.xlu0 %1129  ;;  %v707_v15 = vor.u32 %v706_v27, %v702_v24 }
  0xd4   : > { %v4787_v26 = vpop.permute.xlu1 %1131  ;;  %v1422_v62 = vsel %vm1412_vm8, %v1378_v22, %v1130_v36 }
  0xd5   : > { %1316 = vrot.lane.b32.xlu0 %v4720_v47, %s4178_s13 }
  0xd6   : > { %1318 = vrot.lane.b32.xlu1 %v4781_v8, %s4178_s13 }
  0xd7   : > { %v1165_v33 = vpop.permute.xlu0 %1164 }
  0xd8   : > { %v1167_v46 = vpop.permute.xlu1 %1166  ;;  %v1455_v37 = vsel %vm1445_vm9, %v1422_v62, %v1165_v33  ;;  %v1424_v33 = vsel %vm1412_vm8, %v1381_v40, %v4787_v26  ;;  %v323_v62 = vld [vmem:[%s4229_s26 + $0xc8] sm:$0x1] }
  0xd9   : > { %1351 = vrot.lane.b32.xlu0 %v4740_v60, %s4179_s14  ;;  %v1457_v10 = vsel %vm1445_vm9, %v1424_v33, %v1167_v46  ;;  %v4876_v46 = vld [vmem:[%s4229_s26 + $0xc0] sm:$0xf] }
  0xda   : > { %1065 = vrot.lane.b32.xlu1 %v4720_v47, %s4175_s30  ;;  %v691_v47 = vshrl.u32 %v4805_v51, 16  ;;  %v881_v53 = vshll.u32 %v4876_v46, 16 }
  0xdb   : > { %v1200_v30 = vpop.permute.xlu0 %1199 }
  0xdc   : > { %v1202_v57 = vpop.permute.xlu1 %1201  ;;  %v693_v19 = vrot.slane %v691_v47, 4  ;;  %v1488_v36 = vsel %vm1478_vm10, %v1455_v37, %v1200_v30  ;;  %v4887_v47 = vld [vmem:[%s4229_s26 + $0xc4] sm:$0xf]  ;;  %v883_v27 = vrot.slane %v881_v53, 5 }
  0xdd   : > { %1353 = vrot.lane.b32.xlu0 %v4800_v54, %s4179_s14  ;;  %v1490_v30 = vsel %vm1478_vm10, %v1457_v10, %v1202_v57  ;;  %v4883_v57 = vcombine.low %v4805_v51, %v4808_v48  ;;  %v891_v48 = vshrl.u32 %v4887_v47, 16  ;;  %v887_v16 = vshll.u32 %v4887_v47, 16 }
  0xde   : > { %1067 = vrot.lane.b32.xlu1 %v4781_v8, %s4175_s30  ;;  %v697_v50 = vor.u32 %v696_v7, %v693_v19  ;;  %v874_v19 = vrot.slane %v872_v61, 4  ;;  %v873_v51 = vsel %vm4251_vm4, %v3902_v17, %v872_v61 }
  0xdf   : > { %v1235_v63 = vpop.permute.xlu0 %1234  ;;  %v893_v22 = vrot.slane %v891_v48, 4 }
  0xe0   : > { %v1237_v14 = vpop.permute.xlu1 %1236  ;;  %v1521_v41 = vsel %vm1511_vm11, %v1488_v36, %v1235_v63  ;;  %v698_v4 = vrot.slane %v697_v50, 4  ;;  %v897_v50 = vshll.u32 %v323_v62, 16 }
  0xe1   : > { %1145 = vrot.lane.b32.xlu0 %v4740_v60, %s4174_s29  ;;  %v4833_v60 = vld [vmem:[%s4229_s26 + $0xbc] sm:$0x1]  ;;  %v1523_v58 = vsel %vm1511_vm11, %v1490_v30, %v1237_v14  ;;  %v878_v14 = vshrl.u32 %v4876_v46, 16  ;;  %v3953_v30 = vcombine.low %v4876_v46, %v4887_v47 }
  0xe2   : > { %1147 = vrot.lane.b32.xlu1 %v4800_v54, %s4174_s29  ;;  %v710_v35 = vshll.u32 %v4833_v60, 16  ;;  %v703_v9 = vsel %vm4286_vm5, %v698_v4, %v702_v24 }
  0xe3   : > { %v1270_v5 = vpop.permute.xlu0 %1269  ;;  %v880_v24 = vrot.slane %v878_v14, 4  ;;  %v326_v14 = vld [vmem:[%s4229_s26 + $0xd4] sm:$0x1] }
  0xe4   : > { %v1272_v6 = vpop.permute.xlu1 %1271  ;;  %v1554_v38 = vsel %vm1544_vm12, %v1521_v41, %v1270_v5  ;;  %v712_v21 = vrot.slane %v710_v35, 5  ;;  %v875_v5 = vrot.slane %v4833_v60, 5 }
  0xe5   : > { %1180 = vrot.lane.b32.xlu0 %v4757_v0, %s4172_s27  ;;  %v1556_v59 = vsel %vm1544_vm12, %v1523_v58, %v1272_v6  ;;  %v889_v6 = vrot.slane %v887_v16, 5  ;;  %v884_v37 = vor.u32 %v883_v27, %v880_v24  ;;  %v931_v24 = vshll.u32 %v326_v14, 16 }
  0xe6   : > { %1182 = vrot.lane.b32.xlu1 %v4823_v44, %s4172_s27  ;;  %v876_v60 = vsel %vm4251_vm4, %v874_v19, %v875_v5 }
  0xe7   : > { %v1305_v1 = vpop.permute.xlu0 %1304  ;;  %v894_v25 = vor.u32 %v893_v22, %v889_v6  ;;  %v885_v41 = vrot.slane %v884_v37, 4 }
  0xe8   : > { %v1307_v55 = vpop.permute.xlu1 %1306  ;;  %v1587_v43 = vsel %vm1577_vm13, %v1554_v38, %v1305_v1  ;;  %v4925_v1 = vcombine.low %v873_v51, %v876_v60  ;;  %v899_v38 = vrot.slane %v897_v50, 5 }
  0xe9   : > { %1215 = vrot.lane.b32.xlu0 %v4781_v8, %s4176_s11  ;;  %v708_v8 = vrot.slane %v707_v15, 4  ;;  %v1589_v63 = vsel %vm1577_vm13, %v1556_v59, %v1307_v55  ;;  %v4930_v15 = vld [vmem:[%s4229_s26 + $0xcc] sm:$0xf]  ;;  %v4933_v55 = vld [vmem:[%s4229_s26 + $0xd0] sm:$0xf]  ;;  %v895_v33 = vrot.slane %v894_v25, 4 }
  0xea   : > { %1217 = vrot.lane.b32.xlu1 %v4843_v31, %s4176_s11  ;;  %v915_v10 = vshll.u32 %v4930_v15, 16  ;;  %v3903_v59 = vrot.slane %v4876_v46, 9  ;;  %v933_v25 = vrot.slane %v931_v24, 5 }
  0xeb   : > { %v1340_v23 = vpop.permute.xlu0 %1339  ;;  %v713_v45 = vsel %vm4286_vm5, %v708_v8, %v712_v21  ;;  %v912_v21 = vshrl.u32 %v4930_v15, 16  ;;  %v900_v58 = vsel %vm4286_vm5, %v895_v33, %v899_v38 }
  0xec   : > { %v4868_v26 = vpop.permute.xlu1 %1053  ;;  %v1620_v32 = vsel %vm1610_vm14, %v1587_v43, %v1340_v23  ;;  %v4906_v2 = vcombine.low %v703_v9, %v713_v45  ;;  %v925_v43 = vshrl.u32 %v4933_v55, 16  ;;  %v921_v23 = vshll.u32 %v4933_v55, 16 }
  0xed   : > { %1250 = vrot.lane.b32.xlu0 %v4800_v54, %s4173_s28  ;;  %4055 = vmatprep.mubr.msk.bf16.mxu0 %vm1670_vm15, %v1620_v32  ;;  %v890_v32 = vsel %vm4286_vm5, %v885_v41, %v889_v6  ;;  %v914_v61 = vrot.slane %v912_v21, 4  ;;  %v909_v9 = vrot.slane %v323_v62, 5 }
  0xee   : > { %1252 = vrot.lane.b32.xlu1 %v4863_v42, %s4173_s28  ;;  %v923_v45 = vrot.slane %v921_v23, 5  ;;  %v3954_v46 = vcombine.low %v890_v32, %v900_v58  ;;  %v943_v23 = vrot.slane %v326_v14, 5 }
  0xef   : > { %v1342_v54 = vpop.permute.xlu0 %1341 }
  0xf0   : > { %v4894_v39 = vpop.permute.xlu1 %1055  ;;  %v1622_v12 = vsel %vm1610_vm14, %v1589_v63, %v1342_v54  ;;  %v917_v63 = vrot.slane %v915_v10, 5 }
  0xf1   : > { %1285 = vrot.lane.b32.xlu0 %v4823_v44, %s4177_s12  ;;  %4056 = vmatmul.mubr.msk.bf16.gmra.mrb[8].mxu0 %vm1670_vm15, %v1622_v12  ;;  %v1387_v22 = vsel %vm1363_vm7, %v4451_v49, %v4894_v39 }
  0xf2   : > { %1287 = vrot.lane.b32.xlu1 %v4883_v57, %s4177_s12  ;;  %v918_v16 = vor.u32 %v917_v63, %v914_v61 }
  0xf3   : > { %v1134_v20 = vpop.permute.xlu0 %1133 }
  0xf4   : > { %v4910_v7 = vpop.permute.xlu1 %1135  ;;  %v919_v60 = vrot.slane %v918_v16, 4 }
  0xf5   : > { %1320 = vrot.lane.b32.xlu0 %v4843_v31, %s4178_s13  ;;  %v1428_v62 = vsel %vm1412_vm8, %v1387_v22, %v4910_v7 }
  0xf6   : > { %1322 = vrot.lane.b32.xlu1 %v4906_v2, %s4178_s13 }
  0xf7   : > { %v1169_v11 = vpop.permute.xlu0 %1168 }
  0xf8   : > { %v4921_v35 = vpop.permute.xlu1 %1170 }
  0xf9   : > { %1355 = vrot.lane.b32.xlu0 %v4863_v42, %s4179_s14  ;;  %v1461_v50 = vsel %vm1445_vm9, %v1428_v62, %v4921_v35  ;;  %v3956_v35 = vcombine.low %v4930_v15, %v4933_v55 }
  0xfa   : > { %1069 = vrot.lane.b32.xlu1 %v4843_v31, %s4175_s30  ;;  %v906_v31 = vrot.slane %v4887_v47, 5  ;;  %v927_v47 = vrot.slane %v925_v43, 4 }
  0xfb   : > { %v1204_v36 = vpop.permute.xlu0 %1203 }
  0xfc   : > { %v1206_v40 = vpop.permute.xlu1 %1205  ;;  %v908_v54 = vrot.slane %v906_v31, 4  ;;  %v907_v48 = vsel %vm4251_vm4, %v3903_v59, %v906_v31  ;;  %v928_v5 = vor.u32 %v927_v47, %v923_v45 }
  0xfd   : > { %1357 = vrot.lane.b32.xlu0 %v4925_v1, %s4179_s14 }
  0xfe   : > { %1071 = vrot.lane.b32.xlu1 %v4906_v2, %s4175_s30  ;;  %v910_v19 = vsel %vm4251_vm4, %v908_v54, %v909_v9  ;;  %v929_v37 = vrot.slane %v928_v5, 4 }
  0xff   : > { %v1239_v4 = vpop.permute.xlu0 %1238 }
 0x100   : > { %v1241_v8 = vpop.permute.xlu1 %1240  ;;  %v934_v21 = vsel %vm4286_vm5, %v929_v37, %v933_v25 }
 0x101   : > { %1149 = vrot.lane.b32.xlu0 %v4863_v42, %s4174_s29  ;;  %v1384_v42 = vsel %vm1363_vm7, %v4431_v3, %v4868_v26 }
 0x102   : > { %1151 = vrot.lane.b32.xlu1 %v4925_v1, %s4174_s29  ;;  %v1426_v17 = vsel %vm1412_vm8, %v1384_v42, %v1134_v20  ;;  %v3955_v20 = vcombine.low %v907_v48, %v910_v19 }
 0x103   : > { %v1274_v12 = vpop.permute.xlu0 %1273  ;;  %v1459_v27 = vsel %vm1445_vm9, %v1426_v17, %v1169_v11 }
 0x104   : > { %v1276_v53 = vpop.permute.xlu1 %1275  ;;  %v1492_v26 = vsel %vm1478_vm10, %v1459_v27, %v1204_v36  ;;  %v940_v36 = vrot.slane %v4933_v55, 5 }
 0x105   : > { %1184 = vrot.lane.b32.xlu0 %v4883_v57, %s4172_s27  ;;  %v1525_v51 = vsel %vm1511_vm11, %v1492_v26, %v1239_v4 }
 0x106   : > { %1186 = vrot.lane.b32.xlu1 %v3953_v30, %s4172_s27  ;;  %v1558_v11 = vsel %vm1544_vm12, %v1525_v51, %v1274_v12  ;;  %v942_v43 = vrot.slane %v940_v36, 4 }
 0x107   : > { %v1309_v3 = vpop.permute.xlu0 %1308 }
 0x108   : > { %v1311_v6 = vpop.permute.xlu1 %1310  ;;  %v1591_v49 = vsel %vm1577_vm13, %v1558_v11, %v1309_v3  ;;  %v944_v58 = vsel %vm4251_vm4, %v942_v43, %v943_v23 }
 0x109   : > { %1219 = vrot.lane.b32.xlu0 %v4906_v2, %s4176_s11  ;;  %v1494_v2 = vsel %vm1478_vm10, %v1461_v50, %v1206_v40  ;;  %v924_v40 = vsel %vm4286_vm5, %v919_v60, %v923_v45 }
 0x10a   : > { %1221 = vrot.lane.b32.xlu1 %v3954_v46, %s4176_s11  ;;  %v1527_v7 = vsel %vm1511_vm11, %v1494_v2, %v1241_v8  ;;  %v3957_v55 = vcombine.low %v924_v40, %v934_v21 }
 0x10b   : > { %v1344_v39 = vpop.permute.xlu0 %1343  ;;  %v1560_v38 = vsel %vm1544_vm12, %v1527_v7, %v1276_v53 }
 0x10c   : > { %v1058_v41 = vpop.permute.xlu1 %1057  ;;  %v1624_v33 = vsel %vm1610_vm14, %v1591_v49, %v1344_v39  ;;  %v1593_v10 = vsel %vm1577_vm13, %v1560_v38, %v1311_v6 }
 0x10d   : > { %1254 = vrot.lane.b32.xlu0 %v4925_v1, %s4173_s28  ;;  %4059 = vmatprep.mubr.msk.bf16.mxu0 %vm1670_vm15, %v1624_v33  ;;  %v3904_v1 = vrot.slane %v4930_v15, 9  ;;  %v1390_v13 = vsel %vm1363_vm7, %v4485_v29, %v1058_v41 }
 0x10e   : > { %1256 = vrot.lane.b32.xlu1 %v3955_v20, %s4173_s28 }
 0x10f   : > { %v1346_v31 = vpop.permute.xlu0 %1345  ;;  %v941_v52 = vsel %vm4251_vm4, %v3904_v1, %v940_v36 }
 0x110   : > { %v1060_v4 = vpop.permute.xlu1 %1059  ;;  %v1626_v8 = vsel %vm1610_vm14, %v1593_v10, %v1346_v31  ;;  %v3958_v59 = vcombine.low %v941_v52, %v944_v58 }
 0x111   : > { %1289 = vrot.lane.b32.xlu0 %v3953_v30, %s4177_s12  ;;  %4060 = vmatmul.mubr.msk.bf16.gmra.mrb[12].mxu0 %vm1670_vm15, %v1626_v8  ;;  %v1393_v16 = vsel %vm1363_vm7, %v4514_v56, %v1060_v4 }
 0x112   : > { %1291 = vrot.lane.b32.xlu1 %v3956_v35, %s4177_s12 }
 0x113   : > { %v1138_v32 = vpop.permute.xlu0 %1137 }
 0x114   : > { %v1140_v15 = vpop.permute.xlu1 %1139  ;;  %v1430_v14 = vsel %vm1412_vm8, %v1390_v13, %v1138_v32 }
 0x115   : > { %1324 = vrot.lane.b32.xlu0 %v3954_v46, %s4178_s13  ;;  %v1432_v19 = vsel %vm1412_vm8, %v1393_v16, %v1140_v15 }
 0x116   : > { %1326 = vrot.lane.b32.xlu1 %v3957_v55, %s4178_s13 }
 0x117   : > { %v1173_v61 = vpop.permute.xlu0 %1172 }
 0x118   : > { %v1175_v30 = vpop.permute.xlu1 %1174  ;;  %v1463_v53 = vsel %vm1445_vm9, %v1430_v14, %v1173_v61 }
 0x119   : > { %1359 = vrot.lane.b32.xlu0 %v3955_v20, %s4179_s14  ;;  %v1465_v24 = vsel %vm1445_vm9, %v1432_v19, %v1175_v30 }
 0x11a   : > { %1361 = vrot.lane.b32.xlu1 %v3958_v59, %s4179_s14 }
 0x11b   : > { %v1208_v63 = vpop.permute.xlu0 %1207 }
 0x11c   : > { %v1210_v54 = vpop.permute.xlu1 %1209  ;;  %v1496_v46 = vsel %vm1478_vm10, %v1463_v53, %v1208_v63 }
 0x11d   : > { %v1498_v3 = vsel %vm1478_vm10, %v1465_v24, %v1210_v54 }
 0x11f   : > { %v1243_v9 = vpop.permute.xlu0 %1242 }
 0x120   : > { %v1245_v45 = vpop.permute.xlu1 %1244  ;;  %v1529_v17 = vsel %vm1511_vm11, %v1496_v46, %v1243_v9 }
 0x121   : > { %v1531_v22 = vsel %vm1511_vm11, %v1498_v3, %v1245_v45 }
 0x123   : > { %v1278_v47 = vpop.permute.xlu0 %1277 }
 0x124   : > { %v1280_v12 = vpop.permute.xlu1 %1279  ;;  %v1562_v5 = vsel %vm1544_vm12, %v1529_v17, %v1278_v47 }
 0x125   : > { %v1564_v56 = vsel %vm1544_vm12, %v1531_v22, %v1280_v12 }
 0x127   : > { %v1313_v42 = vpop.permute.xlu0 %1312 }
 0x128   : > { %v1315_v48 = vpop.permute.xlu1 %1314  ;;  %v1595_v29 = vsel %vm1577_vm13, %v1562_v5, %v1313_v42 }
 0x129   : > { %v1597_v51 = vsel %vm1577_vm13, %v1564_v56, %v1315_v48 }
 0x12b   : > { %v1348_v27 = vpop.permute.xlu0 %1347 }
 0x12c   : > { %v1062_v26 = vpop.permute.xlu1 %1061  ;;  %v1628_v6 = vsel %vm1610_vm14, %v1595_v29, %v1348_v27 }
 0x12d   : > { %4063 = vmatprep.mubr.msk.bf16.mxu0 %vm1670_vm15, %v1628_v6  ;;  %v1396_v7 = vsel %vm1363_vm7, %v4580_v18, %v1062_v26 }
 0x12f   : > { %v1350_v20 = vpop.permute.xlu0 %1349 }
 0x130   : > { %v1064_v60 = vpop.permute.xlu1 %1063  ;;  %v1630_v62 = vsel %vm1610_vm14, %v1597_v51, %v1350_v20 }
 0x131   : > { %4064 = vmatmul.mubr.msk.bf16.gmra.mrb[16].mxu0 %vm1670_vm15, %v1630_v62  ;;  %v1399_v31 = vsel %vm1363_vm7, %v4634_v34, %v1064_v60 }
 0x133   : > { %v1142_v11 = vpop.permute.xlu0 %1141 }
 0x134   : > { %v1144_v37 = vpop.permute.xlu1 %1143  ;;  %v1434_v38 = vsel %vm1412_vm8, %v1396_v7, %v1142_v11 }
 0x135   : > { %v1436_v43 = vsel %vm1412_vm8, %v1399_v31, %v1144_v37 }
 0x137   : > { %v1177_v25 = vpop.permute.xlu0 %1176 }
 0x138   : > { %v1179_v50 = vpop.permute.xlu1 %1178  ;;  %v1467_v35 = vsel %vm1445_vm9, %v1434_v38, %v1177_v25 }
 0x139   : > { %v1469_v4 = vsel %vm1445_vm9, %v1436_v43, %v1179_v50 }
 0x13b   : > { %v1212_v49 = vpop.permute.xlu0 %1211 }
 0x13c   : > { %v1214_v39 = vpop.permute.xlu1 %1213  ;;  %v1500_v21 = vsel %vm1478_vm10, %v1467_v35, %v1212_v49 }
 0x13d   : > { %v1502_v55 = vsel %vm1478_vm10, %v1469_v4, %v1214_v39 }
 0x13f   : > { %v1247_v36 = vpop.permute.xlu0 %1246 }
 0x140   : > { %v1249_v2 = vpop.permute.xlu1 %1248  ;;  %v1533_v1 = vsel %vm1511_vm11, %v1500_v21, %v1247_v36 }
 0x141   : > { %v1535_v58 = vsel %vm1511_vm11, %v1502_v55, %v1249_v2 }
 0x143   : > { %v1282_v41 = vpop.permute.xlu0 %1281 }
 0x144   : > { %v1284_v33 = vpop.permute.xlu1 %1283  ;;  %v1566_v23 = vsel %vm1544_vm12, %v1533_v1, %v1282_v41 }
 0x145   : > { %v1568_v34 = vsel %vm1544_vm12, %v1535_v58, %v1284_v33 }
 0x147   : > { %v1317_v40 = vpop.permute.xlu0 %1316 }
 0x148   : > { %v1319_v10 = vpop.permute.xlu1 %1318  ;;  %v1599_v18 = vsel %vm1577_vm13, %v1566_v23, %v1317_v40 }
 0x149   : > { %v1601_v15 = vsel %vm1577_vm13, %v1568_v34, %v1319_v10 }
 0x14b   : > { %v1352_v8 = vpop.permute.xlu0 %1351 }
 0x14c   : > { %v1066_v32 = vpop.permute.xlu1 %1065  ;;  %v1632_v52 = vsel %vm1610_vm14, %v1599_v18, %v1352_v8 }
 0x14d   : > { %4067 = vmatprep.mubr.msk.bf16.mxu0 %vm1670_vm15, %v1632_v52  ;;  %v1402_v46 = vsel %vm1363_vm7, %v4700_v28, %v1066_v32 }
 0x14f   : > { %v1354_v59 = vpop.permute.xlu0 %1353 }
 0x150   : > { %v1068_v61 = vpop.permute.xlu1 %1067  ;;  %v1634_v30 = vsel %vm1610_vm14, %v1601_v15, %v1354_v59 }
 0x151   : > { %4068 = vmatmul.mubr.msk.bf16.gmra.mrb[20].mxu0 %vm1670_vm15, %v1634_v30  ;;  %v1405_v24 = vsel %vm1363_vm7, %v4757_v0, %v1068_v61 }
 0x153   : > { %v1146_v63 = vpop.permute.xlu0 %1145 }
 0x154   : > { %v1148_v54 = vpop.permute.xlu1 %1147  ;;  %v1438_v48 = vsel %vm1412_vm8, %v1402_v46, %v1146_v63 }
 0x155   : > { %v1440_v27 = vsel %vm1412_vm8, %v1405_v24, %v1148_v54 }
 0x157   : > { %v1181_v9 = vpop.permute.xlu0 %1180 }
 0x158   : > { %v1183_v45 = vpop.permute.xlu1 %1182  ;;  %v1471_v16 = vsel %vm1445_vm9, %v1438_v48, %v1181_v9 }
 0x159   : > { %v1473_v26 = vsel %vm1445_vm9, %v1440_v27, %v1183_v45 }
 0x15b   : > { %v1216_v47 = vpop.permute.xlu0 %1215 }
 0x15c   : > { %v1218_v12 = vpop.permute.xlu1 %1217  ;;  %v1504_v19 = vsel %vm1478_vm10, %v1471_v16, %v1216_v47 }
 0x15d   : > { %v1506_v22 = vsel %vm1478_vm10, %v1473_v26, %v1218_v12 }
 0x15f   : > { %v1251_v13 = vpop.permute.xlu0 %1250 }
 0x160   : > { %v1253_v14 = vpop.permute.xlu1 %1252  ;;  %v1537_v29 = vsel %vm1511_vm11, %v1504_v19, %v1251_v13  ;;  %v5094_v19 = vld [vmem:[%s7013_s3] ss:$0 sm:$0xff] }
 0x161   : > { %v1539_v20 = vsel %vm1511_vm11, %v1506_v22, %v1253_v14 }
 0x163   : > { %v1286_v53 = vpop.permute.xlu0 %1285 }
 0x164   : > { %v1288_v42 = vpop.permute.xlu1 %1287  ;;  %v1570_v3 = vsel %vm1544_vm12, %v1537_v29, %v1286_v53 }
 0x165   : > { %v1572_v0 = vsel %vm1544_vm12, %v1539_v20, %v1288_v42 }
 0x167   : > { %v1321_v17 = vpop.permute.xlu0 %1320 }
 0x168   : > { %v1323_v5 = vpop.permute.xlu1 %1322  ;;  %v1603_v28 = vsel %vm1577_vm13, %v1570_v3, %v1321_v17 }
 0x169   : > { %v1605_v60 = vsel %vm1577_vm13, %v1572_v0, %v1323_v5 }
 0x16b   : > { %v1356_v6 = vpop.permute.xlu0 %1355 }
 0x16c   : > { %v1070_v56 = vpop.permute.xlu1 %1069  ;;  %v1636_v51 = vsel %vm1610_vm14, %v1603_v28, %v1356_v6 }
 0x16d   : > { %4071 = vmatprep.mubr.msk.bf16.mxu0 %vm1670_vm15, %v1636_v51  ;;  %v1408_v40 = vsel %vm1363_vm7, %v4823_v44, %v1070_v56 }
 0x16f   : > { %v1358_v62 = vpop.permute.xlu0 %1357 }
 0x170   : > { %v1072_v11 = vpop.permute.xlu1 %1071  ;;  %v1638_v37 = vsel %vm1610_vm14, %v1605_v60, %v1358_v62 }
 0x171   : > { %4072 = vmatmul.mubr.msk.bf16.gmra.mrb[24].mxu0 %vm1670_vm15, %v1638_v37  ;;  %v1411_v10 = vsel %vm1363_vm7, %v4883_v57, %v1072_v11 }
 0x173   : > { %v1150_v25 = vpop.permute.xlu0 %1149 }
 0x174   : > { %v1152_v50 = vpop.permute.xlu1 %1151  ;;  %v1442_v31 = vsel %vm1412_vm8, %v1408_v40, %v1150_v25 }
 0x175   : > { %v1444_v43 = vsel %vm1412_vm8, %v1411_v10, %v1152_v50 }
 0x177   : > { %v1185_v49 = vpop.permute.xlu0 %1184 }
 0x178   : > { %v1187_v39 = vpop.permute.xlu1 %1186  ;;  %v1475_v23 = vsel %vm1445_vm9, %v1442_v31, %v1185_v49 }
 0x179   : > { %v1477_v8 = vsel %vm1445_vm9, %v1444_v43, %v1187_v39 }
 0x17b   : > { %v1220_v36 = vpop.permute.xlu0 %1219 }
 0x17c   : > { %v1222_v2 = vpop.permute.xlu1 %1221  ;;  %v1508_v55 = vsel %vm1478_vm10, %v1475_v23, %v1220_v36 }
 0x17d   : > { %v1510_v44 = vsel %vm1478_vm10, %v1477_v8, %v1222_v2 }
 0x17f   : > { %v1255_v41 = vpop.permute.xlu0 %1254 }
 0x180   : > { %v1257_v33 = vpop.permute.xlu1 %1256  ;;  %v1541_v52 = vsel %vm1511_vm11, %v1508_v55, %v1255_v41 }
 0x181   : > { %v1543_v57 = vsel %vm1511_vm11, %v1510_v44, %v1257_v33 }
 0x183   : > { %v1290_v7 = vpop.permute.xlu0 %1289 }
 0x184   : > { %v1292_v38 = vpop.permute.xlu1 %1291  ;;  %v4049_v35 = vpop.f32.mrb[0].mxu0  ;;  %v1574_v58 = vsel %vm1544_vm12, %v1541_v52, %v1290_v7 }
 0x185   : > { %v1741_v21 = vpop.f32.mrb[1].mxu0  ;;  %v1576_v34 = vsel %vm1544_vm12, %v1543_v57, %v1292_v38  ;;  %v5105_v27 = vadd.f32 %v4049_v35, %v5094_v19 }
 0x186   : > { %v4050_v1 = vpop.f32.mrb[2].mxu0  ;;  %v5100_v24 = vadd.f32 %v5094_v19, %v1741_v21 }
 0x187   : > { %v1744_v4 = vpop.f32.mrb[3].mxu0  ;;  %v1325_v18 = vpop.permute.xlu0 %1324  ;;  %v1871_v28 = vsel %vm1363_vm7, %v5105_v27, 0.0  ;;  %v5112_v6 = vadd.f32 %v4050_v1, %v5094_v19 }
 0x188   : > { %v1327_v32 = vpop.permute.xlu1 %1326  ;;  %v1607_v15 = vsel %vm1577_vm13, %v1574_v58, %v1325_v18  ;;  %v5097_v5 = vadd.f32 %v5094_v19, %v1744_v4  ;;  %v1868_v3 = vsel %vm1363_vm7, %v5100_v24, 0.0 }
 0x189   : > { %v1609_v61 = vsel %vm1577_vm13, %v1576_v34, %v1327_v32  ;;  %v1873_v51 = vsel %vm1363_vm7, %v5112_v6, 0.0 }
 0x18a   : > { %v1869_v29 = vsel %vm1363_vm7, %v5097_v5, 0.0 }
 0x18b   : > { %v1360_v59 = vpop.permute.xlu0 %1359  ;;  %v1870_v26 = vadd.f32 %v1869_v29, %v1868_v3 }
 0x18c   : > { %v1362_v30 = vpop.permute.xlu1 %1361  ;;  %v1640_v63 = vsel %vm1610_vm14, %v1607_v15, %v1360_v59 }
 0x18d   : > { %v1642_v54 = vsel %vm1610_vm14, %v1609_v61, %v1362_v30  ;;  %4075 = vmatprep.mubr.msk.bf16.mxu0 %vm1670_vm15, %v1640_v63  ;;  %v1872_v56 = vadd.f32 %v1871_v28, %v1870_v26 }
 0x18e   : > { %4076 = vmatmul.mubr.msk.bf16.gmra.mrb[28].mxu0 %vm1670_vm15, %v1642_v54 }
 0x18f   : > { %v1874_v60 = vadd.f32 %v1873_v51, %v1872_v56 }
 0x1a4   : > { %v4053_v9 = vpop.f32.mrb[4].mxu0 }
 0x1a5   : > { %v1757_v45 = vpop.f32.mrb[5].mxu0  ;;  %v5127_v50 = vadd.f32 %v4053_v9, %v5094_v19 }
 0x1a6   : > { %v4054_v47 = vpop.f32.mrb[6].mxu0  ;;  %v5115_v22 = vadd.f32 %v5094_v19, %v1757_v45 }
 0x1a7   : > { %v1760_v12 = vpop.f32.mrb[7].mxu0  ;;  %v1879_v2 = vsel %vm1363_vm7, %v5127_v50, 0.0  ;;  %v5132_v41 = vadd.f32 %v4054_v47, %v5094_v19 }
 0x1a8   : > { %v1875_v20 = vsel %vm1363_vm7, %v5115_v22, 0.0  ;;  %v5122_v0 = vadd.f32 %v5094_v19, %v1760_v12 }
 0x1a9   : > { %v1876_v62 = vadd.f32 %v1875_v20, %v1874_v60  ;;  %v1881_v38 = vsel %vm1363_vm7, %v5132_v41, 0.0 }
 0x1aa   : > { %v1877_v11 = vsel %vm1363_vm7, %v5122_v0, 0.0 }
 0x1ab   : > { %v1878_v39 = vadd.f32 %v1877_v11, %v1876_v62 }
 0x1ad   : > { %v1880_v7 = vadd.f32 %v1879_v2, %v1878_v39 }
 0x1af   : > { %v1882_v21 = vadd.f32 %v1881_v38, %v1880_v7 }
 0x1c4   : > { %v4057_v13 = vpop.f32.mrb[8].mxu0 }
 0x1c5   : > { %v1773_v14 = vpop.f32.mrb[9].mxu0  ;;  %v5147_v1 = vadd.f32 %v4057_v13, %v5094_v19 }
 0x1c6   : > { %v4058_v53 = vpop.f32.mrb[10].mxu0  ;;  %v5135_v33 = vadd.f32 %v5094_v19, %v1773_v14 }
 0x1c7   : > { %v1776_v42 = vpop.f32.mrb[11].mxu0  ;;  %v1887_v23 = vsel %vm1363_vm7, %v5147_v1, 0.0  ;;  %v5152_v4 = vadd.f32 %v4058_v53, %v5094_v19 }
 0x1c8   : > { %v1883_v35 = vsel %vm1363_vm7, %v5135_v33, 0.0  ;;  %v5142_v40 = vadd.f32 %v5094_v19, %v1776_v42 }
 0x1c9   : > { %v1884_v10 = vadd.f32 %v1883_v35, %v1882_v21  ;;  %v1889_v55 = vsel %vm1363_vm7, %v5152_v4, 0.0 }
 0x1ca   : > { %v1885_v31 = vsel %vm1363_vm7, %v5142_v40, 0.0 }
 0x1cb   : > { %v1886_v43 = vadd.f32 %v1885_v31, %v1884_v10 }
 0x1cd   : > { %v1888_v8 = vadd.f32 %v1887_v23, %v1886_v43 }
 0x1cf   : > { %v1890_v52 = vadd.f32 %v1889_v55, %v1888_v8 }
 0x1e4   : > { %v4061_v46 = vpop.f32.mrb[12].mxu0 }
 0x1e5   : > { %v1789_v48 = vpop.f32.mrb[13].mxu0  ;;  %v5167_v34 = vadd.f32 %v4061_v46, %v5094_v19 }
 0x1e6   : > { %v4062_v16 = vpop.f32.mrb[14].mxu0  ;;  %v5155_v18 = vadd.f32 %v5094_v19, %v1789_v48 }
 0x1e7   : > { %v1792_v17 = vpop.f32.mrb[15].mxu0  ;;  %v1895_v30 = vsel %vm1363_vm7, %v5167_v34, 0.0  ;;  %v5172_v63 = vadd.f32 %v4062_v16, %v5094_v19 }
 0x1e8   : > { %v1891_v32 = vsel %vm1363_vm7, %v5155_v18, 0.0  ;;  %v5162_v44 = vadd.f32 %v5094_v19, %v1792_v17 }
 0x1e9   : > { %v1892_v57 = vadd.f32 %v1891_v32, %v1890_v52  ;;  %v1897_v12 = vsel %vm1363_vm7, %v5172_v63, 0.0 }
 0x1ea   : > { %v1893_v58 = vsel %vm1363_vm7, %v5162_v44, 0.0 }
 0x1eb   : > { %v1894_v15 = vadd.f32 %v1893_v58, %v1892_v57 }
 0x1ed   : > { %v1896_v45 = vadd.f32 %v1895_v30, %v1894_v15 }
 0x1ef   : > { %v1898_v53 = vadd.f32 %v1897_v12, %v1896_v45 }
 0x204   : > { %v4065_v37 = vpop.f32.mrb[16].mxu0 }
 0x205   : > { %v1805_v25 = vpop.f32.mrb[17].mxu0  ;;  %v5187_v48 = vadd.f32 %v4065_v37, %v5094_v19 }
 0x206   : > { %v4066_v49 = vpop.f32.mrb[18].mxu0  ;;  %v5175_v54 = vadd.f32 %v5094_v19, %v1805_v25 }
 0x207   : > { %v1808_v36 = vpop.f32.mrb[19].mxu0  ;;  %v1903_v17 = vsel %vm1363_vm7, %v5187_v48, 0.0  ;;  %v5192_v29 = vadd.f32 %v4066_v49, %v5094_v19 }
 0x208   : > { %v1899_v13 = vsel %vm1363_vm7, %v5175_v54, 0.0  ;;  %v5182_v14 = vadd.f32 %v5094_v19, %v1808_v36 }
 0x209   : > { %v1900_v42 = vadd.f32 %v1899_v13, %v1898_v53  ;;  %v1905_v28 = vsel %vm1363_vm7, %v5192_v29, 0.0 }
 0x20a   : > { %v1901_v46 = vsel %vm1363_vm7, %v5182_v14, 0.0 }
 0x20b   : > { %v1902_v16 = vadd.f32 %v1901_v46, %v1900_v42 }
 0x20d   : > { %v1904_v26 = vadd.f32 %v1903_v17, %v1902_v16 }
 0x20f   : > { %v1906_v20 = vadd.f32 %v1905_v28, %v1904_v26 }
 0x224   : > { %v4069_v59 = vpop.f32.mrb[20].mxu0 }
 0x225   : > { %v1821_v61 = vpop.f32.mrb[21].mxu0  ;;  %v5207_v11 = vadd.f32 %v4069_v59, %v5094_v19 }
 0x226   : > { %v4070_v9 = vpop.f32.mrb[22].mxu0  ;;  %v5195_v3 = vadd.f32 %v5094_v19, %v1821_v61 }
 0x227   : > { %v1824_v47 = vpop.f32.mrb[23].mxu0  ;;  %v1911_v25 = vsel %vm1363_vm7, %v5207_v11, 0.0  ;;  %v5212_v49 = vadd.f32 %v4070_v9, %v5094_v19 }
 0x228   : > { %v1907_v56 = vsel %vm1363_vm7, %v5195_v3, 0.0  ;;  %v5202_v51 = vadd.f32 %v5094_v19, %v1824_v47 }
 0x229   : > { %v1908_v60 = vadd.f32 %v1907_v56, %v1906_v20  ;;  %v1913_v7 = vsel %vm1363_vm7, %v5212_v49, 0.0 }
 0x22a   : > { %v1909_v62 = vsel %vm1363_vm7, %v5202_v51, 0.0 }
 0x22b   : > { %v1910_v37 = vadd.f32 %v1909_v62, %v1908_v60 }
 0x22d   : > { %v1912_v39 = vadd.f32 %v1911_v25, %v1910_v37 }
 0x22f   : > { %v1914_v21 = vadd.f32 %v1913_v7, %v1912_v39 }
 0x244   : > { %v4073_v36 = vpop.f32.mrb[24].mxu0 }
 0x245   : > { %v1837_v2 = vpop.f32.mrb[25].mxu0  ;;  %v1846_v31 = vadd.f32 %v4073_v36, %v5094_v19 }
 0x246   : > { %v1838_v38 = vadd.f32 %v5094_v19, %v1837_v2  ;;  %v4074_v35 = vpop.f32.mrb[26].mxu0 }
 0x247   : > { %v1840_v10 = vpop.f32.mrb[27].mxu0  ;;  %v1849_v55 = vadd.f32 %v4074_v35, %v5094_v19  ;;  %v1919_v57 = vsel %vm1363_vm7, %v1846_v31, 0.0 }
 0x248   : > { %v1915_v43 = vsel %vm1363_vm7, %v1838_v38, 0.0  ;;  %v1841_v23 = vadd.f32 %v5094_v19, %v1840_v10 }
 0x249   : > { %v1916_v8 = vadd.f32 %v1915_v43, %v1914_v21  ;;  %v1921_v15 = vsel %vm1363_vm7, %v1849_v55, 0.0 }
 0x24a   : > { %v1917_v32 = vsel %vm1363_vm7, %v1841_v23, 0.0 }
 0x24b   : > { %v1918_v52 = vadd.f32 %v1917_v32, %v1916_v8 }
 0x24d   : > { %v1920_v58 = vadd.f32 %v1919_v57, %v1918_v52 }
 0x24f   : > { %v1922_v59 = vadd.f32 %v1921_v15, %v1920_v58 }
 0x261   : > { %v4077_v61 = vpop.f32.mrb[28].mxu0 }
 0x262   : > { %v1853_v30 = vpop.f32.mrb[29].mxu0  ;;  %v1862_v12 = vadd.f32 %v4077_v61, %v5094_v19 }
 0x263   : > { %v1854_v9 = vadd.f32 %v5094_v19, %v1853_v30  ;;  %v4078_v45 = vpop.f32.mrb[30].mxu0 }
 0x264   : > { %v1856_v47 = vpop.f32.mrb[31].mxu0  ;;  %v1865_v46 = vadd.f32 %v4078_v45, %v5094_v19  ;;  %v1927_v26 = vsel %vm1363_vm7, %v1862_v12, 0.0 }
 0x265   : > { %v1923_v13 = vsel %vm1363_vm7, %v1854_v9, 0.0  ;;  %v1857_v53 = vadd.f32 %v5094_v19, %v1856_v47 }
 0x266   : > { %v1924_v42 = vadd.f32 %v1923_v13, %v1922_v59  ;;  %v1929_v56 = vsel %vm1363_vm7, %v1865_v46, 0.0 }
 0x267   : > { %v1925_v16 = vsel %vm1363_vm7, %v1857_v53, 0.0 }
 0x268   : > { %v1926_v17 = vadd.f32 %v1925_v16, %v1924_v42 }
 0x26a   : > { %v1928_v28 = vadd.f32 %v1927_v26, %v1926_v17 }
 0x26c   : > { %v1930_v20 = vadd.f32 %v1929_v56, %v1928_v28 }
 0x26e   : > { %v1931_v60 = vrot.slane %v1930_v20, 4 }
 0x270   : > { %v1932_v62 = vadd.f32 %v1931_v60, %v1930_v20 }
 0x272   : > { %v1933_v37 = vrot.slane %v1932_v62, 2 }
 0x274   : > { %v1934_v25 = vadd.f32 %v1933_v37, %v1932_v62 }
 0x276   : > { %v1935_v39 = vrot.slane %v1934_v25, 1 }
 0x278   : > { %v1936_v36 = vadd.f32 %v1935_v39, %v1934_v25 }
 0x27a   : > { %v5232_v2 = vmul.f32 0.00390625, %v1936_v36 }
 0x27c   : > { %v5235_v7 = vsub.f32 %v1838_v38, %v5232_v2  ;;  %v5238_v19 = vsub.f32 %v1841_v23, %v5232_v2  ;;  %v5241_v35 = vsub.f32 %v1846_v31, %v5232_v2  ;;  %v5244_v21 = vsub.f32 %v1849_v55, %v5232_v2 }
 0x27d   : > { %v5247_v10 = vsub.f32 %v1854_v9, %v5232_v2  ;;  %v5250_v43 = vsub.f32 %v1857_v53, %v5232_v2  ;;  %v5253_v8 = vsub.f32 %v1862_v12, %v5232_v2  ;;  %v5256_v38 = vsub.f32 %v1865_v46, %v5232_v2 }
 0x27e   : > { %v5260_v23 = vsub.f32 %v5100_v24, %v5232_v2  ;;  %v5264_v31 = vsub.f32 %v5097_v5, %v5232_v2  ;;  %v5268_v55 = vsub.f32 %v5105_v27, %v5232_v2  ;;  %v5272_v32 = vsub.f32 %v5112_v6, %v5232_v2 }
 0x27f   : > { %v5280_v24 = vsub.f32 %v5115_v22, %v5232_v2  ;;  %v5286_v27 = vsub.f32 %v5122_v0, %v5232_v2  ;;  %v5294_v61 = vsub.f32 %v5127_v50, %v5232_v2  ;;  %v5301_v0 = vsub.f32 %v5132_v41, %v5232_v2 }
 0x280   : > { %v1971_v52 = vmul.f32 %v5260_v23, %v5260_v23  ;;  %v1972_v57 = vmul.f32 %v5264_v31, %v5264_v31  ;;  %v1973_v5 = vmul.f32 %v5268_v55, %v5268_v55  ;;  %v1974_v6 = vmul.f32 %v5272_v32, %v5272_v32 }
 0x281   : > { %v1975_v22 = vmul.f32 %v5280_v24, %v5280_v24  ;;  %v1976_v45 = vmul.f32 %v5286_v27, %v5286_v27  ;;  %v5308_v50 = vsub.f32 %v5135_v33, %v5232_v2  ;;  %v1977_v13 = vmul.f32 %v5294_v61, %v5294_v61 }
 0x282   : > { %v2003_v58 = vsel %vm1363_vm7, %v1971_v52, 0.0  ;;  %v2004_v15 = vsel %vm1363_vm7, %v1972_v57, 0.0  ;;  %v2006_v30 = vsel %vm1363_vm7, %v1973_v5, 0.0  ;;  %v2008_v47 = vsel %vm1363_vm7, %v1974_v6, 0.0 }
 0x283   : > { %v2005_v59 = vadd.f32 %v2004_v15, %v2003_v58  ;;  %v2010_v53 = vsel %vm1363_vm7, %v1975_v22, 0.0  ;;  %v5315_v41 = vsub.f32 %v5142_v40, %v5232_v2  ;;  %v1978_v46 = vmul.f32 %v5301_v0, %v5301_v0 }
 0x284   : > { %v2012_v16 = vsel %vm1363_vm7, %v1976_v45, 0.0  ;;  %v5322_v33 = vsub.f32 %v5147_v1, %v5232_v2  ;;  %v1979_v26 = vmul.f32 %v5308_v50, %v5308_v50  ;;  %v2014_v28 = vsel %vm1363_vm7, %v1977_v13, 0.0 }
 0x285   : > { %v2007_v9 = vadd.f32 %v2006_v30, %v2005_v59  ;;  %v5329_v40 = vsub.f32 %v5152_v4, %v5232_v2  ;;  %v1980_v20 = vmul.f32 %v5315_v41, %v5315_v41  ;;  %v2016_v60 = vsel %vm1363_vm7, %v1978_v46, 0.0 }
 0x286   : > { %v5336_v1 = vsub.f32 %v5155_v18, %v5232_v2  ;;  %v1981_v37 = vmul.f32 %v5322_v33, %v5322_v33  ;;  %v2018_v25 = vsel %vm1363_vm7, %v1979_v26, 0.0  ;;  %v5343_v4 = vsub.f32 %v5162_v44, %v5232_v2 }
 0x287   : > { %v2009_v12 = vadd.f32 %v2008_v47, %v2007_v9  ;;  %v1982_v36 = vmul.f32 %v5329_v40, %v5329_v40  ;;  %v2020_v52 = vsel %vm1363_vm7, %v1980_v20, 0.0  ;;  %v5350_v18 = vsub.f32 %v5167_v34, %v5232_v2 }
 0x288   : > { %v1983_v5 = vmul.f32 %v5336_v1, %v5336_v1  ;;  %v2022_v6 = vsel %vm1363_vm7, %v1981_v37, 0.0  ;;  %v5357_v44 = vsub.f32 %v5172_v63, %v5232_v2  ;;  %v1984_v15 = vmul.f32 %v5343_v4, %v5343_v4 }
 0x289   : > { %v2011_v42 = vadd.f32 %v2010_v53, %v2009_v12  ;;  %v2024_v59 = vsel %vm1363_vm7, %v1982_v36, 0.0  ;;  %v5364_v34 = vsub.f32 %v5175_v54, %v5232_v2  ;;  %v1985_v30 = vmul.f32 %v5350_v18, %v5350_v18 }
 0x28a   : > { %v2026_v9 = vsel %vm1363_vm7, %v1983_v5, 0.0  ;;  %v5371_v63 = vsub.f32 %v5182_v14, %v5232_v2  ;;  %v1986_v47 = vmul.f32 %v5357_v44, %v5357_v44  ;;  %v2028_v12 = vsel %vm1363_vm7, %v1984_v15, 0.0 }
 0x28b   : > { %v2013_v17 = vadd.f32 %v2012_v16, %v2011_v42  ;;  %v5378_v54 = vsub.f32 %v5187_v48, %v5232_v2  ;;  %v1987_v53 = vmul.f32 %v5364_v34, %v5364_v34  ;;  %v2030_v42 = vsel %vm1363_vm7, %v1985_v30, 0.0 }
 0x28c   : > { %v5385_v14 = vsub.f32 %v5192_v29, %v5232_v2  ;;  %v1988_v16 = vmul.f32 %v5371_v63, %v5371_v63  ;;  %v5392_v48 = vsub.f32 %v5195_v3, %v5232_v2  ;;  %v5399_v29 = vsub.f32 %v5202_v51, %v5232_v2 }
 0x28d   : > { %v2015_v56 = vadd.f32 %v2014_v28, %v2013_v17  ;;  %v2032_v17 = vsel %vm1363_vm7, %v1986_v47, 0.0  ;;  %v1989_v28 = vmul.f32 %v5378_v54, %v5378_v54  ;;  %v5406_v3 = vsub.f32 %v5207_v11, %v5232_v2 }
 0x28e   : > { %v5413_v51 = vsub.f32 %v5212_v49, %v5232_v2  ;;  %v1995_v49 = vmul.f32 %v5235_v7, %v5235_v7 }
 0x28f   : > { %v2017_v62 = vadd.f32 %v2016_v60, %v2015_v56  ;;  %v2034_v56 = vsel %vm1363_vm7, %v1987_v53, 0.0  ;;  %v1990_v60 = vmul.f32 %v5385_v14, %v5385_v14  ;;  %v1993_v11 = vmul.f32 %v5406_v3, %v5406_v3 }
 0x290   : > { %v1994_v15 = vmul.f32 %v5413_v51, %v5413_v51 }
 0x291   : > { %v2019_v39 = vadd.f32 %v2018_v25, %v2017_v62  ;;  %v2036_v62 = vsel %vm1363_vm7, %v1988_v16, 0.0  ;;  %v1991_v25 = vmul.f32 %v5392_v48, %v5392_v48  ;;  %v2046_v2 = vsel %vm1363_vm7, %v1993_v11, 0.0 }
 0x293   : > { %v2021_v57 = vadd.f32 %v2020_v52, %v2019_v39  ;;  %v2038_v39 = vsel %vm1363_vm7, %v1989_v28, 0.0  ;;  %v1992_v52 = vmul.f32 %v5399_v29, %v5399_v29 }
 0x295   : > { %v2023_v58 = vadd.f32 %v2022_v6, %v2021_v57  ;;  %v2040_v57 = vsel %vm1363_vm7, %v1990_v60, 0.0  ;;  %v2042_v6 = vsel %vm1363_vm7, %v1991_v25, 0.0 }
 0x297   : > { %v2025_v22 = vadd.f32 %v2024_v59, %v2023_v58  ;;  %v2044_v59 = vsel %vm1363_vm7, %v1992_v52, 0.0 }
 0x299   : > { %v2027_v45 = vadd.f32 %v2026_v9, %v2025_v22  ;;  %v1996_v9 = vmul.f32 %v5238_v19, %v5238_v19 }
 0x29b   : > { %v2029_v13 = vadd.f32 %v2028_v12, %v2027_v45  ;;  %v2048_v45 = vsel %vm1363_vm7, %v1994_v15, 0.0  ;;  %v1997_v12 = vmul.f32 %v5241_v35, %v5241_v35 }
 0x29d   : > { %v2031_v46 = vadd.f32 %v2030_v42, %v2029_v13  ;;  %v2050_v13 = vsel %vm1363_vm7, %v1995_v49, 0.0  ;;  %v1998_v42 = vmul.f32 %v5244_v21, %v5244_v21 }
 0x29f   : > { %v2033_v26 = vadd.f32 %v2032_v17, %v2031_v46  ;;  %v2052_v46 = vsel %vm1363_vm7, %v1996_v9, 0.0  ;;  %v1999_v17 = vmul.f32 %v5247_v10, %v5247_v10 }
 0x2a1   : > { %v2035_v20 = vadd.f32 %v2034_v56, %v2033_v26  ;;  %v2054_v26 = vsel %vm1363_vm7, %v1997_v12, 0.0  ;;  %v2000_v56 = vmul.f32 %v5250_v43, %v5250_v43 }
 0x2a3   : > { %v2037_v37 = vadd.f32 %v2036_v62, %v2035_v20  ;;  %v2056_v20 = vsel %vm1363_vm7, %v1998_v42, 0.0  ;;  %v2001_v62 = vmul.f32 %v5253_v8, %v5253_v8 }
 0x2a5   : > { %v2039_v36 = vadd.f32 %v2038_v39, %v2037_v37  ;;  %v2058_v37 = vsel %vm1363_vm7, %v1999_v17, 0.0  ;;  %v2002_v39 = vmul.f32 %v5256_v38, %v5256_v38 }
 0x2a7   : > { %v2041_v5 = vadd.f32 %v2040_v57, %v2039_v36  ;;  %v2060_v36 = vsel %vm1363_vm7, %v2000_v56, 0.0  ;;  %v2062_v57 = vsel %vm1363_vm7, %v2001_v62, 0.0  ;;  %v2064_v11 = vsel %vm1363_vm7, %v2002_v39, 0.0 }
 0x2a9   : > { %v2043_v58 = vadd.f32 %v2042_v6, %v2041_v5 }
 0x2ab   : > { %v2045_v22 = vadd.f32 %v2044_v59, %v2043_v58 }
 0x2ad   : > { %v2047_v30 = vadd.f32 %v2046_v2, %v2045_v22 }
 0x2af   : > { %v2049_v47 = vadd.f32 %v2048_v45, %v2047_v30 }
 0x2b1   : > { %v2051_v53 = vadd.f32 %v2050_v13, %v2049_v47 }
 0x2b3   : > { %v2053_v16 = vadd.f32 %v2052_v46, %v2051_v53 }
 0x2b5   : > { %v2055_v28 = vadd.f32 %v2054_v26, %v2053_v16 }
 0x2b7   : > { %v2057_v60 = vadd.f32 %v2056_v20, %v2055_v28 }
 0x2b9   : > { %v2059_v25 = vadd.f32 %v2058_v37, %v2057_v60 }
 0x2bb   : > { %v2061_v52 = vadd.f32 %v2060_v36, %v2059_v25 }
 0x2bd   : > { %v2063_v5 = vadd.f32 %v2062_v57, %v2061_v52 }
 0x2bf   : > { %v2065_v6 = vadd.f32 %v2064_v11, %v2063_v5 }
 0x2c1   : > { %v2066_v58 = vrot.slane %v2065_v6, 4 }
 0x2c3   : > { %v2067_v15 = vadd.f32 %v2066_v58, %v2065_v6 }
 0x2c5   : > { %v2068_v59 = vrot.slane %v2067_v15, 2 }
 0x2c7   : > { %v2069_v22 = vadd.f32 %v2068_v59, %v2067_v15 }
 0x2c9   : > { %v2070_v49 = vrot.slane %v2069_v22, 1 }
 0x2cb   : > { %v2071_v2 = vadd.f32 %v2070_v49, %v2069_v22 }
 0x2cd   : > { %v2072_v30 = vmul.f32 0.00390625, %v2071_v2 }
 0x2cf   : > { %v2073_v9 = vadd.f32 1e-05, %v2072_v30 }
 0x2d1   : > { %4160 = vrsqrt.f32 %v2073_v9 }
 0x2db   : > { %v4161_v45 = vpop.eup %4160 }
 0x2dc   : > { %v2104_v47 = vmul.f32 %v4161_v45, %v5250_v43  ;;  %v2075_v12 = vmul.f32 %v4161_v45, %v5260_v23  ;;  %v2076_v13 = vmul.f32 %v4161_v45, %v5264_v31  ;;  %v2077_v53 = vmul.f32 %v4161_v45, %v5268_v55 }
 0x2dd   : > { %v2078_v42 = vmul.f32 %v4161_v45, %v5272_v32  ;;  %v2079_v46 = vmul.f32 %v4161_v45, %v5280_v24  ;;  %v2080_v16 = vmul.f32 %v4161_v45, %v5286_v27  ;;  %v2081_v17 = vmul.f32 %v4161_v45, %v5294_v61 }
 0x2de   : > { %v2136_v26 = vmax.f32 %v2104_v47, 0.0  ;;  %v2082_v28 = vmul.f32 %v4161_v45, %v5301_v0  ;;  %v2083_v43 = vmul.f32 %v4161_v45, %v5308_v50  ;;  %v2084_v23 = vmul.f32 %v4161_v45, %v5315_v41 }
 0x2df   : > { %v2085_v31 = vmul.f32 %v4161_v45, %v5322_v33  ;;  %v2086_v55 = vmul.f32 %v4161_v45, %v5329_v40  ;;  %v2087_v56 = vmul.f32 %v4161_v45, %v5336_v1  ;;  %v2088_v32 = vmul.f32 %v4161_v45, %v5343_v4 }
 0x2e0   : > { %2169 = vst.msk [vmem:[#allocation2 + $0x171] sm:$0xff] %vm1363_vm7, %v2136_v26  ;;  %v2089_v24 = vmul.f32 %v4161_v45, %v5350_v18  ;;  %v2090_v27 = vmul.f32 %v4161_v45, %v5357_v44  ;;  %v2091_v61 = vmul.f32 %v4161_v45, %v5364_v34  ;;  %v2092_v0 = vmul.f32 %v4161_v45, %v5371_v63 }
 0x2e1   : > { %v5471_v50 = vmul.f32 %v4161_v45, %v5378_v54  ;;  %v5474_v41 = vmul.f32 %v4161_v45, %v5385_v14  ;;  %v5477_v33 = vmul.f32 %v4161_v45, %v5392_v48  ;;  %v5480_v40 = vmul.f32 %v4161_v45, %v5399_v29 }
 0x2e2   : > { %v5483_v1 = vmul.f32 %v4161_v45, %v5406_v3  ;;  %v5486_v4 = vmul.f32 %v4161_v45, %v5413_v51  ;;  %v5489_v18 = vmul.f32 %v4161_v45, %v5235_v7  ;;  %v5492_v44 = vmul.f32 %v4161_v45, %v5238_v19 }
 0x2e3   : > { %v5495_v34 = vmul.f32 %v4161_v45, %v5241_v35  ;;  %v5498_v63 = vmul.f32 %v4161_v45, %v5244_v21  ;;  %v5501_v54 = vmul.f32 %v4161_v45, %v5247_v10  ;;  %v5504_v14 = vmul.f32 %v4161_v45, %v5253_v8 }
 0x2e4   : > { %v5507_v48 = vmul.f32 %v4161_v45, %v5256_v38  ;;  %v2109_v7 = vmax.f32 %v2077_v53, 0.0  ;;  %v2110_v29 = vmax.f32 %v2078_v42, 0.0  ;;  %v2107_v3 = vmax.f32 %v2075_v12, 0.0 }
 0x2e5   : > { %v2108_v19 = vmax.f32 %v2076_v13, 0.0  ;;  %v2111_v51 = vmax.f32 %v2079_v46, 0.0  ;;  %v2112_v20 = vmax.f32 %v2080_v16, 0.0  ;;  %v2113_v35 = vmax.f32 %v2081_v17, 0.0 }
 0x2e6   : > { %2142 = vst.msk [vmem:[#allocation2 + $0x31] sm:$0xff] %vm1363_vm7, %v2109_v7  ;;  %2143 = vst.msk [vmem:[#allocation2 + $0x39] sm:$0xff] %vm1363_vm7, %v2110_v29  ;;  %v2114_v21 = vmax.f32 %v2082_v28, 0.0  ;;  %v2115_v10 = vmax.f32 %v2083_v43, 0.0  ;;  %v2116_v60 = vmax.f32 %v2084_v23, 0.0  ;;  %v2117_v62 = vmax.f32 %v2085_v31, 0.0 }
 0x2e7   : > { %2140 = vst.msk [vmem:[#allocation2 + $0x19] sm:$0xff] %vm1363_vm7, %v2107_v3  ;;  %v2179_v8 = vld [vmem:[#allocation2 + $0x171] sm:$0xff]  ;;  %v2118_v37 = vmax.f32 %v2086_v55, 0.0  ;;  %v2119_v25 = vmax.f32 %v2087_v56, 0.0  ;;  %v2120_v39 = vmax.f32 %v2088_v32, 0.0  ;;  %2141 = vst.msk [vmem:[#allocation2 + $0x21] sm:$0xff] %vm1363_vm7, %v2108_v19 }
 0x2e8   : > { %v2235_v38 = vld [vmem:[#allocation2 + $0x177] sm:$0x1]  ;;  %2144 = vst.msk [vmem:[#allocation2 + $0x49] sm:$0xff] %vm1363_vm7, %v2111_v51  ;;  %2145 = vst.msk [vmem:[#allocation2 + $0x51] sm:$0xff] %vm1363_vm7, %v2112_v20  ;;  %v2121_v36 = vmax.f32 %v2089_v24, 0.0  ;;  %v2122_v52 = vmax.f32 %v2090_v27, 0.0 }
 0x2e9   : > { %2146 = vst.msk [vmem:[#allocation2 + $0x61] sm:$0xff] %vm1363_vm7, %v2113_v35  ;;  %2182 = vst.msk [vmem:[#allocation2 + $0x1a1] sm:$0xff] %vm1363_vm7, %v2179_v8  ;;  %v2123_v57 = vmax.f32 %v2091_v61, 0.0  ;;  %v2124_v5 = vmax.f32 %v2092_v0, 0.0  ;;  %v2125_v11 = vmax.f32 %v5471_v50, 0.0  ;;  %v2126_v6 = vmax.f32 %v5474_v41, 0.0 }
 0x2ea   : > { %2253 = vst.msk [vmem:[#allocation2 + $0x179] sm:$0x1] %vm2201_vm0, %v2235_v38  ;;  %v2127_v58 = vmax.f32 %v5477_v33, 0.0  ;;  %v2128_v15 = vmax.f32 %v5480_v40, 0.0  ;;  %v2129_v59 = vmax.f32 %v5483_v1, 0.0  ;;  %v2130_v22 = vmax.f32 %v5486_v4, 0.0 }
 0x2eb   : > { %2147 = vst.msk [vmem:[#allocation2 + $0x69] sm:$0xff] %vm1363_vm7, %v2114_v21  ;;  %2148 = vst.msk [vmem:[#allocation2 + $0x79] sm:$0xff] %vm1363_vm7, %v2115_v10  ;;  %v2131_v49 = vmax.f32 %v5489_v18, 0.0  ;;  %v2132_v2 = vmax.f32 %v5492_v44, 0.0  ;;  %v2133_v30 = vmax.f32 %v5495_v34, 0.0  ;;  %v2134_v9 = vmax.f32 %v5498_v63, 0.0 }
 0x2ec   : > { %2149 = vst.msk [vmem:[#allocation2 + $0x81] sm:$0xff] %vm1363_vm7, %v2116_v60  ;;  %2150 = vst.msk [vmem:[#allocation2 + $0x91] sm:$0xff] %vm1363_vm7, %v2117_v62  ;;  %v2135_v45 = vmax.f32 %v5501_v54, 0.0  ;;  %v2137_v47 = vmax.f32 %v5504_v14, 0.0  ;;  %v2138_v12 = vmax.f32 %v5507_v48, 0.0 }
 0x2ed   : > { %2151 = vst.msk [vmem:[#allocation2 + $0x99] sm:$0xff] %vm1363_vm7, %v2118_v37  ;;  %2152 = vst.msk [vmem:[#allocation2 + $0xa9] sm:$0xff] %vm1363_vm7, %v2119_v25  ;;  %v2185_v13 = vld [vmem:[#allocation2 + $0x32] sm:$0x1]  ;;  %v2174_v42 = vld [vmem:[#allocation2 + $0x39] sm:$0xff] }
 0x2ee   : > { %2153 = vst.msk [vmem:[#allocation2 + $0xb1] sm:$0xff] %vm1363_vm7, %v2120_v39  ;;  %2154 = vst.msk [vmem:[#allocation2 + $0xc1] sm:$0xff] %vm1363_vm7, %v2121_v36  ;;  %v2173_v53 = vld [vmem:[#allocation2 + $0x31] sm:$0xff]  ;;  %v2222_v46 = vld [vmem:[#allocation2 + $0x3f] sm:$0x1] }
 0x2ef   : > { %2155 = vst.msk [vmem:[#allocation2 + $0xc9] sm:$0xff] %vm1363_vm7, %v2122_v52  ;;  %2156 = vst.msk [vmem:[#allocation2 + $0xd9] sm:$0xff] %vm1363_vm7, %v2123_v57  ;;  %v2184_v16 = vld [vmem:[#allocation2 + $0x1a] sm:$0x1]  ;;  %v2221_v17 = vld [vmem:[#allocation2 + $0x27] sm:$0x1] }
 0x2f0   : > { %2157 = vst.msk [vmem:[#allocation2 + $0xe1] sm:$0xff] %vm1363_vm7, %v2124_v5  ;;  %2158 = vst.msk [vmem:[#allocation2 + $0xf1] sm:$0xff] %vm1363_vm7, %v2125_v11  ;;  %v2186_v26 = vld [vmem:[#allocation2 + $0x4a] sm:$0x1]  ;;  %v2187_v28 = vld [vmem:[#allocation2 + $0x62] sm:$0x1] }
 0x2f1   : > { %2159 = vst.msk [vmem:[#allocation2 + $0xf9] sm:$0xff] %vm1363_vm7, %v2126_v6  ;;  %2160 = vst.msk [vmem:[#allocation2 + $0x109] sm:$0xff] %vm1363_vm7, %v2127_v58  ;;  %v5565_v32 = vld [vmem:[#allocation2 + $0x38] sm:$0xff]  ;;  %v5582_v18 = vld [vmem:[#allocation2 + $0x20] sm:$0xff] }
 0x2f2   : > { %2161 = vst.msk [vmem:[#allocation2 + $0x111] sm:$0xff] %vm1363_vm7, %v2128_v15  ;;  %2162 = vst.msk [vmem:[#allocation2 + $0x121] sm:$0xff] %vm1363_vm7, %v2129_v59  ;;  %v2188_v43 = vld [vmem:[#allocation2 + $0x7a] sm:$0x1]  ;;  %v2223_v44 = vld [vmem:[#allocation2 + $0x57] sm:$0x1] }
 0x2f3   : > { %2163 = vst.msk [vmem:[#allocation2 + $0x129] sm:$0xff] %vm1363_vm7, %v2130_v22  ;;  %2164 = vst.msk [vmem:[#allocation2 + $0x139] sm:$0xff] %vm1363_vm7, %v2131_v49  ;;  %v2189_v23 = vld [vmem:[#allocation2 + $0x92] sm:$0x1]  ;;  %v2224_v34 = vld [vmem:[#allocation2 + $0x6f] sm:$0x1] }
 0x2f4   : > { %2165 = vst.msk [vmem:[#allocation2 + $0x141] sm:$0xff] %vm1363_vm7, %v2132_v2  ;;  %2166 = vst.msk [vmem:[#allocation2 + $0x151] sm:$0xff] %vm1363_vm7, %v2133_v30  ;;  %v2190_v31 = vld [vmem:[#allocation2 + $0xaa] sm:$0x1]  ;;  %v2225_v54 = vld [vmem:[#allocation2 + $0x87] sm:$0x1] }
 0x2f5   : > { %2167 = vst.msk [vmem:[#allocation2 + $0x159] sm:$0xff] %vm1363_vm7, %v2134_v9  ;;  %2168 = vst.msk [vmem:[#allocation2 + $0x169] sm:$0xff] %vm1363_vm7, %v2135_v45  ;;  %v2191_v55 = vld [vmem:[#allocation2 + $0xc2] sm:$0x1]  ;;  %v2226_v14 = vld [vmem:[#allocation2 + $0x9f] sm:$0x1] }
 0x2f6   : > { %2170 = vst.msk [vmem:[#allocation2 + $0x181] sm:$0xff] %vm1363_vm7, %v2137_v47  ;;  %2171 = vst.msk [vmem:[#allocation2 + $0x189] sm:$0xff] %vm1363_vm7, %v2138_v12  ;;  %v2192_v56 = vld [vmem:[#allocation2 + $0xda] sm:$0x1]  ;;  %v5598_v29 = vld [vmem:[#allocation2 + $0x50] sm:$0xff] }
 0x2f7   : > { %2204 = vst.msk [vmem:[#allocation2 + $0x30] sm:$0x1] %vm2201_vm0, %v2185_v13  ;;  %2240 = vst.msk [vmem:[#allocation2 + $0x41] sm:$0x1] %vm2201_vm0, %v2222_v46  ;;  %v2193_v24 = vld [vmem:[#allocation2 + $0xf2] sm:$0x1] }
 0x2f8   : > { %2175 = vst.msk [vmem:[#allocation2 + $0x1] sm:$0xff] %vm1363_vm7, %v2173_v53  ;;  %2176 = vst.msk [vmem:[#allocation2 + $0x9] sm:$0xff] %vm1363_vm7, %v2174_v42  ;;  %v2194_v27 = vld [vmem:[#allocation2 + $0x10a] sm:$0x1]  ;;  %v2227_v3 = vld [vmem:[#allocation2 + $0xb7] sm:$0x1] }
 0x2f9   : > { %2203 = vst.msk [vmem:[#allocation2 + $0x18] sm:$0x1] %vm2201_vm0, %v2184_v16  ;;  %2239 = vst.msk [vmem:[#allocation2 + $0x29] sm:$0x1] %vm2201_vm0, %v2221_v17  ;;  %v2195_v61 = vld [vmem:[#allocation2 + $0x122] sm:$0x1] }
 0x2fa   : > { %2205 = vst.msk [vmem:[#allocation2 + $0x48] sm:$0x1] %vm2201_vm0, %v2186_v26  ;;  %2206 = vst.msk [vmem:[#allocation2 + $0x60] sm:$0x1] %vm2201_vm0, %v2187_v28  ;;  %v2196_v50 = vld [vmem:[#allocation2 + $0x13a] sm:$0x1] }
 0x2fb   : > { %2207 = vst.msk [vmem:[#allocation2 + $0x78] sm:$0x1] %vm2201_vm0, %v2188_v43  ;;  %2208 = vst.msk [vmem:[#allocation2 + $0x90] sm:$0x1] %vm2201_vm0, %v2189_v23  ;;  %v2197_v41 = vld [vmem:[#allocation2 + $0x152] sm:$0x1] }
 0x2fc   : > { %2209 = vst.msk [vmem:[#allocation2 + $0xa8] sm:$0x1] %vm2201_vm0, %v2190_v31  ;;  %2210 = vst.msk [vmem:[#allocation2 + $0xc0] sm:$0x1] %vm2201_vm0, %v2191_v55  ;;  %v2178_v0 = vld [vmem:[#allocation2 + $0x169] sm:$0xff]  ;;  %v5633_v36 = vld [vmem:[#allocation2 + $0x80] sm:$0xff] }
 0x2fd   : > { %2211 = vst.msk [vmem:[#allocation2 + $0xd8] sm:$0x1] %vm2201_vm0, %v2192_v56  ;;  %2212 = vst.msk [vmem:[#allocation2 + $0xf0] sm:$0x1] %vm2201_vm0, %v2193_v24  ;;  %v2198_v40 = vld [vmem:[#allocation2 + $0x16a] sm:$0x1] }
 0x2fe   : > { %2213 = vst.msk [vmem:[#allocation2 + $0x108] sm:$0x1] %vm2201_vm0, %v2194_v27  ;;  %2214 = vst.msk [vmem:[#allocation2 + $0x120] sm:$0x1] %vm2201_vm0, %v2195_v61  ;;  %v5573_v33 = vld [vmem:[#allocation2 + $0x30] sm:$0xff]  ;;  %v5621_v37 = vld [vmem:[#allocation2 + $0x68] sm:$0xff] }
 0x2ff   : > { %v2199_v1 = vld [vmem:[#allocation2 + $0x182] sm:$0x1]  ;;  %2181 = vst.msk [vmem:[#allocation2 + $0x199] sm:$0xff] %vm1363_vm7, %v2178_v0  ;;  %v5580_v4 = vpack.c.bf16 %v5565_v32, %v5573_v33  ;;  %v2228_v19 = vld [vmem:[#allocation2 + $0xcf] sm:$0x1]  ;;  %v5638_v5 = vld [vmem:[#allocation2 + $0x98] sm:$0xff] }
 0x300   : > { %2215 = vst.msk [vmem:[#allocation2 + $0x138] sm:$0x1] %vm2201_vm0, %v2196_v50  ;;  %2216 = vst.msk [vmem:[#allocation2 + $0x150] sm:$0x1] %vm2201_vm0, %v2197_v41  ;;  %v5586_v63 = vld [vmem:[#allocation2 + $0x18] sm:$0xff]  ;;  %v2396_v11 = vrot.slane %v5621_v37, 1 }
 0x301   : > { %2217 = vst.msk [vmem:[#allocation2 + $0x168] sm:$0x1] %vm2201_vm0, %v2198_v40  ;;  %2218 = vst.msk [vmem:[#allocation2 + $0x180] sm:$0x1] %vm2201_vm0, %v2199_v1  ;;  %2786 = vrot.lane.b32.xlu1 %v5580_v4, %s4172_s27  ;;  %v5594_v48 = vpack.c.bf16 %v5582_v18, %v5586_v63  ;;  %v5596_v7 = vld [vmem:[#allocation2 + $0x48] sm:$0xff]  ;;  %v5603_v20 = vld [vmem:[#allocation2 + $0x60] sm:$0xff] }
 0x302   : > { %2241 = vst.msk [vmem:[#allocation2 + $0x59] sm:$0x1] %vm2201_vm0, %v2223_v44  ;;  %2242 = vst.msk [vmem:[#allocation2 + $0x71] sm:$0x1] %vm2201_vm0, %v2224_v34  ;;  %v2229_v51 = vld [vmem:[#allocation2 + $0xe7] sm:$0x1]  ;;  %v5609_v35 = vpack.c.bf16 %v5598_v29, %v5596_v7  ;;  %v5627_v25 = vpack.c.bf16 %v5621_v37, %v5603_v20 }
 0x303   : > { %2243 = vst.msk [vmem:[#allocation2 + $0x89] sm:$0x1] %vm2201_vm0, %v2225_v54  ;;  %2244 = vst.msk [vmem:[#allocation2 + $0xa1] sm:$0x1] %vm2201_vm0, %v2226_v14  ;;  %2784 = vrot.lane.b32.xlu0 %v5594_v48, %s4172_s27  ;;  %v2230_v21 = vld [vmem:[#allocation2 + $0xff] sm:$0x1] }
 0x304   : > { %2245 = vst.msk [vmem:[#allocation2 + $0xb9] sm:$0x1] %vm2201_vm0, %v2227_v3  ;;  %v2231_v10 = vld [vmem:[#allocation2 + $0x117] sm:$0x1]  ;;  %v2232_v60 = vld [vmem:[#allocation2 + $0x12f] sm:$0x1] }
 0x305   : > { %2246 = vst.msk [vmem:[#allocation2 + $0xd1] sm:$0x1] %vm2201_vm0, %v2228_v19  ;;  %2247 = vst.msk [vmem:[#allocation2 + $0xe9] sm:$0x1] %vm2201_vm0, %v2229_v51  ;;  %v2233_v62 = vld [vmem:[#allocation2 + $0x147] sm:$0x1]  ;;  %2885 = vrot.lane.b32.xlu1 %v5609_v35, %s4177_s12 }
 0x306   : > { %v2234_v8 = vld [vmem:[#allocation2 + $0x15f] sm:$0x1]  ;;  %v2236_v38 = vld [vmem:[#allocation2 + $0x18f] sm:$0x1]  ;;  %2248 = vst.msk [vmem:[#allocation2 + $0x101] sm:$0x1] %vm2201_vm0, %v2230_v21 }
 0x307   : > { %2249 = vst.msk [vmem:[#allocation2 + $0x119] sm:$0x1] %vm2201_vm0, %v2231_v10  ;;  %2250 = vst.msk [vmem:[#allocation2 + $0x131] sm:$0x1] %vm2201_vm0, %v2232_v60  ;;  %2883 = vrot.lane.b32.xlu0 %v5580_v4, %s4177_s12  ;;  %v5629_v39 = vld [vmem:[#allocation2 + $0x78] sm:$0xff]  ;;  %v2395_v52 = vrot.slane %v5603_v20, 1 }
 0x308   : > { %2251 = vst.msk [vmem:[#allocation2 + $0x149] sm:$0x1] %vm2201_vm0, %v2233_v62  ;;  %2252 = vst.msk [vmem:[#allocation2 + $0x161] sm:$0x1] %vm2201_vm0, %v2234_v8  ;;  %v5636_v57 = vld [vmem:[#allocation2 + $0x90] sm:$0xff]  ;;  %v2524_v6 = vrot.slane %v5603_v20, 2  ;;  %v5647_v15 = vpack.c.bf16 %v5633_v36, %v5629_v39 }
 0x309   : > { %2254 = vst.msk [vmem:[#allocation2 + $0x191] sm:$0x1] %vm2201_vm0, %v2236_v38  ;;  %2790 = vrot.lane.b32.xlu1 %v5627_v25, %s4172_s27  ;;  %v2525_v58 = vrot.slane %v5621_v37, 2  ;;  %v5649_v59 = vld [vmem:[#allocation2 + $0xa8] sm:$0xff]  ;;  %v5651_v22 = vld [vmem:[#allocation2 + $0xb0] sm:$0xff]  ;;  %v2400_v49 = vrot.slane %v5629_v39, 1  ;;  %v5663_v47 = vpack.c.bf16 %v5638_v5, %v5636_v57  ;;  %v2397_v14 = vsel %vm2374_vm1, %v2395_v52, %v2396_v11 }
 0x30a   : > { %v2401_v2 = vrot.slane %v5633_v36, 1  ;;  %v2529_v30 = vrot.slane %v5629_v39, 2  ;;  %v2530_v9 = vrot.slane %v5633_v36, 2  ;;  %v5657_v45 = vld [vmem:[#allocation2 + $0xc0] sm:$0xff]  ;;  %v2405_v12 = vrot.slane %v5636_v57, 1  ;;  %v5668_v42 = vld [vmem:[#allocation2 + $0xc8] sm:$0xff] }
 0x30b   : > { %2788 = vrot.lane.b32.xlu0 %v5609_v35, %s4172_s27  ;;  %v2406_v13 = vrot.slane %v5638_v5, 1  ;;  %v2534_v53 = vrot.slane %v5636_v57, 2  ;;  %v5670_v46 = vld [vmem:[#allocation2 + $0xd8] sm:$0xff]  ;;  %v2535_v16 = vrot.slane %v5638_v5, 2  ;;  %v5675_v17 = vpack.c.bf16 %v5651_v22, %v5649_v59  ;;  %v5679_v43 = vld [vmem:[#allocation2 + $0xe0] sm:$0xff]  ;;  %v5690_v24 = vld [vmem:[#allocation2 + $0xf0] sm:$0xff] }
 0x30c   : > { %v2410_v26 = vrot.slane %v5649_v59, 1  ;;  %v2411_v28 = vrot.slane %v5651_v22, 1  ;;  %v2540_v31 = vrot.slane %v5651_v22, 2  ;;  %v5687_v55 = vpack.c.bf16 %v5668_v42, %v5657_v45  ;;  %v5692_v27 = vld [vmem:[#allocation2 + $0xf8] sm:$0xff]  ;;  %v5701_v40 = vld [vmem:[#allocation2 + $0x108] sm:$0xff]  ;;  %v5709_v3 = vld [vmem:[#allocation2 + $0x110] sm:$0xff] }
 0x30d   : > { %2889 = vrot.lane.b32.xlu1 %v5647_v15, %s4177_s12  ;;  %v5699_v41 = vpack.c.bf16 %v5679_v43, %v5670_v46  ;;  %v2270_v1 = vld [vmem:[#allocation2 + $0x70] sm:$0x3]  ;;  %v5711_v19 = vld [vmem:[#allocation2 + $0x120] sm:$0xff]  ;;  %v5715_v51 = vpack.c.bf16 %v5692_v27, %v5690_v24  ;;  %v5720_v62 = vld [vmem:[#allocation2 + $0x128] sm:$0xff]  ;;  %v5741_v38 = vpack.c.bf16 %v5709_v3, %v5701_v40  ;;  %v2526_v61 = vsel %vm2503_vm2, %v2524_v6, %v2525_v58 }
 0x30e   : > { %v5726_v54 = vld [vmem:[#allocation2 + $0x138] sm:$0xff]  ;;  %v2398_v21 = vrot.slane %v2270_v1, 1  ;;  %v5735_v0 = vld [vmem:[#allocation2 + $0x140] sm:$0xff]  ;;  %v5745_v52 = vpack.c.bf16 %v5720_v62, %v5711_v19  ;;  %v2273_v44 = vld [vmem:[#allocation2 + $0x88] sm:$0x3]  ;;  %v2402_v20 = vsel %vm2374_vm1, %v2400_v49, %v2401_v2  ;;  %v2407_v49 = vsel %vm2374_vm1, %v2405_v12, %v2406_v13 }
 0x30f   : > { %2887 = vrot.lane.b32.xlu0 %v5627_v25, %s4177_s12  ;;  %v2183_v8 = vld [vmem:[#allocation2 + $0x2] sm:$0x1]  ;;  %v2276_v23 = vld [vmem:[#allocation2 + $0xa0] sm:$0x3]  ;;  %v2220_v60 = vld [vmem:[#allocation2 + $0xf] sm:$0x1]  ;;  %v2412_v36 = vsel %vm2374_vm1, %v2410_v26, %v2411_v28 }
 0x310   : > { %v2399_v56 = vsel %vm2374_vm1, %v2396_v11, %v2398_v21  ;;  %2202 = vst.msk [vmem:[#allocation2] sm:$0x1] %vm2201_vm0, %v2183_v8  ;;  %v2441_v34 = vrot.slane %v5735_v0, 1  ;;  %v2527_v11 = vrot.slane %v2270_v1, 2  ;;  %2238 = vst.msk [vmem:[#allocation2 + $0x11] sm:$0x1] %vm2201_vm0, %v2220_v60  ;;  %v2531_v8 = vsel %vm2503_vm2, %v2529_v30, %v2530_v9 }
 0x311   : > { %2794 = vrot.lane.b32.xlu1 %v5663_v47, %s4172_s27  ;;  %v5764_v10 = vpack.c.bf16 %v2399_v56, %v2397_v14  ;;  %v2200_v21 = vld [vmem:[#allocation2 + $0x19a] sm:$0x1]  ;;  %v2403_v6 = vrot.slane %v2273_v44, 1  ;;  %v2532_v50 = vrot.slane %v2273_v44, 2  ;;  %v2237_v56 = vld [vmem:[#allocation2 + $0x1a7] sm:$0x1]  ;;  %v2536_v30 = vsel %vm2503_vm2, %v2534_v53, %v2535_v16 }
 0x312   : > { %2219 = vst.msk [vmem:[#allocation2 + $0x198] sm:$0x1] %vm2201_vm0, %v2200_v21  ;;  %v2528_v1 = vsel %vm2503_vm2, %v2525_v58, %v2527_v11  ;;  %v2408_v39 = vrot.slane %v2276_v23, 1  ;;  %v2279_v44 = vld [vmem:[#allocation2 + $0xb8] sm:$0x3]  ;;  %v2537_v12 = vrot.slane %v2276_v23, 2 }
 0x313   : > { %2792 = vrot.lane.b32.xlu0 %v5647_v15, %s4172_s27  ;;  %2255 = vst.msk [vmem:[#allocation2 + $0x1a9] sm:$0x1] %vm2201_vm0, %v2237_v56  ;;  %v5794_v14 = vpack.c.bf16 %v2528_v1, %v2526_v61  ;;  %v2404_v37 = vsel %vm2374_vm1, %v2401_v2, %v2403_v6  ;;  %v2533_v58 = vsel %vm2503_vm2, %v2530_v9, %v2532_v50  ;;  %v2282_v60 = vld [vmem:[#allocation2 + $0xd0] sm:$0x3]  ;;  %v2413_v23 = vrot.slane %v2279_v44, 1 }
 0x314   : > { %v5804_v57 = vpack.c.bf16 %v2404_v37, %v2402_v20  ;;  %v5806_v53 = vpack.c.bf16 %v2533_v58, %v2531_v8  ;;  %v2409_v61 = vsel %vm2374_vm1, %v2406_v13, %v2408_v39  ;;  %v2538_v9 = vsel %vm2503_vm2, %v2535_v16, %v2537_v12  ;;  %v2285_v13 = vld [vmem:[#allocation2 + $0xe8] sm:$0x3] }
 0x315   : > { %2893 = vrot.lane.b32.xlu1 %v5675_v17, %s4177_s12  ;;  %v5816_v2 = vpack.c.bf16 %v2409_v61, %v2407_v49  ;;  %v7021_v50 = vrot.slane %v5649_v59, 2  ;;  %v5828_v21 = vpack.c.bf16 %v2538_v9, %v2536_v30  ;;  %v2542_v26 = vrot.slane %v2279_v44, 2 }
 0x316   : > { %v7022_v20 = vrot.slane %v5668_v42, 1  ;;  %v7023_v5 = vrot.slane %v5657_v45, 1  ;;  %v2418_v6 = vrot.slane %v2282_v60, 1  ;;  %v2414_v59 = vsel %vm2374_vm1, %v2411_v28, %v2413_v23 }
 0x317   : > { %2891 = vrot.lane.b32.xlu0 %v5663_v47, %s4177_s12  ;;  %v2541_v11 = vsel %vm2503_vm2, %v7021_v50, %v2540_v31  ;;  %v7024_v8 = vrot.slane %v5668_v42, 2  ;;  %v7025_v56 = vrot.slane %v5657_v45, 2  ;;  %v2547_v49 = vrot.slane %v2282_v60, 2  ;;  %v2288_v60 = vld [vmem:[#allocation2 + $0x100] sm:$0x3] }
 0x318   : > { %v2417_v16 = vsel %vm2374_vm1, %v7023_v5, %v7022_v20  ;;  %v7026_v39 = vrot.slane %v5679_v43, 1  ;;  %v7027_v30 = vrot.slane %v5670_v46, 1  ;;  %v5850_v37 = vpack.c.bf16 %v2414_v59, %v2412_v36 }
 0x319   : > { %2798 = vrot.lane.b32.xlu1 %v5687_v55, %s4172_s27  ;;  %v2546_v1 = vsel %vm2503_vm2, %v7025_v56, %v7024_v8  ;;  %v2543_v28 = vsel %vm2503_vm2, %v2540_v31, %v2542_v26  ;;  %v7028_v45 = vmov %v7022_v20  ;;  %v2423_v12 = vrot.slane %v2285_v13, 1  ;;  %v2291_v26 = vld [vmem:[#allocation2 + $0x118] sm:$0x3] }
 0x31a   : > { %v2422_v44 = vsel %vm2374_vm1, %v7027_v30, %v7026_v39  ;;  %v2419_v58 = vsel %vm2374_vm1, %v7028_v45, %v2418_v6  ;;  %v5858_v61 = vpack.c.bf16 %v2543_v28, %v2541_v11  ;;  %v7029_v23 = vmov %v7024_v8 }
 0x31b   : > { %2796 = vrot.lane.b32.xlu0 %v5675_v17, %s4172_s27  ;;  %v5860_v9 = vpack.c.bf16 %v2419_v58, %v2417_v16  ;;  %v2548_v50 = vsel %vm2503_vm2, %v7029_v23, %v2547_v49  ;;  %v7030_v36 = vrot.slane %v5679_v43, 2  ;;  %v7031_v22 = vrot.slane %v5670_v46, 2  ;;  %v2294_v23 = vld [vmem:[#allocation2 + $0x130] sm:$0x3] }
 0x31c   : > { %v5872_v20 = vpack.c.bf16 %v2548_v50, %v2546_v1  ;;  %v7032_v11 = vmov %v7026_v39  ;;  %v2552_v16 = vrot.slane %v2285_v13, 2  ;;  %v7033_v42 = vrot.slane %v5692_v27, 1 }
 0x31d   : > { %2897 = vrot.lane.b32.xlu1 %v5699_v41, %s4177_s12  ;;  %v2551_v31 = vsel %vm2503_vm2, %v7031_v22, %v7030_v36  ;;  %v2424_v5 = vsel %vm2374_vm1, %v7032_v11, %v2423_v12  ;;  %v7034_v6 = vrot.slane %v5690_v24, 1  ;;  %v2428_v8 = vrot.slane %v2288_v60, 1 }
 0x31e   : > { %v5882_v46 = vpack.c.bf16 %v2424_v5, %v2422_v44  ;;  %v7035_v56 = vrot.slane %v5692_v27, 2  ;;  %v7036_v49 = vrot.slane %v5690_v24, 2  ;;  %v2557_v39 = vrot.slane %v2288_v60, 2 }
 0x31f   : > { %2895 = vrot.lane.b32.xlu0 %v5687_v55, %s4177_s12  ;;  %v2427_v59 = vsel %vm2374_vm1, %v7034_v6, %v7033_v42  ;;  %v7037_v13 = vmov %v7030_v36  ;;  %v7038_v28 = vrot.slane %v5709_v3, 1  ;;  %v7039_v44 = vrot.slane %v5701_v40, 1 }
 0x320   : > { %v2556_v1 = vsel %vm2503_vm2, %v7036_v49, %v7035_v56  ;;  %v2553_v30 = vsel %vm2503_vm2, %v7037_v13, %v2552_v16  ;;  %v2433_v58 = vrot.slane %v2291_v26, 1  ;;  %v7040_v12 = vrot.slane %v5709_v3, 2  ;;  %v2297_v16 = vld [vmem:[#allocation2 + $0x148] sm:$0x3] }
 0x321   : > { %2802 = vrot.lane.b32.xlu1 %v5715_v51, %s4172_s27  ;;  %v2432_v45 = vsel %vm2374_vm1, %v7039_v44, %v7038_v28  ;;  %v7041_v24 = vrot.slane %v5701_v40, 2  ;;  %v5904_v50 = vpack.c.bf16 %v2553_v30, %v2551_v31  ;;  %v7042_v43 = vmov %v7033_v42  ;;  %v2261_v42 = vld [vmem:[#allocation2 + $0x28] sm:$0x3] }
 0x322   : > { %v2429_v36 = vsel %vm2374_vm1, %v7042_v43, %v2428_v8  ;;  %v7043_v22 = vmov %v7035_v56  ;;  %v2562_v5 = vrot.slane %v2291_v26, 2  ;;  %v7044_v31 = vmov %v7038_v28 }
 0x323   : > { %2800 = vrot.lane.b32.xlu0 %v5699_v41, %s4172_s27  ;;  %v2561_v60 = vsel %vm2503_vm2, %v7041_v24, %v7040_v12  ;;  %v2558_v11 = vsel %vm2503_vm2, %v7043_v22, %v2557_v39  ;;  %v5914_v40 = vpack.c.bf16 %v2429_v36, %v2427_v59  ;;  %v2434_v56 = vsel %vm2374_vm1, %v7044_v31, %v2433_v58 }
 0x324   : > { %v5916_v6 = vpack.c.bf16 %v2558_v11, %v2556_v1  ;;  %v7045_v8 = vrot.slane %v5720_v62, 1  ;;  %v7046_v27 = vrot.slane %v5711_v19, 1  ;;  %v5926_v26 = vpack.c.bf16 %v2434_v56, %v2432_v45 }
 0x325   : > { %2901 = vrot.lane.b32.xlu1 %v5741_v38, %s4177_s12  ;;  %v7047_v39 = vmov %v7040_v12  ;;  %v2438_v59 = vrot.slane %v2294_v23, 1  ;;  %v7048_v1 = vrot.slane %v5720_v62, 2  ;;  %v7049_v30 = vrot.slane %v5711_v19, 2 }
 0x326   : > { %v2437_v49 = vsel %vm2374_vm1, %v7046_v27, %v7045_v8  ;;  %v2563_v13 = vsel %vm2503_vm2, %v7047_v39, %v2562_v5  ;;  %v2567_v58 = vrot.slane %v2294_v23, 2  ;;  %v7050_v45 = vrot.slane %v5726_v54, 1 }
 0x327   : > { %v2566_v28 = vsel %vm2503_vm2, %v7049_v30, %v7048_v1  ;;  %2899 = vrot.lane.b32.xlu0 %v5715_v51, %s4177_s12  ;;  %v5938_v44 = vpack.c.bf16 %v2563_v13, %v2561_v60  ;;  %v2443_v12 = vrot.slane %v2297_v16, 1  ;;  %v2380_v24 = vrot.slane %v5586_v63, 1 }
 0x328   : > { %v2442_v3 = vsel %vm2374_vm1, %v7050_v45, %v2441_v34  ;;  %v2383_v43 = vrot.slane %v2261_v42, 1  ;;  %v7051_v19 = vmov %v7045_v8  ;;  %v2570_v60 = vrot.slane %v5735_v0, 2 }
 0x329   : > { %v2439_v36 = vsel %vm2374_vm1, %v7051_v19, %v2438_v59  ;;  %2806 = vrot.lane.b32.xlu1 %v5745_v52, %s4172_s27  ;;  %v7052_v22 = vmov %v7048_v1  ;;  %v2444_v5 = vsel %vm2374_vm1, %v2441_v34, %v2443_v12  ;;  %v2381_v31 = vrot.slane %v5582_v18, 1 }
 0x32a   : > { %v5952_v23 = vpack.c.bf16 %v2439_v36, %v2437_v49  ;;  %v2568_v11 = vsel %vm2503_vm2, %v7052_v22, %v2567_v58  ;;  %v5963_v8 = vpack.c.bf16 %v2444_v5, %v2442_v3  ;;  %v2509_v27 = vrot.slane %v5586_v63, 2  ;;  %v2264_v63 = vld [vmem:[#allocation2 + $0x40] sm:$0x3]  ;;  %v2267_v36 = vld [vmem:[#allocation2 + $0x58] sm:$0x3] }
 0x32b   : > { %v5961_v56 = vpack.c.bf16 %v2568_v11, %v2566_v28  ;;  %2804 = vrot.lane.b32.xlu0 %v5741_v38, %s4172_s27  ;;  %v5970_v62 = vpack.c.bf16 %v5735_v0, %v5726_v54  ;;  %v7053_v49 = vrot.slane %v5726_v54, 2  ;;  %v2382_v34 = vsel %vm2374_vm1, %v2380_v24, %v2381_v31  ;;  %v5996_v22 = vld [vmem:[#allocation2] sm:$0xff] }
 0x32c   : > { %v2384_v13 = vsel %vm2374_vm1, %v2381_v31, %v2383_v43  ;;  %v2512_v59 = vrot.slane %v2261_v42, 2  ;;  %v2572_v1 = vrot.slane %v2297_v16, 2  ;;  %v2510_v30 = vrot.slane %v5582_v18, 2 }
 0x32d   : > { %v2571_v39 = vsel %vm2503_vm2, %v7053_v49, %v2570_v60  ;;  %2905 = vrot.lane.b32.xlu1 %v5970_v62, %s4177_s12  ;;  %v2488_v0 = vpack.c.bf16 %v2384_v13, %v2382_v34  ;;  %v2385_v58 = vrot.slane %v5573_v33, 1  ;;  %v2388_v42 = vrot.slane %v2264_v63, 1  ;;  %v6002_v49 = vld [vmem:[#allocation2 + $0x8] sm:$0xff] }
 0x32e   : > { %v2573_v28 = vsel %vm2503_vm2, %v2570_v60, %v2572_v1  ;;  %v2511_v45 = vsel %vm2503_vm2, %v2509_v27, %v2510_v30  ;;  %v2513_v16 = vsel %vm2503_vm2, %v2510_v30, %v2512_v59  ;;  %v2386_v3 = vrot.slane %v5565_v32, 1 }
 0x32f   : > { %2903 = vrot.lane.b32.xlu0 %v5745_v52, %s4177_s12  ;;  %v5983_v54 = vpack.c.bf16 %v2573_v28, %v2571_v39  ;;  %v2617_v18 = vpack.c.bf16 %v2513_v16, %v2511_v45  ;;  %v2514_v12 = vrot.slane %v5573_v33, 2  ;;  %v2517_v19 = vrot.slane %v2264_v63, 2 }
 0x330   : > { %v2387_v24 = vsel %vm2374_vm1, %v2385_v58, %v2386_v3  ;;  %v2389_v43 = vsel %vm2374_vm1, %v2386_v3, %v2388_v42  ;;  %v2515_v60 = vrot.slane %v5565_v32, 2  ;;  %v2390_v5 = vrot.slane %v5596_v7, 1 }
 0x331   : > { %2690 = vrot.lane.b32.xlu1 %v2488_v0, %s4175_s30  ;;  %v2489_v11 = vpack.c.bf16 %v2389_v43, %v2387_v24  ;;  %v2393_v27 = vrot.slane %v2267_v36, 1  ;;  %v2310_v39 = vpack.c.bf16 %v6002_v49, %v5996_v22  ;;  %v2391_v32 = vrot.slane %v5598_v29, 1 }
 0x332   : > { %v2516_v31 = vsel %vm2503_vm2, %v2514_v12, %v2515_v60  ;;  %v2518_v33 = vsel %vm2503_vm2, %v2515_v60, %v2517_v19  ;;  %v2519_v34 = vrot.slane %v5596_v7, 2  ;;  %v2522_v13 = vrot.slane %v2267_v36, 2 }
 0x333   : > { %2817 = vrot.lane.b32.xlu0 %v2488_v0, %s4176_s11  ;;  %v2618_v59 = vpack.c.bf16 %v2518_v33, %v2516_v31  ;;  %v2520_v1 = vrot.slane %v5598_v29, 2  ;;  %v2392_v63 = vsel %vm2374_vm1, %v2390_v5, %v2391_v32  ;;  %v2394_v30 = vsel %vm2374_vm1, %v2391_v32, %v2393_v27 }
 0x334   : > { %v2490_v58 = vpack.c.bf16 %v2394_v30, %v2392_v63  ;;  %v2375_v30 = vrot.slane %v5996_v22, 1 }
 0x335   : > { %2738 = vrot.lane.b32.xlu1 %v2617_v18, %s4174_s29  ;;  %v2521_v28 = vsel %vm2503_vm2, %v2519_v34, %v2520_v1  ;;  %v2523_v0 = vsel %vm2503_vm2, %v2520_v1, %v2522_v13  ;;  %v2258_v1 = vld [vmem:[#allocation2 + $0x10] sm:$0x3] }
 0x336   : > { %v2619_v7 = vpack.c.bf16 %v2523_v0, %v2521_v28  ;;  %v2378_v28 = vrot.slane %v2258_v1, 1 }
 0x337   : > { %2850 = vrot.lane.b32.xlu0 %v2617_v18, %s4173_s28 }
 0x339   : > { %2819 = vrot.lane.b32.xlu1 %v2489_v11, %s4176_s11 }
 0x33b   : > { %2916 = vrot.lane.b32.xlu0 %v2489_v11, %s4178_s13 }
 0x33d   : > { %2852 = vrot.lane.b32.xlu1 %v2618_v59, %s4173_s28 }
 0x33f   : > { %2949 = vrot.lane.b32.xlu0 %v2618_v59, %s4179_s14 }
 0x341   : > { %2918 = vrot.lane.b32.xlu1 %v2490_v58, %s4178_s13 }
 0x343   : > { %2951 = vrot.lane.b32.xlu0 %v2619_v7, %s4179_s14 }
 0x345   : > { %2692 = vrot.lane.b32.xlu1 %v2489_v11, %s4175_s30 }
 0x347   : > { %2740 = vrot.lane.b32.xlu0 %v2618_v59, %s4174_s29 }
 0x349   : > { %2694 = vrot.lane.b32.xlu1 %v2490_v58, %s4175_s30 }
 0x34b   : > { %2821 = vrot.lane.b32.xlu0 %v2490_v58, %s4176_s11 }
 0x34d   : > { %2742 = vrot.lane.b32.xlu1 %v2619_v7, %s4174_s29 }
 0x34f   : > { %2854 = vrot.lane.b32.xlu0 %v2619_v7, %s4173_s28  ;;  %v2376_v7 = vrot.slane %v6002_v49, 1 }
 0x351   : > { %2823 = vrot.lane.b32.xlu1 %v5764_v10, %s4176_s11 }
 0x353   : > { %2920 = vrot.lane.b32.xlu0 %v5764_v10, %s4178_s13 }
 0x355   : > { %2856 = vrot.lane.b32.xlu1 %v5794_v14, %s4173_s28 }
 0x357   : > { %2953 = vrot.lane.b32.xlu0 %v5794_v14, %s4179_s14 }
 0x359   : > { %2922 = vrot.lane.b32.xlu1 %v5804_v57, %s4178_s13 }
 0x35b   : > { %2955 = vrot.lane.b32.xlu0 %v5806_v53, %s4179_s14 }
 0x35d   : > { %2696 = vrot.lane.b32.xlu1 %v5764_v10, %s4175_s30 }
 0x35f   : > { %2744 = vrot.lane.b32.xlu0 %v5794_v14, %s4174_s29 }
 0x361   : > { %2698 = vrot.lane.b32.xlu1 %v5804_v57, %s4175_s30 }
 0x363   : > { %2825 = vrot.lane.b32.xlu0 %v5804_v57, %s4176_s11 }
 0x365   : > { %2746 = vrot.lane.b32.xlu1 %v5806_v53, %s4174_s29 }
 0x367   : > { %2858 = vrot.lane.b32.xlu0 %v5806_v53, %s4173_s28 }
 0x369   : > { %2827 = vrot.lane.b32.xlu1 %v5816_v2, %s4176_s11 }
 0x36b   : > { %2924 = vrot.lane.b32.xlu0 %v5816_v2, %s4178_s13 }
 0x36d   : > { %2860 = vrot.lane.b32.xlu1 %v5828_v21, %s4173_s28 }
 0x36f   : > { %2957 = vrot.lane.b32.xlu0 %v5828_v21, %s4179_s14 }
 0x371   : > { %2926 = vrot.lane.b32.xlu1 %v5850_v37, %s4178_s13 }
 0x373   : > { %2959 = vrot.lane.b32.xlu0 %v5858_v61, %s4179_s14  ;;  %v2787_v29 = vpop.permute.xlu1 %2786 }
 0x375   : > { %v6061_v10 = vpop.permute.xlu0 %2784  ;;  %2700 = vrot.lane.b32.xlu1 %v5816_v2, %s4175_s30 }
 0x377   : > { %2748 = vrot.lane.b32.xlu0 %v5828_v21, %s4174_s29  ;;  %v6067_v14 = vpop.permute.xlu1 %2885 }
 0x379   : > { %v6069_v57 = vpop.permute.xlu0 %2883  ;;  %2702 = vrot.lane.b32.xlu1 %v5850_v37, %s4175_s30 }
 0x37b   : > { %2829 = vrot.lane.b32.xlu0 %v5850_v37, %s4176_s11  ;;  %v6075_v53 = vpop.permute.xlu1 %2790 }
 0x37d   : > { %v6077_v45 = vpop.permute.xlu0 %2788  ;;  %2750 = vrot.lane.b32.xlu1 %v5858_v61, %s4174_s29 }
 0x37f   : > { %2862 = vrot.lane.b32.xlu0 %v5858_v61, %s4173_s28  ;;  %v6083_v2 = vpop.permute.xlu1 %2889 }
 0x381   : > { %v6085_v21 = vpop.permute.xlu0 %2887  ;;  %2831 = vrot.lane.b32.xlu1 %v5860_v9, %s4176_s11 }
 0x383   : > { %2928 = vrot.lane.b32.xlu0 %v5860_v9, %s4178_s13  ;;  %v6091_v37 = vpop.permute.xlu1 %2794 }
 0x385   : > { %v6093_v16 = vpop.permute.xlu0 %2792  ;;  %2864 = vrot.lane.b32.xlu1 %v5872_v20, %s4173_s28 }
 0x387   : > { %2961 = vrot.lane.b32.xlu0 %v5872_v20, %s4179_s14  ;;  %v6099_v61 = vpop.permute.xlu1 %2893 }
 0x389   : > { %v6101_v42 = vpop.permute.xlu0 %2891  ;;  %2930 = vrot.lane.b32.xlu1 %v5882_v46, %s4178_s13 }
 0x38b   : > { %2963 = vrot.lane.b32.xlu0 %v5904_v50, %s4179_s14  ;;  %v6107_v3 = vpop.permute.xlu1 %2798 }
 0x38d   : > { %v6109_v18 = vpop.permute.xlu0 %2796  ;;  %2704 = vrot.lane.b32.xlu1 %v5860_v9, %s4175_s30 }
 0x38f   : > { %2752 = vrot.lane.b32.xlu0 %v5872_v20, %s4174_s29  ;;  %v6115_v12 = vpop.permute.xlu1 %2897 }
 0x391   : > { %v6117_v24 = vpop.permute.xlu0 %2895  ;;  %2706 = vrot.lane.b32.xlu1 %v5882_v46, %s4175_s30 }
 0x393   : > { %2833 = vrot.lane.b32.xlu0 %v5882_v46, %s4176_s11  ;;  %v6123_v43 = vpop.permute.xlu1 %2802 }
 0x395   : > { %v6125_v19 = vpop.permute.xlu0 %2800  ;;  %2754 = vrot.lane.b32.xlu1 %v5904_v50, %s4174_s29 }
 0x397   : > { %2866 = vrot.lane.b32.xlu0 %v5904_v50, %s4173_s28  ;;  %v6131_v9 = vpop.permute.xlu1 %2901 }
 0x399   : > { %v6133_v20 = vpop.permute.xlu0 %2899  ;;  %2835 = vrot.lane.b32.xlu1 %v5914_v40, %s4176_s11 }
 0x39b   : > { %2932 = vrot.lane.b32.xlu0 %v5914_v40, %s4178_s13  ;;  %v6139_v46 = vpop.permute.xlu1 %2806 }
 0x39d   : > { %v6141_v36 = vpop.permute.xlu0 %2804  ;;  %2868 = vrot.lane.b32.xlu1 %v5916_v6, %s4173_s28 }
 0x39f   : > { %2965 = vrot.lane.b32.xlu0 %v5916_v6, %s4179_s14  ;;  %v6147_v50 = vpop.permute.xlu1 %2905 }
 0x3a1   : > { %v6149_v60 = vpop.permute.xlu0 %2903  ;;  %2934 = vrot.lane.b32.xlu1 %v5926_v26, %s4178_s13 }
 0x3a3   : > { %2967 = vrot.lane.b32.xlu0 %v5938_v44, %s4179_s14  ;;  %v2691_v11 = vpop.permute.xlu1 %2690 }
 0x3a4   : > { %v2986_v27 = vsel %vm1363_vm7, %v5594_v48, %v2691_v11 }
 0x3a5   : > { %v6155_v5 = vpop.permute.xlu0 %2817  ;;  %2708 = vrot.lane.b32.xlu1 %v5914_v40, %s4175_s30 }
 0x3a7   : > { %2756 = vrot.lane.b32.xlu0 %v5916_v6, %s4174_s29  ;;  %v2739_v31 = vpop.permute.xlu1 %2738  ;;  %v4157_v6 = vld [vmem:[%s7014_s4] sm:$0xff]  }
 0x3a8   : > { %v3032_v32 = vsel %vm1412_vm8, %v2986_v27, %v2739_v31  ;;  %4079 = vmatprep.subr.bf16.mxu1 %v4157_v6  ;;  %v2504_v31 = vrot.slane %v5996_v22, 2 }
 0x3a9   : > { %v6161_v33 = vpop.permute.xlu0 %2850  ;;  %2710 = vrot.lane.b32.xlu1 %v5926_v26, %s4175_s30  ;;  %v3064_v40 = vsel %vm1445_vm9, %v3032_v32, %v2787_v29  ;;  %4080 = vmatpush3.bf16.msra.mxu1 %v4157_v6  ;;  %v4158_v29 = vld [vmem:[%s7014_s4 + $0x8] sm:$0xff]   ;;  %v2377_v32 = vsel %vm2374_vm1, %v2375_v30, %v2376_v7 }
 0x3aa   : > { %4081 = vmatprep.subr.bf16.mxu1 %v4158_v29 }
 0x3ab   : > { %2837 = vrot.lane.b32.xlu0 %v5926_v26, %s4176_s11  ;;  %v2820_v34 = vpop.permute.xlu1 %2819 }
 0x3ac   : > { %v3096_v59 = vsel %vm1478_vm10, %v3064_v40, %v2820_v34  ;;  %v2507_v34 = vrot.slane %v2258_v1, 2  ;;  %v4159_v40 = vld [vmem:[%s7014_s4 + $0x10] ss:$0 sps:$4 sm:$0x33]  }
 0x3ad   : > { %v6170_v13 = vpop.permute.xlu0 %2916  ;;  %2758 = vrot.lane.b32.xlu1 %v5938_v44, %s4174_s29  ;;  %4082 = vmatpush3.bf16.msra.mxu1 %v4158_v29 }
 0x3ae   : > { %4118 = vmatprep.subr.msk.bf16.mxu1 %vm1703_vm6, %v4159_v40 }
 0x3af   : > { %2870 = vrot.lane.b32.xlu0 %v5938_v44, %s4173_s28  ;;  %v2853_v48 = vpop.permute.xlu1 %2852 }
 0x3b0   : > { %v3128_v26 = vsel %vm1511_vm11, %v3096_v59, %v2853_v48  ;;  %v2505_v48 = vrot.slane %v6002_v49, 2 }
 0x3b1   : > { %v6182_v63 = vpop.permute.xlu0 %2949  ;;  %2839 = vrot.lane.b32.xlu1 %v5952_v23, %s4176_s11  ;;  %v3160_v44 = vsel %vm1544_vm12, %v3128_v26, %v6067_v14  ;;  %v2379_v14 = vsel %vm2374_vm1, %v2376_v7, %v2378_v28  ;;  %v3313_v26 = vsel %vm1703_vm6, %v4159_v40, 0  ;;  %v2300_v40 = vld [vmem:[#allocation2 + $0x160] sm:$0x3] }
 0x3b2   : > { %v2487_v30 = vpack.c.bf16 %v2379_v14, %v2377_v32  ;;  %4084 = vmatpush3.bf16.msra.mxu1 %v3313_v26 }
 0x3b3   : > { %2936 = vrot.lane.b32.xlu0 %v5952_v23, %s4178_s13  ;;  %v2919_v0 = vpop.permute.xlu1 %2918 }
 0x3b4   : > { %v3192_v58 = vsel %vm1577_vm13, %v3160_v44, %v2919_v0  ;;  %v2506_v0 = vsel %vm2503_vm2, %v2504_v31, %v2505_v48  ;;  %v2508_v44 = vsel %vm2503_vm2, %v2505_v48, %v2507_v34 }
 0x3b5   : > { %v2952_v11 = vpop.permute.xlu0 %2951  ;;  %2872 = vrot.lane.b32.xlu1 %v5961_v56, %s4173_s28  ;;  %v2616_v29 = vpack.c.bf16 %v2508_v44, %v2506_v0 }
 0x3b6   : > { %v6200_v27 = vsel %vm1610_vm14, %v3192_v58, %v2952_v11 }
 0x3b7   : > { %2969 = vrot.lane.b32.xlu0 %v5961_v56, %s4179_s14  ;;  %v2693_v6 = vpop.permute.xlu1 %2692 }
 0x3b8   : > { %v2989_v59 = vsel %vm1363_vm7, %v5580_v4, %v2693_v6 }
 0x3b9   : > { %v2741_v1 = vpop.permute.xlu0 %2740  ;;  %2938 = vrot.lane.b32.xlu1 %v5963_v8, %s4178_s13 }
 0x3ba   : > { %v3034_v28 = vsel %vm1412_vm8, %v2989_v59, %v2741_v1  ;;  %v2299_v59 = vld [vmem:[#allocation2 + $0x158] sm:$0xff]  ;;  %v2448_v1 = vrot.slane %v2300_v40, 1 }
 0x3bb   : > { %2688 = vrot.lane.b32.xlu0 %v2487_v30, %s4175_s30  ;;  %v2695_v4 = vpop.permute.xlu1 %2694  ;;  %v3066_v58 = vsel %vm1445_vm9, %v3034_v28, %v6077_v45  ;;  %v2298_v45 = vld [vmem:[#allocation2 + $0x150] sm:$0xff]  ;;  %v2446_v44 = vrot.slane %v2299_v59, 1 }
 0x3bc   : > { %v2992_v32 = vsel %vm1363_vm7, %v5609_v35, %v2695_v4  ;;  %v2445_v26 = vrot.slane %v2298_v45, 1  ;;  %v6244_v4 = vpack.c.bf16 %v2299_v59, %v2298_v45 }
 0x3bd   : > { %v2822_v7 = vpop.permute.xlu0 %2821  ;;  %2712 = vrot.lane.b32.xlu1 %v5952_v23, %s4175_s30 }
 0x3be   : > { %v3098_v11 = vsel %vm1478_vm10, %v3066_v58, %v2822_v7  ;;  %v2574_v58 = vrot.slane %v2298_v45, 2 }
 0x3bf   : > { %2736 = vrot.lane.b32.xlu0 %v2616_v29, %s4174_s29  ;;  %v2743_v31 = vpop.permute.xlu1 %2742  ;;  %v2447_v29 = vsel %vm2374_vm1, %v2445_v26, %v2446_v44  ;;  %v2303_v26 = vld [vmem:[#allocation2 + $0x178] sm:$0x3] }
 0x3c0   : > { %v3036_v14 = vsel %vm1412_vm8, %v2992_v32, %v2743_v31 }
 0x3c1   : > { %v2855_v34 = vpop.permute.xlu0 %2854  ;;  %2714 = vrot.lane.b32.xlu1 %v5963_v8, %s4175_s30  ;;  %v3068_v23 = vsel %vm1445_vm9, %v3036_v14, %v6075_v53  ;;  %v2575_v14 = vrot.slane %v2299_v59, 2 }
 0x3c2   : > { %v3130_v6 = vsel %vm1511_vm11, %v3098_v11, %v2855_v34  ;;  %v2577_v11 = vrot.slane %v2300_v40, 2 }
 0x3c3   : > { %2971 = vrot.lane.b32.xlu0 %v5983_v54, %s4179_s14  ;;  %v2824_v35 = vpop.permute.xlu1 %2823  ;;  %v3162_v30 = vsel %vm1544_vm12, %v3130_v6, %v6085_v21  ;;  %v2449_v21 = vsel %vm2374_vm1, %v2446_v44, %v2448_v1  ;;  %v2576_v40 = vsel %vm2503_vm2, %v2574_v58, %v2575_v14  ;;  %v2453_v44 = vrot.slane %v2303_v26, 1 }
 0x3c4   : > { %v3100_v48 = vsel %vm1478_vm10, %v3068_v23, %v2824_v35  ;;  %v2501_v45 = vpack.c.bf16 %v2449_v21, %v2447_v29  ;;  %v2578_v23 = vsel %vm2503_vm2, %v2575_v14, %v2577_v11 }
 0x3c5   : > { %v2921_v28 = vpop.permute.xlu0 %2920  ;;  %2762 = vrot.lane.b32.xlu1 %v5983_v54, %s4174_s29  ;;  %v2630_v1 = vpack.c.bf16 %v2578_v23, %v2576_v40 }
 0x3c6   : > { %v3194_v0 = vsel %vm1577_vm13, %v3162_v30, %v2921_v28  ;;  %v2302_v30 = vld [vmem:[#allocation2 + $0x170] sm:$0xff] }
 0x3c7   : > { %2760 = vrot.lane.b32.xlu0 %v5961_v56, %s4174_s29  ;;  %v2857_v53 = vpop.permute.xlu1 %2856 }
 0x3c8   : > { %v3132_v7 = vsel %vm1511_vm11, %v3100_v48, %v2857_v53  ;;  %v2301_v48 = vld [vmem:[#allocation2 + $0x168] sm:$0xff] }
 0x3c9   : > { %v2954_v32 = vpop.permute.xlu0 %2953  ;;  %2810 = vrot.lane.b32.xlu1 %v6244_v4, %s4172_s27  ;;  %v3164_v56 = vsel %vm1544_vm12, %v3132_v7, %v6083_v2  ;;  %v2451_v7 = vrot.slane %v2302_v30, 1  ;;  %v6275_v21 = vpack.c.bf16 %v2302_v30, %v2301_v48  ;;  %v2579_v40 = vrot.slane %v2301_v48, 2 }
 0x3ca   : > { %v6252_v31 = vsel %vm1610_vm14, %v3194_v0, %v2954_v32  ;;  %v2450_v0 = vrot.slane %v2301_v48, 1 }
 0x3cb   : > { %2808 = vrot.lane.b32.xlu0 %v5970_v62, %s4172_s27  ;;  %v2923_v34 = vpop.permute.xlu1 %2922 }
 0x3cc   : > { %v3196_v6 = vsel %vm1577_vm13, %v3164_v56, %v2923_v34  ;;  %v2452_v11 = vsel %vm2374_vm1, %v2450_v0, %v2451_v7 }
 0x3cd   : > { %v2956_v35 = vpop.permute.xlu0 %2955  ;;  %2843 = vrot.lane.b32.xlu1 %v2501_v45, %s4176_s11 }
 0x3ce   : > { %v6263_v59 = vsel %vm1610_vm14, %v3196_v6, %v2956_v35  ;;  %v2582_v35 = vrot.slane %v2303_v26, 2 }
 0x3cf   : > { %2841 = vrot.lane.b32.xlu0 %v5963_v8, %s4176_s11  ;;  %v2697_v2 = vpop.permute.xlu1 %2696 }
 0x3d0   : > { %v2995_v28 = vsel %vm1363_vm7, %v5627_v25, %v2697_v2  ;;  %v2454_v25 = vsel %vm2374_vm1, %v2451_v7, %v2453_v44 }
 0x3d1   : > { %v2745_v53 = vpop.permute.xlu0 %2744  ;;  %2876 = vrot.lane.b32.xlu1 %v2630_v1, %s4173_s28 }
 0x3d2   : > { %v3038_v58 = vsel %vm1412_vm8, %v2995_v28, %v2745_v53  ;;  %v2580_v28 = vrot.slane %v2302_v30, 2 }
 0x3d3   : > { %2874 = vrot.lane.b32.xlu0 %v5983_v54, %s4173_s28  ;;  %v2699_v29 = vpop.permute.xlu1 %2698  ;;  %v3070_v8 = vsel %vm1445_vm9, %v3038_v58, %v6093_v16  ;;  %v6286_v16 = vpack.c.bf16 %v2454_v25, %v2452_v11 }
 0x3d4   : > { %v2998_v56 = vsel %vm1363_vm7, %v5647_v15, %v2699_v29  ;;  %v2581_v58 = vsel %vm2503_vm2, %v2579_v40, %v2580_v28  ;;  %v2583_v26 = vsel %vm2503_vm2, %v2580_v28, %v2582_v35 }
 0x3d5   : > { %v2826_v32 = vpop.permute.xlu0 %2825  ;;  %2909 = vrot.lane.b32.xlu1 %v6275_v21, %s4177_s12  ;;  %v2631_v29 = vpack.c.bf16 %v2583_v26, %v2581_v58 }
 0x3d6   : > { %v3102_v14 = vsel %vm1478_vm10, %v3070_v8, %v2826_v32  ;;  %v2306_v8 = vld [vmem:[#allocation2 + $0x190] sm:$0x3]  ;;  %v2305_v32 = vld [vmem:[#allocation2 + $0x188] sm:$0xff] }
 0x3d7   : > { %2907 = vrot.lane.b32.xlu0 %v6244_v4, %s4177_s12  ;;  %v2747_v54 = vpop.permute.xlu1 %2746  ;;  %v2637_v40 = vrot.slane %v2305_v32, 1 }
 0x3d8   : > { %v3040_v34 = vsel %vm1412_vm8, %v2998_v56, %v2747_v54  ;;  %v2639_v54 = vrot.slane %v2306_v8, 1 }
 0x3d9   : > { %v2859_v6 = vpop.permute.xlu0 %2858  ;;  %2942 = vrot.lane.b32.xlu1 %v6286_v16, %s4178_s13  ;;  %v3072_v15 = vsel %vm1445_vm9, %v3040_v34, %v6091_v37 }
 0x3da   : > { %v3134_v23 = vsel %vm1511_vm11, %v3102_v14, %v2859_v6  ;;  %v2640_v28 = vsel %vm2374_vm1, %v2637_v40, %v2639_v54 }
 0x3db   : > { %2940 = vrot.lane.b32.xlu0 %v2501_v45, %s4178_s13  ;;  %v2828_v2 = vpop.permute.xlu1 %2827  ;;  %v3166_v44 = vsel %vm1544_vm12, %v3134_v23, %v6101_v42  ;;  %v2304_v42 = vld [vmem:[#allocation2 + $0x180] sm:$0xff] }
 0x3dc   : > { %v3104_v0 = vsel %vm1478_vm10, %v3072_v15, %v2828_v2  ;;  %v2636_v56 = vrot.slane %v2304_v42, 1  ;;  %v2632_v35 = vpack.c.bf16 %v2305_v32, %v2304_v42  ;;  %v2644_v15 = vrot.slane %v2304_v42, 2  ;;  %v2309_v42 = vld [vmem:[#allocation2 + $0x1a8] sm:$0x3] }
 0x3dd   : > { %v2925_v53 = vpop.permute.xlu0 %2924  ;;  %2716 = vrot.lane.b32.xlu1 %v2501_v45, %s4175_s30  ;;  %v2659_v54 = vrot.slane %v2309_v42, 1 }
 0x3de   : > { %v3198_v48 = vsel %vm1577_vm13, %v3166_v44, %v2925_v53  ;;  %v2638_v2 = vsel %vm2374_vm1, %v2636_v56, %v2637_v40 }
 0x3df   : > { %2973 = vrot.lane.b32.xlu0 %v2630_v1, %s4179_s14  ;;  %v2861_v7 = vpop.permute.xlu1 %2860  ;;  %v2643_v26 = vpack.c.bf16 %v2640_v28, %v2638_v2 }
 0x3e0   : > { %v3136_v37 = vsel %vm1511_vm11, %v3104_v0, %v2861_v7  ;;  %v2647_v0 = vrot.slane %v2306_v8, 2 }
 0x3e1   : > { %v2958_v30 = vpop.permute.xlu0 %2957  ;;  %2718 = vrot.lane.b32.xlu1 %v6286_v16, %s4175_s30  ;;  %v3168_v11 = vsel %vm1544_vm12, %v3136_v37, %v6099_v61 }
 0x3e2   : > { %v6307_v45 = vsel %vm1610_vm14, %v3198_v48, %v2958_v30  ;;  %v2645_v48 = vrot.slane %v2305_v32, 2  ;;  %v2307_v30 = vld [vmem:[#allocation2 + $0x198] sm:$0xff]  ;;  %v2308_v32 = vld [vmem:[#allocation2 + $0x1a0] sm:$0xff] }
 0x3e3   : > { %2975 = vrot.lane.b32.xlu0 %v2631_v29, %s4179_s14  ;;  %v2927_v25 = vpop.permute.xlu1 %2926  ;;  %v2656_v56 = vrot.slane %v2307_v30, 1 }
 0x3e4   : > { %v3200_v14 = vsel %vm1577_vm13, %v3168_v11, %v2927_v25  ;;  %v2648_v7 = vsel %vm2503_vm2, %v2645_v48, %v2647_v0 }
 0x3e5   : > { %v2960_v34 = vpop.permute.xlu0 %2959  ;;  %2766 = vrot.lane.b32.xlu1 %v2631_v29, %s4174_s29 }
 0x3e6   : > { %v6315_v6 = vsel %vm1610_vm14, %v3200_v14, %v2960_v34 }
 0x3e7   : > { %2764 = vrot.lane.b32.xlu0 %v2630_v1, %s4174_s29  ;;  %v2701_v23 = vpop.permute.xlu1 %2700  ;;  %s4001_s29 = sshll.u32 %s7057_s22, 8 }
 0x3e8   : > { %v3001_v61 = vsel %vm1363_vm7, %v5663_v47, %v2701_v23  ;;  %v2646_v47 = vsel %vm2503_vm2, %v2644_v15, %v2645_v48  ;;  %v2657_v23 = vrot.slane %v2308_v32, 1  ;;  %s6810_s8 = scalar_lea.vmem %s7010_s0, %s4001_s29 }
 0x3e9   : > { %v2749_v44 = vpop.permute.xlu0 %2748  ;;  %2814 = vrot.lane.b32.xlu1 %v2632_v35, %s4172_s27 }
 0x3ea   : > { %v3042_v53 = vsel %vm1412_vm8, %v3001_v61, %v2749_v44  ;;  %v2664_v61 = vrot.slane %v2307_v30, 2  ;;  %v2658_v28 = vsel %vm2374_vm1, %v2656_v56, %v2657_v23  ;;  %v2660_v0 = vsel %vm2374_vm1, %v2657_v23, %v2659_v54 }
 0x3eb   : > { %2812 = vrot.lane.b32.xlu0 %v6275_v21, %s4172_s27  ;;  %v2703_v1 = vpop.permute.xlu1 %2702  ;;  %v3074_v58 = vsel %vm1445_vm9, %v3042_v53, %v6109_v18  ;;  %v2651_v18 = vpack.c.bf16 %v2648_v7, %v2646_v47  ;;  %v2667_v44 = vrot.slane %v2309_v42, 2 }
 0x3ec   : > { %v3004_v11 = vsel %vm1363_vm7, %v5675_v17, %v2703_v1  ;;  %v2665_v1 = vrot.slane %v2308_v32, 2 }
 0x3ed   : > { %v2830_v37 = vpop.permute.xlu0 %2829  ;;  %2847 = vrot.lane.b32.xlu1 %v2643_v26, %s4176_s11 }
 0x3ee   : > { %v3106_v8 = vsel %vm1478_vm10, %v3074_v58, %v2830_v37  ;;  %v2663_v58 = vpack.c.bf16 %v2660_v0, %v2658_v28  ;;  %v2666_v7 = vsel %vm2503_vm2, %v2664_v61, %v2665_v1  ;;  %v2668_v37 = vsel %vm2503_vm2, %v2665_v1, %v2667_v44 }
 0x3ef   : > { %2845 = vrot.lane.b32.xlu0 %v6286_v16, %s4176_s11  ;;  %v2751_v25 = vpop.permute.xlu1 %2750  ;;  %v2652_v16 = vpack.c.bf16 %v2308_v32, %v2307_v30  ;;  %s6891_s11 = scalar_lea.vmem %s7016_s6, %s4001_s29 }
 0x3f0   : > { %v3044_v14 = vsel %vm1412_vm8, %v3004_v11, %v2751_v25 }
 0x3f1   : > { %v2863_v34 = vpop.permute.xlu0 %2862  ;;  %2880 = vrot.lane.b32.xlu1 %v2651_v18, %s4173_s28  ;;  %v3076_v17 = vsel %vm1445_vm9, %v3044_v14, %v6107_v3 }
 0x3f2   : > { %v3138_v40 = vsel %vm1511_vm11, %v3106_v8, %v2863_v34  ;;  %v2671_v8 = vpack.c.bf16 %v2668_v37, %v2666_v7 }
 0x3f3   : > { %2878 = vrot.lane.b32.xlu0 %v2631_v29, %s4173_s28  ;;  %v2832_v15 = vpop.permute.xlu1 %2831  ;;  %v3170_v53 = vsel %vm1544_vm12, %v3138_v40, %v6117_v24 }
 0x3f4   : > { %v3108_v2 = vsel %vm1478_vm10, %v3076_v17, %v2832_v15 }
 0x3f5   : > { %v2929_v48 = vpop.permute.xlu0 %2928  ;;  %2913 = vrot.lane.b32.xlu1 %v2652_v16, %s4177_s12 }
 0x3f6   : > { %v3202_v29 = vsel %vm1577_vm13, %v3170_v53, %v2929_v48 }
 0x3f7   : > { %2911 = vrot.lane.b32.xlu0 %v2632_v35, %s4177_s12  ;;  %v2865_v3 = vpop.permute.xlu1 %2864 }
 0x3f8   : > { %v3140_v47 = vsel %vm1511_vm11, %v3108_v2, %v2865_v3 }
 0x3f9   : > { %v2962_v30 = vpop.permute.xlu0 %2961  ;;  %2946 = vrot.lane.b32.xlu1 %v2663_v58, %s4178_s13  ;;  %v3172_v42 = vsel %vm1544_vm12, %v3140_v47, %v6115_v12 }
 0x3fa   : > { %v6355_v24 = vsel %vm1610_vm14, %v3202_v29, %v2962_v30 }
 0x3fb   : > { %2944 = vrot.lane.b32.xlu0 %v2643_v26, %s4178_s13  ;;  %v2931_v35 = vpop.permute.xlu1 %2930 }
 0x3fc   : > { %v3204_v11 = vsel %vm1577_vm13, %v3172_v42, %v2931_v35 }
 0x3fd   : > { %v2964_v25 = vpop.permute.xlu0 %2963  ;;  %2979 = vrot.lane.b32.xlu1 %v2671_v8, %s4179_s14 }
 0x3fe   : > { %v6363_v32 = vsel %vm1610_vm14, %v3204_v11, %v2964_v25 }
 0x3ff   : > { %2977 = vrot.lane.b32.xlu0 %v2651_v18, %s4179_s14  ;;  %v2705_v14 = vpop.permute.xlu1 %2704 }
 0x400   : > { %v3007_v56 = vsel %vm1363_vm7, %v5687_v55, %v2705_v14 }
 0x401   : > { %v2753_v26 = vpop.permute.xlu0 %2752 }
 0x402   : > { %v3046_v54 = vsel %vm1412_vm8, %v3007_v56, %v2753_v26 }
 0x403   : > { %v2707_v12 = vpop.permute.xlu1 %2706  ;;  %v3078_v34 = vsel %vm1445_vm9, %v3046_v54, %v6125_v19 }
 0x404   : > { %v3010_v17 = vsel %vm1363_vm7, %v5699_v41, %v2707_v12 }
 0x405   : > { %v2834_v40 = vpop.permute.xlu0 %2833 }
 0x406   : > { %v3110_v23 = vsel %vm1478_vm10, %v3078_v34, %v2834_v40 }
 0x407   : > { %v2755_v15 = vpop.permute.xlu1 %2754 }
 0x408   : > { %v3048_v18 = vsel %vm1412_vm8, %v3010_v17, %v2755_v15 }
 0x409   : > { %v2867_v16 = vpop.permute.xlu0 %2866  ;;  %v3080_v55 = vsel %vm1445_vm9, %v3048_v18, %v6123_v43 }
 0x40a   : > { %v3142_v61 = vsel %vm1511_vm11, %v3110_v23, %v2867_v16 }
 0x40b   : > { %v2836_v2 = vpop.permute.xlu1 %2835  ;;  %v3174_v19 = vsel %vm1544_vm12, %v3142_v61, %v6133_v20 }
 0x40c   : > { %v3112_v28 = vsel %vm1478_vm10, %v3080_v55, %v2836_v2 }
 0x40d   : > { %v2933_v0 = vpop.permute.xlu0 %2932 }
 0x40e   : > { %v3206_v44 = vsel %vm1577_vm13, %v3174_v19, %v2933_v0 }
 0x40f   : > { %v2869_v53 = vpop.permute.xlu1 %2868 }
 0x410   : > { %v3144_v41 = vsel %vm1511_vm11, %v3112_v28, %v2869_v53 }
 0x411   : > { %v2966_v48 = vpop.permute.xlu0 %2965  ;;  %v3176_v1 = vsel %vm1544_vm12, %v3144_v41, %v6131_v9 }
 0x412   : > { %v3238_v29 = vsel %vm1610_vm14, %v3206_v44, %v2966_v48 }
 0x413   : > { %v2935_v3 = vpop.permute.xlu1 %2934 }
 0x414   : > { %v3208_v43 = vsel %vm1577_vm13, %v3176_v1, %v2935_v3 }
 0x415   : > { %v2968_v58 = vpop.permute.xlu0 %2967 }
 0x416   : > { %v6388_v47 = vsel %vm1610_vm14, %v3208_v43, %v2968_v58 }
 0x417   : > { %v2709_v20 = vpop.permute.xlu1 %2708 }
 0x419   : > { %v2757_v7 = vpop.permute.xlu0 %2756 }
 0x41b   : > { %v2711_v37 = vpop.permute.xlu1 %2710 }
 0x41c   : > { %v3016_v53 = vsel %vm1363_vm7, %v5741_v38, %v2711_v37 }
 0x41d   : > { %v2838_v30 = vpop.permute.xlu0 %2837 }
 0x41f   : > { %v2759_v42 = vpop.permute.xlu1 %2758 }
 0x420   : > { %v3052_v41 = vsel %vm1412_vm8, %v3016_v53, %v2759_v42 }
 0x421   : > { %v2871_v35 = vpop.permute.xlu0 %2870 }
 0x423   : > { %v2840_v8 = vpop.permute.xlu1 %2839 }
 0x425   : > { %v2937_v11 = vpop.permute.xlu0 %2936 }
 0x427   : > { %v2873_v25 = vpop.permute.xlu1 %2872 }
 0x429   : > { %v2970_v14 = vpop.permute.xlu0 %2969 }
 0x42b   : > { %v6390_v56 = vpop.permute.xlu1 %2938 }
 0x42d   : > { %v2689_v9 = vpop.permute.xlu0 %2688 }
 0x42e   : > { %v2983_v54 = vsel %vm1363_vm7, %v2310_v39, %v2689_v9 }
 0x42f   : > { %v2713_v26 = vpop.permute.xlu1 %2712 }
 0x430   : > { %v3019_v38 = vsel %vm1363_vm7, %v5745_v52, %v2713_v26 }
 0x431   : > { %v2737_v12 = vpop.permute.xlu0 %2736 }
 0x432   : > { %v3030_v34 = vsel %vm1412_vm8, %v2983_v54, %v2737_v12 }
 0x433   : > { %v3062_v40 = vsel %vm1445_vm9, %v3030_v34, %v6061_v10  ;;  %v6399_v23 = vpop.permute.xlu1 %2714 }
 0x434   : > { %v3094_v17 = vsel %vm1478_vm10, %v3062_v40, %v6155_v5 }
 0x435   : > { %v2972_v15 = vpop.permute.xlu0 %2971  ;;  %v3126_v18 = vsel %vm1511_vm11, %v3094_v17, %v6161_v33 }
 0x436   : > { %v3158_v22 = vsel %vm1544_vm12, %v3126_v18, %v6069_v57 }
 0x437   : > { %v2763_v49 = vpop.permute.xlu1 %2762  ;;  %v3190_v39 = vsel %vm1577_vm13, %v3158_v22, %v6170_v13 }
 0x438   : > { %v3222_v16 = vsel %vm1610_vm14, %v3190_v39, %v6182_v63 }
 0x439   : > { %4085 = vmatprep.mubr.msk.bf16.mxu1 %vm1670_vm15, %v3222_v16  ;;  %v2761_v10 = vpop.permute.xlu0 %2760 }
 0x43a   : > { %4086 = vmatmul.mubr.msk.bf16.vlgmr.msra.gmra.mrb[0].mxu1 %vm1670_vm15, %v6200_v27  ;;  %v3013_v27 = vsel %vm1363_vm7, %v5715_v51, %v2709_v20  ;;  %v3054_v20 = vsel %vm1412_vm8, %v3019_v38, %v2761_v10 }
 0x43b   : > { %4089 = vmatprep.mubr.msk.bf16.mxu1 %vm1670_vm15, %v6252_v31  ;;  %v2811_v5 = vpop.permute.xlu1 %2810 }
 0x43d   : > { %v2809_v33 = vpop.permute.xlu0 %2808 }
 0x43f   : > { %v2844_v61 = vpop.permute.xlu1 %2843 }
 0x441   : > { %v2842_v57 = vpop.permute.xlu0 %2841 }
 0x442   : > { %4090 = vmatmul.mubr.msk.bf16.gmra.mrb[4].mxu1 %vm1670_vm15, %v6263_v59  ;;  %v3050_v59 = vsel %vm1412_vm8, %v3013_v27, %v2757_v7  ;;  %v3086_v7 = vsel %vm1445_vm9, %v3054_v20, %v2809_v33 }
 0x443   : > { %4093 = vmatprep.mubr.msk.bf16.mxu1 %vm1670_vm15, %v6307_v45  ;;  %v2877_v13 = vpop.permute.xlu1 %2876  ;;  %v3082_v45 = vsel %vm1445_vm9, %v3050_v59, %v6141_v36  ;;  %v3118_v37 = vsel %vm1478_vm10, %v3086_v7, %v2842_v57 }
 0x444   : > { %v3114_v51 = vsel %vm1478_vm10, %v3082_v45, %v2838_v30 }
 0x445   : > { %v2875_v63 = vpop.permute.xlu0 %2874  ;;  %v3146_v44 = vsel %vm1511_vm11, %v3114_v51, %v2871_v35 }
 0x446   : > { %v3178_v36 = vsel %vm1544_vm12, %v3146_v44, %v6149_v60  ;;  %v3150_v30 = vsel %vm1511_vm11, %v3118_v37, %v2875_v63 }
 0x447   : > { %v2910_v55 = vpop.permute.xlu1 %2909  ;;  %v3210_v1 = vsel %vm1577_vm13, %v3178_v36, %v2937_v11 }
 0x448   : > { %v3242_v3 = vsel %vm1610_vm14, %v3210_v1, %v2970_v14  ;;  %v3022_v14 = vsel %vm1363_vm7, %v5970_v62, %v6399_v23 }
 0x449   : > { %v2908_v2 = vpop.permute.xlu0 %2907 }
 0x44a   : > { %4094 = vmatmul.mubr.msk.bf16.gmra.mrb[8].mxu1 %vm1670_vm15, %v6315_v6  ;;  %v3182_v35 = vsel %vm1544_vm12, %v3150_v30, %v2908_v2 }
 0x44b   : > { %4097 = vmatprep.mubr.msk.bf16.mxu1 %vm1670_vm15, %v6355_v24  ;;  %v2943_v31 = vpop.permute.xlu1 %2942 }
 0x44d   : > { %v2941_v28 = vpop.permute.xlu0 %2940 }
 0x44e   : > { %v3214_v11 = vsel %vm1577_vm13, %v3182_v35, %v2941_v28 }
 0x44f   : > { %v2717_v19 = vpop.permute.xlu1 %2716 }
 0x450   : > { %v3025_v22 = vsel %vm1363_vm7, %v6244_v4, %v2717_v19  ;;  %v6498_v19 = vld [vmem:[%s7015_s5] ss:$0 sm:$0xff] }
 0x451   : > { %v2974_v0 = vpop.permute.xlu0 %2973 }
 0x452   : > { %4098 = vmatmul.mubr.msk.bf16.gmra.mrb[12].mxu1 %vm1670_vm15, %v6363_v32  ;;  %v3246_v9 = vsel %vm1610_vm14, %v3214_v11, %v2974_v0 }
 0x453   : > { %4101 = vmatprep.mubr.msk.bf16.mxu1 %vm1670_vm15, %v3238_v29  ;;  %v2719_v6 = vpop.permute.xlu1 %2718  ;;  %v3084_v29 = vsel %vm1445_vm9, %v3052_v41, %v6139_v46 }
 0x454   : > { %v3116_v43 = vsel %vm1478_vm10, %v3084_v29, %v2840_v8  ;;  %v3028_v18 = vsel %vm1363_vm7, %v6275_v21, %v2719_v6 }
 0x455   : > { %v2976_v24 = vpop.permute.xlu0 %2975  ;;  %v3148_v60 = vsel %vm1511_vm11, %v3116_v43, %v2873_v25 }
 0x457   : > { %v2767_v48 = vpop.permute.xlu1 %2766 }
 0x459   : > { %v2765_v32 = vpop.permute.xlu0 %2764 }
 0x45a   : > { %4102 = vmatmul.mubr.msk.bf16.gmra.mrb[16].mxu1 %vm1670_vm15, %v6388_v47  ;;  %v3180_v47 = vsel %vm1544_vm12, %v3148_v60, %v6147_v50  ;;  %v3056_v50 = vsel %vm1412_vm8, %v3022_v14, %v2763_v49  ;;  %v3060_v49 = vsel %vm1412_vm8, %v3028_v18, %v2767_v48  ;;  %v3058_v16 = vsel %vm1412_vm8, %v3025_v22, %v2765_v32 }
 0x45b   : > { %4105 = vmatprep.mubr.msk.bf16.mxu1 %vm1670_vm15, %v3242_v3  ;;  %v2815_v58 = vpop.permute.xlu1 %2814  ;;  %v3212_v52 = vsel %vm1577_vm13, %v3180_v47, %v6390_v56  ;;  %v3088_v26 = vsel %vm1445_vm9, %v3056_v50, %v2811_v5 }
 0x45c   : > { %v3244_v8 = vsel %vm1610_vm14, %v3212_v52, %v2972_v15  ;;  %v3120_v54 = vsel %vm1478_vm10, %v3088_v26, %v2844_v61  ;;  %v3092_v10 = vsel %vm1445_vm9, %v3060_v49, %v2815_v58 }
 0x45d   : > { %v2813_v46 = vpop.permute.xlu0 %2812  ;;  %v3152_v34 = vsel %vm1511_vm11, %v3120_v54, %v2877_v13 }
 0x45e   : > { %v3184_v40 = vsel %vm1544_vm12, %v3152_v34, %v2910_v55  ;;  %v3090_v5 = vsel %vm1445_vm9, %v3058_v16, %v2813_v46 }
 0x45f   : > { %v2848_v42 = vpop.permute.xlu1 %2847  ;;  %v3216_v62 = vsel %vm1577_vm13, %v3184_v40, %v2943_v31 }
 0x460   : > { %v3248_v23 = vsel %vm1610_vm14, %v3216_v62, %v2976_v24  ;;  %v3124_v33 = vsel %vm1478_vm10, %v3092_v10, %v2848_v42 }
 0x461   : > { %v2846_v25 = vpop.permute.xlu0 %2845 }
 0x462   : > { %4106 = vmatmul.mubr.msk.bf16.gmra.mrb[20].mxu1 %vm1670_vm15, %v3244_v8  ;;  %v3122_v57 = vsel %vm1478_vm10, %v3090_v5, %v2846_v25 }
 0x463   : > { %4109 = vmatprep.mubr.msk.bf16.mxu1 %vm1670_vm15, %v3246_v9  ;;  %v2881_v56 = vpop.permute.xlu1 %2880 }
 0x464   : > { %v3156_v21 = vsel %vm1511_vm11, %v3124_v33, %v2881_v56 }
 0x465   : > { %v2879_v12 = vpop.permute.xlu0 %2878 }
 0x466   : > { %v3154_v13 = vsel %vm1511_vm11, %v3122_v57, %v2879_v12 }
 0x467   : > { %v2914_v17 = vpop.permute.xlu1 %2913 }
 0x468   : > { %v3188_v4 = vsel %vm1544_vm12, %v3156_v21, %v2914_v17 }
 0x469   : > { %v2912_v15 = vpop.permute.xlu0 %2911 }
 0x46a   : > { %4110 = vmatmul.mubr.msk.bf16.gmra.mrb[24].mxu1 %vm1670_vm15, %v3248_v23  ;;  %v3186_v55 = vsel %vm1544_vm12, %v3154_v13, %v2912_v15 }
 0x46b   : > { %v2947_v39 = vpop.permute.xlu1 %2946 }
 0x46c   : > { %v3220_v2 = vsel %vm1577_vm13, %v3188_v4, %v2947_v39 }
 0x46d   : > { %v2945_v61 = vpop.permute.xlu0 %2944 }
 0x46e   : > { %v3218_v27 = vsel %vm1577_vm13, %v3186_v55, %v2945_v61 }
 0x46f   : > { %v2980_v63 = vpop.permute.xlu1 %2979 }
 0x470   : > { %v3252_v31 = vsel %vm1610_vm14, %v3220_v2, %v2980_v63 }
 0x471   : > { %v2978_v28 = vpop.permute.xlu0 %2977 }
 0x472   : > { %v3250_v59 = vsel %vm1610_vm14, %v3218_v27, %v2978_v28 }
 0x473   : > { %4113 = vmatprep.mubr.msk.bf16.mxu1 %vm1670_vm15, %v3250_v59 }
 0x474   : > { %4114 = vmatmul.mubr.msk.bf16.gmra.mrb[28].mxu1 %vm1670_vm15, %v3252_v31 }
 0x50d   : > { %v4087_v45 = vpop.f32.mrb[0].mxu1 }
 0x50e   : > { %v3349_v0 = vpop.f32.mrb[1].mxu1  ;;  %v6504_v24 = vadd.f32 %v4087_v45, %v6498_v19 }
 0x50f   : > { %v6501_v6 = vadd.f32 %v6498_v19, %v3349_v0  ;;  %v4088_v51 = vpop.f32.mrb[2].mxu1 }
 0x510   : > { %v3352_v44 = vpop.f32.mrb[3].mxu1  ;;  %v6512_v48 = vadd.f32 %v4088_v51, %v6498_v19  ;;  %v3479_v32 = vsel %vm1363_vm7, %v6504_v24, 0.0 }
 0x511   : > { %v6507_v53 = vadd.f32 %v6498_v19, %v3352_v44  ;;  %v3476_v41 = vsel %vm1363_vm7, %v6501_v6, 0.0 }
 0x512   : > { %v3481_v38 = vsel %vm1363_vm7, %v6512_v48, 0.0 }
 0x513   : > { %v3477_v36 = vsel %vm1363_vm7, %v6507_v53, 0.0 }
 0x514   : > { %v3478_v1 = vadd.f32 %v3477_v36, %v3476_v41 }
 0x515   : > { %v4091_v29 = vpop.f32.mrb[4].mxu1 }
 0x516   : > { %v3480_v3 = vadd.f32 %v3479_v32, %v3478_v1  ;;  %v3365_v43 = vpop.f32.mrb[5].mxu1  ;;  %v6524_v46 = vadd.f32 %v4091_v29, %v6498_v19 }
 0x517   : > { %v6521_v58 = vadd.f32 %v6498_v19, %v3365_v43  ;;  %v4092_v60 = vpop.f32.mrb[6].mxu1 }
 0x518   : > { %v3482_v20 = vadd.f32 %v3481_v38, %v3480_v3  ;;  %v3368_v7 = vpop.f32.mrb[7].mxu1  ;;  %v6532_v42 = vadd.f32 %v4092_v60, %v6498_v19  ;;  %v3487_v8 = vsel %vm1363_vm7, %v6524_v46, 0.0 }
 0x519   : > { %v3483_v37 = vsel %vm1363_vm7, %v6521_v58, 0.0  ;;  %v6529_v47 = vadd.f32 %v6498_v19, %v3368_v7 }
 0x51a   : > { %v3484_v30 = vadd.f32 %v3483_v37, %v3482_v20  ;;  %v3489_v9 = vsel %vm1363_vm7, %v6532_v42, 0.0 }
 0x51b   : > { %v3485_v52 = vsel %vm1363_vm7, %v6529_v47, 0.0 }
 0x51c   : > { %v3486_v35 = vadd.f32 %v3485_v52, %v3484_v30 }
 0x51d   : > { %v4095_v11 = vpop.f32.mrb[8].mxu1 }
 0x51e   : > { %v3488_v25 = vadd.f32 %v3487_v8, %v3486_v35  ;;  %v3381_v14 = vpop.f32.mrb[9].mxu1  ;;  %v6544_v12 = vadd.f32 %v4095_v11, %v6498_v19 }
 0x51f   : > { %v6541_v50 = vadd.f32 %v6498_v19, %v3381_v14  ;;  %v4096_v56 = vpop.f32.mrb[10].mxu1 }
 0x520   : > { %v3490_v26 = vadd.f32 %v3489_v9, %v3488_v25  ;;  %v3384_v54 = vpop.f32.mrb[11].mxu1  ;;  %v6552_v62 = vadd.f32 %v4096_v56, %v6498_v19  ;;  %v3495_v18 = vsel %vm1363_vm7, %v6544_v12, 0.0 }
 0x521   : > { %v3491_v34 = vsel %vm1363_vm7, %v6541_v50, 0.0  ;;  %v6549_v40 = vadd.f32 %v6498_v19, %v3384_v54 }
 0x522   : > { %v3492_v17 = vadd.f32 %v3491_v34, %v3490_v26  ;;  %v3497_v16 = vsel %vm1363_vm7, %v6552_v62, 0.0 }
 0x523   : > { %v3493_v23 = vsel %vm1363_vm7, %v6549_v40, 0.0 }
 0x524   : > { %v3494_v15 = vadd.f32 %v3493_v23, %v3492_v17 }
 0x525   : > { %v4099_v22 = vpop.f32.mrb[12].mxu1 }
 0x526   : > { %v3496_v49 = vadd.f32 %v3495_v18, %v3494_v15  ;;  %v3397_v39 = vpop.f32.mrb[13].mxu1  ;;  %v6564_v57 = vadd.f32 %v4099_v22, %v6498_v19 }
 0x527   : > { %v6561_v10 = vadd.f32 %v6498_v19, %v3397_v39  ;;  %v4100_v5 = vpop.f32.mrb[14].mxu1 }
 0x528   : > { %v3498_v33 = vadd.f32 %v3497_v16, %v3496_v49  ;;  %v3400_v61 = vpop.f32.mrb[15].mxu1  ;;  %v6572_v63 = vadd.f32 %v4100_v5, %v6498_v19  ;;  %v3503_v27 = vsel %vm1363_vm7, %v6564_v57, 0.0 }
 0x529   : > { %v3499_v21 = vsel %vm1363_vm7, %v6561_v10, 0.0  ;;  %v6569_v13 = vadd.f32 %v6498_v19, %v3400_v61 }
 0x52a   : > { %v3500_v4 = vadd.f32 %v3499_v21, %v3498_v33  ;;  %v3505_v45 = vsel %vm1363_vm7, %v6572_v63, 0.0 }
 0x52b   : > { %v3501_v55 = vsel %vm1363_vm7, %v6569_v13, 0.0 }
 0x52c   : > { %v3502_v2 = vadd.f32 %v3501_v55, %v3500_v4 }
 0x52d   : > { %v4103_v31 = vpop.f32.mrb[16].mxu1 }
 0x52e   : > { %v3504_v28 = vadd.f32 %v3503_v27, %v3502_v2  ;;  %v3413_v59 = vpop.f32.mrb[17].mxu1  ;;  %v6584_v36 = vadd.f32 %v4103_v31, %v6498_v19 }
 0x52f   : > { %v6581_v0 = vadd.f32 %v6498_v19, %v3413_v59  ;;  %v4104_v51 = vpop.f32.mrb[18].mxu1 }
 0x530   : > { %v3506_v44 = vadd.f32 %v3505_v45, %v3504_v28  ;;  %v3416_v41 = vpop.f32.mrb[19].mxu1  ;;  %v6592_v3 = vadd.f32 %v4104_v51, %v6498_v19  ;;  %v3511_v60 = vsel %vm1363_vm7, %v6584_v36, 0.0 }
 0x531   : > { %v3507_v1 = vsel %vm1363_vm7, %v6581_v0, 0.0  ;;  %v6589_v32 = vadd.f32 %v6498_v19, %v3416_v41 }
 0x532   : > { %v3508_v29 = vadd.f32 %v3507_v1, %v3506_v44  ;;  %v3513_v30 = vsel %vm1363_vm7, %v6592_v3, 0.0 }
 0x533   : > { %v3509_v43 = vsel %vm1363_vm7, %v6589_v32, 0.0 }
 0x534   : > { %v3510_v38 = vadd.f32 %v3509_v43, %v3508_v29 }
 0x535   : > { %v4107_v20 = vpop.f32.mrb[20].mxu1 }
 0x536   : > { %v3512_v7 = vadd.f32 %v3511_v60, %v3510_v38  ;;  %v3429_v37 = vpop.f32.mrb[21].mxu1  ;;  %v3438_v25 = vadd.f32 %v4107_v20, %v6498_v19 }
 0x537   : > { %v3430_v52 = vadd.f32 %v6498_v19, %v3429_v37  ;;  %v4108_v35 = vpop.f32.mrb[22].mxu1 }
 0x538   : > { %v3514_v8 = vadd.f32 %v3513_v30, %v3512_v7  ;;  %v3432_v11 = vpop.f32.mrb[23].mxu1  ;;  %v3441_v26 = vadd.f32 %v4108_v35, %v6498_v19  ;;  %v3519_v17 = vsel %vm1363_vm7, %v3438_v25, 0.0 }
 0x539   : > { %v3515_v14 = vsel %vm1363_vm7, %v3430_v52, 0.0  ;;  %v3433_v9 = vadd.f32 %v6498_v19, %v3432_v11 }
 0x53a   : > { %v3516_v56 = vadd.f32 %v3515_v14, %v3514_v8  ;;  %v3521_v22 = vsel %vm1363_vm7, %v3441_v26, 0.0 }
 0x53b   : > { %v3517_v54 = vsel %vm1363_vm7, %v3433_v9, 0.0 }
 0x53c   : > { %v3518_v34 = vadd.f32 %v3517_v54, %v3516_v56 }
 0x53d   : > { %v4111_v23 = vpop.f32.mrb[24].mxu1 }
 0x53e   : > { %v3520_v15 = vadd.f32 %v3519_v17, %v3518_v34  ;;  %v3445_v18 = vpop.f32.mrb[25].mxu1  ;;  %v3454_v33 = vadd.f32 %v4111_v23, %v6498_v19 }
 0x53f   : > { %v3446_v49 = vadd.f32 %v6498_v19, %v3445_v18  ;;  %v4112_v39 = vpop.f32.mrb[26].mxu1 }
 0x540   : > { %v3522_v16 = vadd.f32 %v3521_v22, %v3520_v15  ;;  %v3448_v5 = vpop.f32.mrb[27].mxu1  ;;  %v3457_v55 = vadd.f32 %v4112_v39, %v6498_v19  ;;  %v3527_v31 = vsel %vm1363_vm7, %v3454_v33, 0.0 }
 0x541   : > { %v3523_v61 = vsel %vm1363_vm7, %v3446_v49, 0.0  ;;  %v3449_v21 = vadd.f32 %v6498_v19, %v3448_v5 }
 0x542   : > { %v3524_v4 = vadd.f32 %v3523_v61, %v3522_v16  ;;  %v3529_v59 = vsel %vm1363_vm7, %v3457_v55, 0.0 }
 0x543   : > { %v3525_v2 = vsel %vm1363_vm7, %v3449_v21, 0.0 }
 0x544   : > { %v3526_v27 = vadd.f32 %v3525_v2, %v3524_v4 }
 0x546   : > { %v3528_v28 = vadd.f32 %v3527_v31, %v3526_v27 }
 0x547   : > { %v4115_v45 = vpop.f32.mrb[28].mxu1 }
 0x548   : > { %v3461_v51 = vpop.f32.mrb[29].mxu1  ;;  %v3530_v44 = vadd.f32 %v3529_v59, %v3528_v28  ;;  %v3470_v43 = vadd.f32 %v4115_v45, %v6498_v19 }
 0x549   : > { %v3462_v41 = vadd.f32 %v6498_v19, %v3461_v51  ;;  %v4116_v1 = vpop.f32.mrb[30].mxu1 }
 0x54a   : > { %v3464_v29 = vpop.f32.mrb[31].mxu1  ;;  %v3473_v7 = vadd.f32 %v4116_v1, %v6498_v19  ;;  %v3535_v35 = vsel %vm1363_vm7, %v3470_v43, 0.0 }
 0x54b   : > { %v3531_v38 = vsel %vm1363_vm7, %v3462_v41, 0.0  ;;  %v3465_v60 = vadd.f32 %v6498_v19, %v3464_v29 }
 0x54c   : > { %v3532_v20 = vadd.f32 %v3531_v38, %v3530_v44  ;;  %v3537_v11 = vsel %vm1363_vm7, %v3473_v7, 0.0 }
 0x54d   : > { %v3533_v37 = vsel %vm1363_vm7, %v3465_v60, 0.0 }
 0x54e   : > { %v3534_v30 = vadd.f32 %v3533_v37, %v3532_v20 }
 0x550   : > { %v3536_v8 = vadd.f32 %v3535_v35, %v3534_v30 }
 0x552   : > { %v3538_v14 = vadd.f32 %v3537_v11, %v3536_v8 }
 0x554   : > { %v3539_v56 = vrot.slane %v3538_v14, 4 }
 0x556   : > { %v3540_v54 = vadd.f32 %v3539_v56, %v3538_v14 }
 0x558   : > { %v3541_v34 = vrot.slane %v3540_v54, 2 }
 0x55a   : > { %v3542_v17 = vadd.f32 %v3541_v34, %v3540_v54 }
 0x55c   : > { %v3543_v23 = vrot.slane %v3542_v17, 1 }
 0x55e   : > { %v3544_v15 = vadd.f32 %v3543_v23, %v3542_v17 }
 0x560   : > { %v3545_v18 = vmul.f32 0.00390625, %v3544_v15 }
 0x562   : > { %v6625_v22 = vsub.f32 %v6561_v10, %v3545_v18  ;;  %v6628_v19 = vsub.f32 %v6569_v13, %v3545_v18  ;;  %v6631_v39 = vsub.f32 %v6564_v57, %v3545_v18  ;;  %v6634_v16 = vsub.f32 %v6572_v63, %v3545_v18 }
 0x563   : > { %v6637_v5 = vsub.f32 %v6581_v0, %v3545_v18  ;;  %v6640_v61 = vsub.f32 %v6589_v32, %v3545_v18  ;;  %v6643_v4 = vsub.f32 %v6584_v36, %v3545_v18  ;;  %v6646_v10 = vsub.f32 %v6592_v3, %v3545_v18 }
 0x564   : > { %v6648_v13 = vsub.f32 %v3430_v52, %v3545_v18  ;;  %v6650_v2 = vsub.f32 %v3433_v9, %v3545_v18  ;;  %v6652_v57 = vsub.f32 %v3438_v25, %v3545_v18  ;;  %v6654_v63 = vsub.f32 %v3441_v26, %v3545_v18 }
 0x565   : > { %v6656_v27 = vsub.f32 %v3446_v49, %v3545_v18  ;;  %v6658_v0 = vsub.f32 %v3449_v21, %v3545_v18  ;;  %v6660_v32 = vsub.f32 %v3454_v33, %v3545_v18  ;;  %v6662_v31 = vsub.f32 %v3457_v55, %v3545_v18 }
 0x566   : > { %v6664_v36 = vsub.f32 %v3462_v41, %v3545_v18  ;;  %v6666_v3 = vsub.f32 %v3465_v60, %v3545_v18  ;;  %v6668_v52 = vsub.f32 %v3470_v43, %v3545_v18  ;;  %v6670_v9 = vsub.f32 %v3473_v7, %v3545_v18 }
 0x567   : > { %v6673_v25 = vsub.f32 %v6501_v6, %v3545_v18  ;;  %v6676_v26 = vsub.f32 %v6507_v53, %v3545_v18  ;;  %v6679_v49 = vsub.f32 %v6504_v24, %v3545_v18  ;;  %v6682_v33 = vsub.f32 %v6512_v48, %v3545_v18 }
 0x568   : > { %v6689_v28 = vsub.f32 %v6521_v58, %v3545_v18  ;;  %v6694_v53 = vsub.f32 %v6529_v47, %v3545_v18  ;;  %v6701_v51 = vsub.f32 %v6524_v46, %v3545_v18  ;;  %v6707_v47 = vsub.f32 %v6532_v42, %v3545_v18 }
 0x569   : > { %v3578_v21 = vmul.f32 %v6673_v25, %v6673_v25  ;;  %v3579_v55 = vmul.f32 %v6676_v26, %v6676_v26  ;;  %v3580_v6 = vmul.f32 %v6679_v49, %v6679_v49  ;;  %v3581_v24 = vmul.f32 %v6682_v33, %v6682_v33 }
 0x56a   : > { %v3582_v58 = vmul.f32 %v6689_v28, %v6689_v28  ;;  %v3583_v1 = vmul.f32 %v6694_v53, %v6694_v53  ;;  %v6713_v38 = vsub.f32 %v6541_v50, %v3545_v18  ;;  %v3584_v46 = vmul.f32 %v6701_v51, %v6701_v51 }
 0x56b   : > { %v3610_v48 = vsel %vm1363_vm7, %v3578_v21, 0.0  ;;  %v3611_v59 = vsel %vm1363_vm7, %v3579_v55, 0.0  ;;  %v3613_v44 = vsel %vm1363_vm7, %v3580_v6, 0.0  ;;  %v3615_v29 = vsel %vm1363_vm7, %v3581_v24, 0.0 }
 0x56c   : > { %v3612_v45 = vadd.f32 %v3611_v59, %v3610_v48  ;;  %v3617_v60 = vsel %vm1363_vm7, %v3582_v58, 0.0  ;;  %v6719_v7 = vsub.f32 %v6549_v40, %v3545_v18  ;;  %v3585_v42 = vmul.f32 %v6707_v47, %v6707_v47 }
 0x56d   : > { %v3619_v37 = vsel %vm1363_vm7, %v3583_v1, 0.0  ;;  %v6725_v35 = vsub.f32 %v6544_v12, %v3545_v18  ;;  %v3586_v50 = vmul.f32 %v6713_v38, %v6713_v38  ;;  %v3621_v8 = vsel %vm1363_vm7, %v3584_v46, 0.0 }
 0x56e   : > { %v3614_v41 = vadd.f32 %v3613_v44, %v3612_v45  ;;  %v6731_v14 = vsub.f32 %v6552_v62, %v3545_v18  ;;  %v3587_v40 = vmul.f32 %v6719_v7, %v6719_v7  ;;  %v3623_v56 = vsel %vm1363_vm7, %v3585_v42, 0.0 }
 0x56f   : > { %v3588_v34 = vmul.f32 %v6725_v35, %v6725_v35  ;;  %v3625_v12 = vsel %vm1363_vm7, %v3586_v50, 0.0  ;;  %v3590_v62 = vmul.f32 %v6625_v22, %v6625_v22  ;;  %v3591_v6 = vmul.f32 %v6628_v19, %v6628_v19 }
 0x570   : > { %v3616_v43 = vadd.f32 %v3615_v29, %v3614_v41  ;;  %v3589_v23 = vmul.f32 %v6731_v14, %v6731_v14  ;;  %v3627_v15 = vsel %vm1363_vm7, %v3587_v40, 0.0  ;;  %v3592_v59 = vmul.f32 %v6631_v39, %v6631_v39 }
 0x571   : > { %v3629_v18 = vsel %vm1363_vm7, %v3588_v34, 0.0  ;;  %v3633_v45 = vsel %vm1363_vm7, %v3590_v62, 0.0  ;;  %v3593_v44 = vmul.f32 %v6634_v16, %v6634_v16  ;;  %v3635_v41 = vsel %vm1363_vm7, %v3591_v6, 0.0 }
 0x572   : > { %v3618_v20 = vadd.f32 %v3617_v60, %v3616_v43  ;;  %v3631_v24 = vsel %vm1363_vm7, %v3589_v23, 0.0  ;;  %v3594_v29 = vmul.f32 %v6637_v5, %v6637_v5  ;;  %v3637_v43 = vsel %vm1363_vm7, %v3592_v59, 0.0 }
 0x573   : > { %v3595_v60 = vmul.f32 %v6640_v61, %v6640_v61 }
 0x574   : > { %v3620_v30 = vadd.f32 %v3619_v37, %v3618_v20  ;;  %v3639_v20 = vsel %vm1363_vm7, %v3593_v44, 0.0  ;;  %v3596_v37 = vmul.f32 %v6643_v4, %v6643_v4 }
 0x576   : > { %v3622_v11 = vadd.f32 %v3621_v8, %v3620_v30  ;;  %v3641_v30 = vsel %vm1363_vm7, %v3594_v29, 0.0  ;;  %v3597_v8 = vmul.f32 %v6646_v10, %v6646_v10 }
 0x578   : > { %v3624_v54 = vadd.f32 %v3623_v56, %v3622_v11  ;;  %v3643_v11 = vsel %vm1363_vm7, %v3595_v60, 0.0  ;;  %v3598_v56 = vmul.f32 %v6648_v13, %v6648_v13 }
 0x57a   : > { %v3626_v17 = vadd.f32 %v3625_v12, %v3624_v54  ;;  %v3645_v54 = vsel %vm1363_vm7, %v3596_v37, 0.0  ;;  %v3599_v12 = vmul.f32 %v6650_v2, %v6650_v2 }
 0x57c   : > { %v3628_v21 = vadd.f32 %v3627_v15, %v3626_v17  ;;  %v3647_v17 = vsel %vm1363_vm7, %v3597_v8, 0.0  ;;  %v3600_v15 = vmul.f32 %v6652_v57, %v6652_v57 }
 0x57e   : > { %v3630_v55 = vadd.f32 %v3629_v18, %v3628_v21  ;;  %v3649_v21 = vsel %vm1363_vm7, %v3598_v56, 0.0  ;;  %v3601_v18 = vmul.f32 %v6654_v63, %v6654_v63 }
 0x580   : > { %v3632_v48 = vadd.f32 %v3631_v24, %v3630_v55  ;;  %v3651_v55 = vsel %vm1363_vm7, %v3599_v12, 0.0  ;;  %v3602_v24 = vmul.f32 %v6656_v27, %v6656_v27 }
 0x582   : > { %v3634_v58 = vadd.f32 %v3633_v45, %v3632_v48  ;;  %v3653_v48 = vsel %vm1363_vm7, %v3600_v15, 0.0  ;;  %v3603_v45 = vmul.f32 %v6658_v0, %v6658_v0 }
 0x584   : > { %v3636_v1 = vadd.f32 %v3635_v41, %v3634_v58  ;;  %v3655_v58 = vsel %vm1363_vm7, %v3601_v18, 0.0  ;;  %v3604_v41 = vmul.f32 %v6660_v32, %v6660_v32 }
 0x586   : > { %v3638_v46 = vadd.f32 %v3637_v43, %v3636_v1  ;;  %v3657_v1 = vsel %vm1363_vm7, %v3602_v24, 0.0  ;;  %v3605_v43 = vmul.f32 %v6662_v31, %v6662_v31 }
 0x588   : > { %v3640_v42 = vadd.f32 %v3639_v20, %v3638_v46  ;;  %v3659_v46 = vsel %vm1363_vm7, %v3603_v45, 0.0  ;;  %v3606_v20 = vmul.f32 %v6664_v36, %v6664_v36 }
 0x58a   : > { %v3642_v50 = vadd.f32 %v3641_v30, %v3640_v42  ;;  %v3661_v42 = vsel %vm1363_vm7, %v3604_v41, 0.0  ;;  %v3607_v30 = vmul.f32 %v6666_v3, %v6666_v3 }
 0x58c   : > { %v3644_v40 = vadd.f32 %v3643_v11, %v3642_v50  ;;  %v3663_v50 = vsel %vm1363_vm7, %v3605_v43, 0.0  ;;  %v3608_v11 = vmul.f32 %v6668_v52, %v6668_v52 }
 0x58e   : > { %v3646_v34 = vadd.f32 %v3645_v54, %v3644_v40  ;;  %v3665_v40 = vsel %vm1363_vm7, %v3606_v20, 0.0  ;;  %v3609_v54 = vmul.f32 %v6670_v9, %v6670_v9 }
 0x590   : > { %v3648_v23 = vadd.f32 %v3647_v17, %v3646_v34  ;;  %v3667_v34 = vsel %vm1363_vm7, %v3607_v30, 0.0  ;;  %v3669_v17 = vsel %vm1363_vm7, %v3608_v11, 0.0  ;;  %v3671_v15 = vsel %vm1363_vm7, %v3609_v54, 0.0  ;;  %v3720_v30 = vld [vmem:[%s6810_s8 + $0x30] sm:$0xff]  ;;  %v3723_v11 = vld [vmem:[%s6810_s8 + $0x48] sm:$0xff]  ;;  %v3726_v54 = vld [vmem:[%s6810_s8 + $0x60] sm:$0xff] }
 0x592   : > { %v3650_v62 = vadd.f32 %v3649_v21, %v3648_v23 }
 0x594   : > { %v3652_v6 = vadd.f32 %v3651_v55, %v3650_v62 }
 0x596   : > { %v3654_v59 = vadd.f32 %v3653_v48, %v3652_v6 }
 0x598   : > { %v3656_v44 = vadd.f32 %v3655_v58, %v3654_v59 }
 0x59a   : > { %v3658_v29 = vadd.f32 %v3657_v1, %v3656_v44 }
 0x59c   : > { %v3660_v60 = vadd.f32 %v3659_v46, %v3658_v29 }
 0x59e   : > { %v3662_v37 = vadd.f32 %v3661_v42, %v3660_v60 }
 0x5a0   : > { %v3664_v8 = vadd.f32 %v3663_v50, %v3662_v37  ;;  %v3719_v37 = vld [vmem:[%s6810_s8 + $0x28] sm:$0xff]  ;;  %v3721_v50 = vld [vmem:[%s6810_s8 + $0x38] sm:$0xff] }
 0x5a2   : > { %v3666_v56 = vadd.f32 %v3665_v40, %v3664_v8  ;;  %v3722_v8 = vld [vmem:[%s6810_s8 + $0x40] sm:$0xff]  ;;  %v3724_v40 = vld [vmem:[%s6810_s8 + $0x50] sm:$0xff] }
 0x5a4   : > { %v3668_v12 = vadd.f32 %v3667_v34, %v3666_v56  ;;  %v3727_v34 = vld [vmem:[%s6810_s8 + $0x68] sm:$0xff] }
 0x5a6   : > { %v3670_v23 = vadd.f32 %v3669_v17, %v3668_v12  ;;  %v3728_v12 = vld [vmem:[%s6810_s8 + $0x70] sm:$0xff]  ;;  %v3729_v17 = vld [vmem:[%s6810_s8 + $0x78] sm:$0xff] }
 0x5a8   : > { %v3672_v21 = vadd.f32 %v3671_v15, %v3670_v23  ;;  %v3730_v23 = vld [vmem:[%s6810_s8 + $0x80] sm:$0xff]  ;;  %v3731_v15 = vld [vmem:[%s6810_s8 + $0x88] sm:$0xff] }
 0x5aa   : > { %v3673_v62 = vrot.slane %v3672_v21, 4 }
 0x5ac   : > { %v3674_v18 = vadd.f32 %v3673_v62, %v3672_v21  ;;  %v3732_v21 = vld [vmem:[%s6810_s8 + $0x90] sm:$0xff] }
 0x5ae   : > { %v3675_v55 = vrot.slane %v3674_v18, 2 }
 0x5b0   : > { %v3676_v6 = vadd.f32 %v3675_v55, %v3674_v18 }
 0x5b2   : > { %v3677_v24 = vrot.slane %v3676_v6, 1 }
 0x5b4   : > { %v3678_v48 = vadd.f32 %v3677_v24, %v3676_v6  ;;  %v3735_v6 = vld [vmem:[%s6810_s8 + $0xa8] sm:$0xff] }
 0x5b6   : > { %v3679_v59 = vmul.f32 0.00390625, %v3678_v48 }
 0x5b8   : > { %v3680_v45 = vadd.f32 1e-05, %v3679_v59 }
 0x5ba   : > { %4162 = vrsqrt.f32 %v3680_v45 }
 0x5c4   : > { %v4163_v58 = vpop.eup %4162 }
 0x5c5   : > { %v3682_v44 = vmul.f32 %v4163_v58, %v6673_v25  ;;  %v3683_v41 = vmul.f32 %v4163_v58, %v6676_v26  ;;  %v3684_v1 = vmul.f32 %v4163_v58, %v6679_v49  ;;  %v3685_v29 = vmul.f32 %v4163_v58, %v6682_v33 }
 0x5c6   : > { %v3686_v43 = vmul.f32 %v4163_v58, %v6689_v28  ;;  %v3687_v46 = vmul.f32 %v4163_v58, %v6694_v53  ;;  %v3688_v60 = vmul.f32 %v4163_v58, %v6701_v51  ;;  %v3689_v20 = vmul.f32 %v4163_v58, %v6707_v47 }
 0x5c7   : > { %v3690_v25 = vmul.f32 %v4163_v58, %v6713_v38  ;;  %v3691_v26 = vmul.f32 %v4163_v58, %v6719_v7  ;;  %v3692_v49 = vmul.f32 %v4163_v58, %v6725_v35  ;;  %v3693_v33 = vmul.f32 %v4163_v58, %v6731_v14  ;;  %v3714_v38 = vld [vmem:[%s6810_s8] sm:$0xff]  ;;  %v3715_v7 = vld [vmem:[%s6810_s8 + $0x8] sm:$0xff]  ;;  %v3716_v35 = vld [vmem:[%s6810_s8 + $0x10] sm:$0xff] }
 0x5c8   : > { %v6825_v28 = vmul.f32 %v4163_v58, %v6625_v22  ;;  %v6828_v53 = vmul.f32 %v4163_v58, %v6628_v19  ;;  %v6831_v51 = vmul.f32 %v4163_v58, %v6631_v39  ;;  %v6834_v47 = vmul.f32 %v4163_v58, %v6634_v16  ;;  %v3717_v14 = vld [vmem:[%s6810_s8 + $0x18] sm:$0xff]  ;;  %v3718_v16 = vld [vmem:[%s6810_s8 + $0x20] sm:$0xff] }
 0x5c9   : > { %v6841_v42 = vmul.f32 %v4163_v58, %v6637_v5  ;;  %v6844_v22 = vmul.f32 %v4163_v58, %v6640_v61  ;;  %v6847_v19 = vmul.f32 %v4163_v58, %v6643_v4  ;;  %v6850_v39 = vmul.f32 %v4163_v58, %v6646_v10 }
 0x5ca   : > { %v6857_v5 = vmul.f32 %v4163_v58, %v6648_v13  ;;  %v6860_v61 = vmul.f32 %v4163_v58, %v6650_v2  ;;  %v6863_v4 = vmul.f32 %v4163_v58, %v6652_v57  ;;  %v6866_v10 = vmul.f32 %v4163_v58, %v6654_v63  ;;  %v3725_v63 = vld [vmem:[%s6810_s8 + $0x58] sm:$0xff] }
 0x5cb   : > { %v6872_v56 = vmul.f32 %v4163_v58, %v6656_v27  ;;  %v6875_v13 = vmul.f32 %v4163_v58, %v6658_v0  ;;  %v6878_v2 = vmul.f32 %v4163_v58, %v6660_v32  ;;  %v6881_v57 = vmul.f32 %v4163_v58, %v6662_v31 }
 0x5cc   : > { %v6894_v27 = vmul.f32 %v4163_v58, %v6664_v36  ;;  %v6897_v0 = vmul.f32 %v4163_v58, %v6666_v3  ;;  %v6900_v32 = vmul.f32 %v4163_v58, %v6668_v52  ;;  %v6903_v31 = vmul.f32 %v4163_v58, %v6670_v9  ;;  %v3733_v36 = vld [vmem:[%s6810_s8 + $0x98] sm:$0xff]  ;;  %v3734_v52 = vld [vmem:[%s6810_s8 + $0xa0] sm:$0xff]  ;;  %v3736_v9 = vld [vmem:[%s6810_s8 + $0xb0] sm:$0xff] }
 0x5cd   : > { %v3746_v62 = vadd.f32 %v3714_v38, %v3682_v44  ;;  %v3747_v18 = vadd.f32 %v3715_v7, %v3683_v41  ;;  %v3748_v55 = vadd.f32 %v3716_v35, %v3684_v1  ;;  %v3749_v3 = vadd.f32 %v3717_v14, %v3685_v29  ;;  %v3737_v58 = vld [vmem:[%s6810_s8 + $0xb8] sm:$0xff]  ;;  %v3739_v44 = vld [vmem:[%s6810_s8 + $0xc8] sm:$0xff] }
 0x5ce   : > { %7054 = vst [vmem:[#allocation3_spill] sm:$0xff] %v6903_v31  ;;  %v3750_v24 = vadd.f32 %v3718_v16, %v3686_v43  ;;  %v3751_v48 = vadd.f32 %v3719_v37, %v3687_v46  ;;  %v3752_v59 = vadd.f32 %v3720_v30, %v3688_v60  ;;  %v3753_v45 = vadd.f32 %v3721_v50, %v3689_v20  ;;  %v3738_v31 = vld [vmem:[%s6810_s8 + $0xc0] sm:$0xff]  ;;  %v3740_v43 = vld [vmem:[%s6810_s8 + $0xd0] sm:$0xff]  ;;  %v3741_v46 = vld [vmem:[%s6810_s8 + $0xd8] sm:$0xff] }
 0x5cf   : > { %v3754_v41 = vadd.f32 %v3722_v8, %v3690_v25  ;;  %v3755_v1 = vadd.f32 %v3723_v11, %v3691_v26  ;;  %v3756_v29 = vadd.f32 %v3724_v40, %v3692_v49  ;;  %v3757_v38 = vadd.f32 %v3725_v63, %v3693_v33  ;;  %3778 = vst.msk [vmem:[%s6891_s11] sm:$0xff] %vm1363_vm7, %v3746_v62  ;;  %v3742_v60 = vld [vmem:[%s6810_s8 + $0xe0] sm:$0xff]  ;;  %v3743_v33 = vld [vmem:[%s6810_s8 + $0xe8] sm:$0xff] }
 0x5d0   : > { %3779 = vst.msk [vmem:[%s6891_s11 + $0x8] sm:$0xff] %vm1363_vm7, %v3747_v18  ;;  %3780 = vst.msk [vmem:[%s6891_s11 + $0x10] sm:$0xff] %vm1363_vm7, %v3748_v55  ;;  %v3758_v20 = vadd.f32 %v3726_v54, %v6825_v28  ;;  %v3759_v25 = vadd.f32 %v3727_v34, %v6828_v53  ;;  %v3760_v26 = vadd.f32 %v3728_v12, %v6831_v51  ;;  %v3744_v28 = vld [vmem:[%s6810_s8 + $0xf0] sm:$0xff]  ;;  %v3745_v53 = vld [vmem:[%s6810_s8 + $0xf8] sm:$0xff] }
 0x5d1   : > { %3781 = vst.msk [vmem:[%s6891_s11 + $0x18] sm:$0xff] %vm1363_vm7, %v3749_v3  ;;  %v3761_v49 = vadd.f32 %v3729_v17, %v6834_v47  ;;  %3782 = vst.msk [vmem:[%s6891_s11 + $0x20] sm:$0xff] %vm1363_vm7, %v3750_v24  ;;  %v3762_v51 = vadd.f32 %v3730_v23, %v6841_v42  ;;  %v3763_v7 = vadd.f32 %v3731_v15, %v6844_v22 }
 0x5d2   : > { %3783 = vst.msk [vmem:[%s6891_s11 + $0x28] sm:$0xff] %vm1363_vm7, %v3751_v48  ;;  %3784 = vst.msk [vmem:[%s6891_s11 + $0x30] sm:$0xff] %vm1363_vm7, %v3752_v59  ;;  %v3764_v47 = vadd.f32 %v3732_v21, %v6847_v19  ;;  %v3765_v35 = vadd.f32 %v3733_v36, %v6850_v39  ;;  %v3766_v14 = vadd.f32 %v3734_v52, %v6857_v5 }
 0x5d3   : > { %3785 = vst.msk [vmem:[%s6891_s11 + $0x38] sm:$0xff] %vm1363_vm7, %v3753_v45  ;;  %3786 = vst.msk [vmem:[%s6891_s11 + $0x40] sm:$0xff] %vm1363_vm7, %v3754_v41  ;;  %v3767_v42 = vadd.f32 %v3735_v6, %v6860_v61  ;;  %v3768_v22 = vadd.f32 %v3736_v9, %v6863_v4  ;;  %v3769_v19 = vadd.f32 %v3737_v58, %v6866_v10 }
 0x5d4   : > { %3787 = vst.msk [vmem:[%s6891_s11 + $0x48] sm:$0xff] %vm1363_vm7, %v3755_v1  ;;  %3788 = vst.msk [vmem:[%s6891_s11 + $0x50] sm:$0xff] %vm1363_vm7, %v3756_v29  ;;  %v3770_v39 = vadd.f32 %v3738_v31, %v6872_v56  ;;  %v3771_v16 = vadd.f32 %v3739_v44, %v6875_v13  ;;  %v3772_v37 = vadd.f32 %v3740_v43, %v6878_v2 }
 0x5d5   : > { %3789 = vst.msk [vmem:[%s6891_s11 + $0x58] sm:$0xff] %vm1363_vm7, %v3757_v38  ;;  %3790 = vst.msk [vmem:[%s6891_s11 + $0x60] sm:$0xff] %vm1363_vm7, %v3758_v20  ;;  %v3773_v30 = vadd.f32 %v3741_v46, %v6881_v57  ;;  %v3774_v50 = vadd.f32 %v3742_v60, %v6894_v27  ;;  %v3775_v5 = vadd.f32 %v3743_v33, %v6897_v0  ;;  %v7055_v4 = vld [vmem:[#allocation3_spill] sm:$0xff] }
 0x5d6   : > { %3791 = vst.msk [vmem:[%s6891_s11 + $0x68] sm:$0xff] %vm1363_vm7, %v3759_v25  ;;  %3792 = vst.msk [vmem:[%s6891_s11 + $0x70] sm:$0xff] %vm1363_vm7, %v3760_v26  ;;  %v3776_v61 = vadd.f32 %v3744_v28, %v6900_v32  ;;  %v3777_v10 = vadd.f32 %v3745_v53, %v7055_v4 }
 0x5d7   : > { %3793 = vst.msk [vmem:[%s6891_s11 + $0x78] sm:$0xff] %vm1363_vm7, %v3761_v49  ;;  %3794 = vst.msk [vmem:[%s6891_s11 + $0x80] sm:$0xff] %vm1363_vm7, %v3762_v51 }
 0x5d8   : > { %3795 = vst.msk [vmem:[%s6891_s11 + $0x88] sm:$0xff] %vm1363_vm7, %v3763_v7  ;;  %3796 = vst.msk [vmem:[%s6891_s11 + $0x90] sm:$0xff] %vm1363_vm7, %v3764_v47 }
 0x5d9   : > { %3797 = vst.msk [vmem:[%s6891_s11 + $0x98] sm:$0xff] %vm1363_vm7, %v3765_v35  ;;  %3798 = vst.msk [vmem:[%s6891_s11 + $0xa0] sm:$0xff] %vm1363_vm7, %v3766_v14 }
 0x5da   : > { %3799 = vst.msk [vmem:[%s6891_s11 + $0xa8] sm:$0xff] %vm1363_vm7, %v3767_v42  ;;  %3800 = vst.msk [vmem:[%s6891_s11 + $0xb0] sm:$0xff] %vm1363_vm7, %v3768_v22 }
 0x5db   : > { %3801 = vst.msk [vmem:[%s6891_s11 + $0xb8] sm:$0xff] %vm1363_vm7, %v3769_v19  ;;  %3802 = vst.msk [vmem:[%s6891_s11 + $0xc0] sm:$0xff] %vm1363_vm7, %v3770_v39 }
 0x5dc   : > { %3803 = vst.msk [vmem:[%s6891_s11 + $0xc8] sm:$0xff] %vm1363_vm7, %v3771_v16  ;;  %3804 = vst.msk [vmem:[%s6891_s11 + $0xd0] sm:$0xff] %vm1363_vm7, %v3772_v37 }
 0x5dd   : > { %3805 = vst.msk [vmem:[%s6891_s11 + $0xd8] sm:$0xff] %vm1363_vm7, %v3773_v30  ;;  %3806 = vst.msk [vmem:[%s6891_s11 + $0xe0] sm:$0xff] %vm1363_vm7, %v3774_v50 }
 0x5de   : > { %3807 = vst.msk [vmem:[%s6891_s11 + $0xe8] sm:$0xff] %vm1363_vm7, %v3775_v5  ;;  %3808 = vst.msk [vmem:[%s6891_s11 + $0xf0] sm:$0xff] %vm1363_vm7, %v3776_v61 }
 0x5df   : > { %3809 = vst.msk [vmem:[%s6891_s11 + $0xf8] sm:$0xff] %vm1363_vm7, %v3777_v10 }
 0x5e0 PF: > { %s16_s21 = sadd.s32 1, %s4170_s21  }
 0x5e1   : > { %p13_p4 = scmp.ge.s32.totalorder %s16_s21, 4  }
 0x5e3   :  { %15 = sbr.rel (!%p13_p4) target bundleno = 1 (0x1), region = 81 }

</bundles_post_ra>
